<compile_context>
chip_gen: v7x
topology: tpu7x:2x2x1
jax: 0.10.0
libtpu: 0.0.40
codegen_flags: <defaults>
</compile_context>

<pallas_src>
import functools
import math

import jax
import jax.numpy as jnp
from jax import lax
from jax.experimental import pallas as pl
from jax.experimental.pallas import tpu as pltpu


def _round_up(x, m):
    return (x + m - 1) // m * m


def _stpnr_kernel(
    x_ref,      # (Tc, Bb, Ip)  f32  time-chunk of the (padded) sequence
    w_ref,      # (Hp, Fp)      f32  recurrent weight (re-laid / padded)
    wl_ref,     # (Hp, Fp)      f32  weight_lambda
    wg_ref,     # (Hp, Fp)      f32  weight_gamma
    b_ref,      # (1, Hp)       f32  bias
    wt_ref,     # (Hp, O)       f32  hidden2tag weight (pre-transposed)
    bt_ref,     # (1, O)        f32  hidden2tag bias
    h0_ref,     # (Bb, Hp)      f32  initial hidden state
    f0_hbm,     # (B, Hp, Fp)   f32  initial fast weights, left in HBM (ANY)
    tag_ref,    # out (Bb, O)
    h_ref,      # out (Bb, Hp)      -- doubles as the carried hidden state
    f_ref,      # out (Bb, Hp, Fp)  -- doubles as the carried fast weights
    ti_s,       # scratch (Bb, Fp)  persistent [x | h | 0] buffer
    dma_sem,    # scratch DMA semaphore (used only when init_from_states)
    *,
    t_chunk,
    seq_len,
    input_pad,        # Ip: lane-aligned width of the x segment
    b_block,
    init_from_states,
    mask_tail,
    unroll,
):
    b_idx = pl.program_id(0)
    t_idx = pl.program_id(1)

    # ---- per-batch-block init: runs on the first time-chunk only ------------
    @pl.when(t_idx == 0)
    def _init():
        # The padded columns of the total-input buffer must stay zero.
        ti_s[...] = jnp.zeros_like(ti_s)
        if init_from_states:
            h_ref[...] = h0_ref[...]
            # DMA the fast-weight slice straight into the resident output
            # block: no separate VMEM copy of f0 ever exists.
            cp = pltpu.make_async_copy(
                f0_hbm.at[pl.ds(b_idx * b_block, b_block)], f_ref, dma_sem)
            cp.start()
            cp.wait()
        else:
            h_ref[...] = jnp.zeros_like(h_ref)
            f_ref[...] = jnp.zeros_like(f_ref)

    hidden_p = h_ref.shape[1]

    def step(tt, carry):
        # total_input = [x_t | h_t], assembled in place at lane-aligned offsets
        # (x at lane 0, h at lane `input_pad`, both 128-aligned starts).
        ti_s[:, 0:input_pad] = x_ref[tt]
        ti_s[:, input_pad:input_pad + hidden_p] = h_ref[...]
        ti = ti_s[...]                                      # (Bb, Fp)

        f = f_ref[...]                                      # (Bb, Hp, Fp)
        tw = w_ref[...] + f                                 # broadcast over batch

        # Per-batch contraction fused with the sum-of-squares on the VPU/XLU
        # path (exact f32; no q=1 MXU matmul on the serial critical path).
        h_pre = jnp.sum(ti[:, None, :] * tw, axis=-1)       # (Bb, Hp)
        sumsq = jnp.sum(tw * tw, axis=-1)                   # (Bb, Hp)

        # Single EUP rsqrt; the eps keeps padded (all-zero) rows finite so
        # 0 * inv_norm stays exactly 0.
        inv_norm = lax.rsqrt(sumsq + 1e-16)                 # (Bb, Hp)

        h_new = jnp.tanh(h_pre * inv_norm + b_ref[...])     # (Bb, Hp)

        # Fused fast-weight update: the only (Bb,Hp,Fp)-sized store per step.
        f_new = (wl_ref[...] * (f * inv_norm[:, :, None])
                 + wg_ref[...] * (h_new[:, :, None] * ti[:, None, :]))

        if mask_tail:
            # Padded tail steps (beyond the real sequence length) are computed
            # on zero inputs but never committed.
            @pl.when(t_idx * t_chunk + tt < seq_len)
            def _commit():
                h_ref[...] = h_new
                f_ref[...] = f_new
        else:
            h_ref[...] = h_new
            f_ref[...] = f_new
        return carry

    lax.fori_loop(0, t_chunk, step, 0, unroll=unroll)

    # ---- finalize: tag projection on the last time-chunk --------------------
    @pl.when(t_idx == pl.num_programs(1) - 1)
    def _finalize():
        # One tiny matmul per batch block; HIGHEST keeps it ~f32 accurate.
        tag_ref[...] = (
            jnp.dot(h_ref[...], wt_ref[...],
                    preferred_element_type=jnp.float32,
                    precision=lax.Precision.HIGHEST)
            + bt_ref[...])


def stpnr_forward(x, params, states=None, *, t_chunk=64, b_block=None):
    """STPNR forward. x: (B, T, I) float32.

    Returns (tag_space (B, O), (h_T (B, H), f_T (B, H, H + I))).
    """
    B, T, I = x.shape
    H, F = params["weight"].shape
    O = params["tag_w"].shape[0]
    assert F == H + I
    f32 = jnp.float32

    # ---- lane-aligned padded layout -----------------------------------------
    Hp = _round_up(H, 8)            # sublane pad for (B,Hp,Fp)/(Hp,Fp)
    Ip = _round_up(I, 128)          # lane-aligned x segment of [x | h]
    Fp = Ip + _round_up(H, 128)     # lane-aligned h segment; Fp % 128 == 0

    def relay_w(a):                 # (H, F) -> (Hp, Fp): cols [x | 0 | h | 0]
        a = a.astype(f32)
        x_cols = jnp.pad(a[:, :I], ((0, Hp - H), (0, Ip - I)))
        h_cols = jnp.pad(a[:, I:], ((0, Hp - H), (0, (Fp - Ip) - H)))
        return jnp.concatenate([x_cols, h_cols], axis=1)

    w_p = relay_w(params["weight"])
    wl_p = relay_w(params["weight_lambda"])
    wg_p = relay_w(params["weight_gamma"])
    b_p = jnp.pad(params["bias"].astype(f32), (0, Hp - H)).reshape(1, Hp)
    wt_p = jnp.pad(params["tag_w"].astype(f32).T, ((0, Hp - H), (0, 0)))   # (Hp, O)
    bt_p = params["tag_b"].astype(f32).reshape(1, O)

    init_from_states = states is not None
    if init_from_states:
        h0_in, f0_in = states
        h0 = jnp.pad(h0_in.astype(f32), ((0, 0), (0, Hp - H)))
        f0_in = f0_in.astype(f32)
        f0 = jnp.concatenate(
            [jnp.pad(f0_in[:, :, :I], ((0, 0), (0, Hp - H), (0, Ip - I))),
             jnp.pad(f0_in[:, :, I:], ((0, 0), (0, Hp - H), (0, (Fp - Ip) - H)))],
            axis=2)                                          # (B, Hp, Fp)
    else:
        h0 = jnp.zeros((B, Hp), f32)
        f0 = jnp.zeros((1, Hp, Fp), f32)   # dummy; never touched in the kernel

    # ---- grid over (batch blocks "parallel", time chunks "arbitrary") -------
    if b_block is None:
        # Split the batch when it is big enough to feed 2 TensorCores (v7x)
        # with sublane-aligned blocks; otherwise keep a single block.
        b_block = B // 2 if (B >= 16 and (B // 2) % 8 == 0) else B
    if B % b_block != 0 or (b_block != B and b_block % 8 != 0):
        b_block = B
    n_bblk = B // b_block

    tc = max(1, min(int(t_chunk), T))
    n_tblk = pl.cdiv(T, tc)
    t_pad = n_tblk * tc
    mask_tail = (t_pad != T)

    x_tbi = jnp.transpose(x.astype(f32), (1, 0, 2))          # (T, B, I) time-major
    x_tbi = jnp.pad(x_tbi, ((0, t_pad - T), (0, 0), (0, Ip - I)))

    # ---- generation-aware VMEM budget ---------------------------------------
    by = 4
    est = by * (
        3 * Hp * Fp                      # w / wl / wg (single-buffered)
        + 2 * tc * b_block * Ip          # x chunk (double-buffered)
        + 2 * b_block * Hp * Fp          # resident f_out (+ headroom)
        + b_block * Fp                   # [x|h] scratch
        + 4 * (b_block * Hp + Hp * O + Hp + O + b_block * O))
    try:
        vmem_cap = int(pltpu.get_tpu_info().vmem_capacity_bytes)
    except Exception:
        vmem_cap = 64 << 20              # conservative (v7x-sized) default
    vmem_limit = int(min(max(est + (4 << 20), 16 << 20),
                         vmem_cap - (16 << 20), 100 << 20))

    kernel = functools.partial(
        _stpnr_kernel,
        t_chunk=tc, seq_len=T, input_pad=Ip, b_block=b_block,
        init_from_states=init_from_states, mask_tail=mask_tail,
        unroll=min(4, tc))

    out_shape = (
        jax.ShapeDtypeStruct((B, O), f32),
        jax.ShapeDtypeStruct((B, Hp), f32),
        jax.ShapeDtypeStruct((B, Hp, Fp), f32),
    )

    def build_and_run(single_buffer):
        def const_spec(shape, index_map):
            # Grid-constant operands: one VMEM buffer is enough (the default
            # double-buffering would only waste VMEM, never overlap anything).
            if single_buffer:
                return pl.BlockSpec(shape, index_map,
                                    pipeline_mode=pl.Buffered(1))
            return pl.BlockSpec(shape, index_map)

        grid_spec = pltpu.PrefetchScalarGridSpec(
            num_scalar_prefetch=0,
            grid=(n_bblk, n_tblk),
            in_specs=[
                pl.BlockSpec((tc, b_block, Ip), lambda b, t: (t, b, 0)),   # x
                const_spec((Hp, Fp), lambda b, t: (0, 0)),                 # weight
                const_spec((Hp, Fp), lambda b, t: (0, 0)),                 # weight_lambda
                const_spec((Hp, Fp), lambda b, t: (0, 0)),                 # weight_gamma
                const_spec((1, Hp), lambda b, t: (0, 0)),                  # bias
                const_spec((Hp, O), lambda b, t: (0, 0)),                  # tag_w^T
                const_spec((1, O), lambda b, t: (0, 0)),                   # tag_b
                pl.BlockSpec((b_block, Hp), lambda b, t: (b, 0)),          # h0
                pl.BlockSpec(memory_space=pl.ANY),                         # f0 (HBM)
            ],
            out_specs=(
                pl.BlockSpec((b_block, O), lambda b, t: (b, 0)),           # tag
                pl.BlockSpec((b_block, Hp), lambda b, t: (b, 0)),          # h_T (carried)
                pl.BlockSpec((b_block, Hp, Fp), lambda b, t: (b, 0, 0)),   # f_T (carried)
            ),
            scratch_shapes=[
                pltpu.VMEM((b_block, Fp), f32),     # persistent [x | h] buffer
                pltpu.SemaphoreType.DMA,            # f0 -> f_out init copy
            ],
        )
        return pl.pallas_call(
            kernel,
            out_shape=out_shape,
            grid_spec=grid_spec,
            compiler_params=pltpu.CompilerParams(
                dimension_semantics=("parallel", "arbitrary"),
                vmem_limit_bytes=vmem_limit,
            ),
        )(x_tbi, w_p, wl_p, wg_p, b_p, wt_p, bt_p, h0, f0)

    try:
        tag, h_fin, f_fin = build_and_run(single_buffer=True)
    except Exception:
        # pipeline_mode=pl.Buffered not available on this jax build: fall back
        # to default (double-buffered) pipelining, which is still correct.
        tag, h_fin, f_fin = build_and_run(single_buffer=False)

    h_out = h_fin[:, :H]
    f_out = jnp.concatenate([f_fin[:, :H, :I], f_fin[:, :H, Ip:Ip + H]], axis=2)
    return tag, (h_out, f_out)


def stpnr_reference(x, params, states=None):
    """Pure-JAX reference mirroring the PyTorch forward exactly (f32)."""
    B, T, I = x.shape
    H, F = params["weight"].shape
    if states is None:
        h = jnp.zeros((B, H), jnp.float32)
        f = jnp.zeros((B, H, F), jnp.float32)
    else:
        h, f = states
        h = h.astype(jnp.float32)
        f = f.astype(jnp.float32)
    w, wl, wg, b = (params["weight"], params["weight_lambda"],
                    params["weight_gamma"], params["bias"])
    for t in range(T):
        x_t = x[:, t]
        total_input = jnp.concatenate([x_t, h], axis=1)
        total_weights = w[None] + f
        h_pre = jnp.sum(total_input[:, None, :] * total_weights, axis=-1)
        norm = jnp.sqrt(jnp.sum(total_weights * total_weights,
                                axis=-1, keepdims=True)) + 1e-16
        h = jnp.tanh(h_pre / norm[..., 0] + b[None, :])
        f = wl[None] * (f / norm) + wg[None] * jnp.einsum(
            "bf,bh->bhf", total_input, h)
    tag = jnp.dot(h, params["tag_w"].T,
                  precision=lax.Precision.HIGHEST) + params["tag_b"]
    return tag, (h, f)


def init_params(key, input_size, hidden_size, output_size):
    init_k = 1.0 / math.sqrt(hidden_size)
    F = hidden_size + input_size
    ks = jax.random.split(key, 6)
    # TODO(synk): ei_mask from the PyTorch __init__ is never used in forward().
    return {
        "weight_lambda": jax.random.uniform(ks[0], (hidden_size, F), jnp.float32, 0.0, 1.0),
        "weight_gamma": jax.random.uniform(ks[1], (hidden_size, F), jnp.float32,
                                           -0.001 * init_k, 0.001 * init_k),
        "weight": jax.random.uniform(ks[2], (hidden_size, F), jnp.float32, -init_k, init_k),
        "bias": jax.random.uniform(ks[3], (hidden_size,), jnp.float32, -init_k, init_k),
        # hidden2tag: torch.nn.Linear(hidden_size, output_size)
        "tag_w": jax.random.uniform(ks[4], (output_size, hidden_size), jnp.float32,
                                    -init_k, init_k),
        "tag_b": jax.random.uniform(ks[5], (output_size,), jnp.float32, -init_k, init_k),
    }


if __name__ == "__main__":
    key = jax.random.PRNGKey(0)
    k_param, k_x1, k_x2, k_h0, k_f0 = jax.random.split(key, 5)

    I, H, O, T = 8, 32, 8, 8
    params = init_params(k_param, I, H, O)

    # --- test 1: small batch, evenly divisible time chunks, zero init state --
    B1 = 2
    x1 = jax.random.normal(k_x1, (B1, T, I), jnp.float32)
    tag1, (h1, f1) = stpnr_forward(x1, params, t_chunk=4)
    jax.block_until_ready((tag1, h1, f1))
    tag1_r, (h1_r, f1_r) = stpnr_reference(x1, params)
    assert jnp.allclose(tag1, tag1_r, atol=1e-4, rtol=1e-4), "tag mismatch (test 1)"
    assert jnp.allclose(h1, h1_r, atol=1e-4, rtol=1e-4), "hidden mismatch (test 1)"
    assert jnp.allclose(f1, f1_r, atol=1e-4, rtol=1e-4), "fast-weight mismatch (test 1)"

    # --- test 2: batch-parallel grid (2 batch blocks), ragged time tail, and
    #             explicit initial states (exercises the f0 HBM->VMEM DMA) ----
    B2 = 16
    x2 = jax.random.normal(k_x2, (B2, T, I), jnp.float32)
    h0 = 0.1 * jax.random.normal(k_h0, (B2, H), jnp.float32)
    f0 = 0.01 * jax.random.normal(k_f0, (B2, H, H + I), jnp.float32)
    tag2, (h2, f2) = stpnr_forward(x2, params, states=(h0, f0),
                                   t_chunk=5, b_block=8)
    jax.block_until_ready((tag2, h2, f2))
    tag2_r, (h2_r, f2_r) = stpnr_reference(x2, params, states=(h0, f0))
    assert jnp.allclose(tag2, tag2_r, atol=1e-4, rtol=1e-4), "tag mismatch (test 2)"
    assert jnp.allclose(h2, h2_r, atol=1e-4, rtol=1e-4), "hidden mismatch (test 2)"
    assert jnp.allclose(f2, f2_r, atol=1e-4, rtol=1e-4), "fast-weight mismatch (test 2)"

    print("KERNEL_OK")
</pallas_src>

<mosaic_0001>
module attributes {stable_mosaic.version = 11 : i64} {
  func.func @_stpnr_kernel(%arg0: i32, %arg1: i32, %arg2: memref<4x2x128xf32, #tpu.memory_space<vmem>>, %arg3: memref<32x256xf32, #tpu.memory_space<vmem>>, %arg4: memref<32x256xf32, #tpu.memory_space<vmem>>, %arg5: memref<32x256xf32, #tpu.memory_space<vmem>>, %arg6: memref<1x32xf32, #tpu.memory_space<vmem>>, %arg7: memref<32x8xf32, #tpu.memory_space<vmem>>, %arg8: memref<1x8xf32, #tpu.memory_space<vmem>>, %arg9: memref<2x32xf32, #tpu.memory_space<vmem>>, %arg10: memref<1x32x256xf32, #tpu.memory_space<any>>, %arg11: memref<2x8xf32, #tpu.memory_space<vmem>>, %arg12: memref<2x32xf32, #tpu.memory_space<vmem>>, %arg13: memref<2x32x256xf32, #tpu.memory_space<vmem>>, %arg14: memref<2x256xf32, #tpu.memory_space<vmem>>, %arg15: memref<!tpu.dma_semaphore, #tpu.memory_space<semaphore_mem>>) attributes {dimension_semantics = [#tpu.dimension_semantics<parallel>, #tpu.dimension_semantics<arbitrary>], iteration_bounds = array<i64: 1, 2>, scalar_prefetch = 0 : i64, scratch_operands = 2 : i64, tpu.core_type = #tpu.core_type<tc>, window_params = [{transform_indices = @transform_0, window_bounds = array<i64: 4, 2, 128>}, {pipeline_mode = #tpu.pipeline_mode<synchronous>, transform_indices = @transform_1, window_bounds = array<i64: 32, 256>}, {pipeline_mode = #tpu.pipeline_mode<synchronous>, transform_indices = @transform_2, window_bounds = array<i64: 32, 256>}, {pipeline_mode = #tpu.pipeline_mode<synchronous>, transform_indices = @transform_3, window_bounds = array<i64: 32, 256>}, {pipeline_mode = #tpu.pipeline_mode<synchronous>, transform_indices = @transform_4, window_bounds = array<i64: 1, 32>}, {pipeline_mode = #tpu.pipeline_mode<synchronous>, transform_indices = @transform_5, window_bounds = array<i64: 32, 8>}, {pipeline_mode = #tpu.pipeline_mode<synchronous>, transform_indices = @transform_6, window_bounds = array<i64: 1, 8>}, {transform_indices = @transform_7, window_bounds = array<i64: 2, 32>}, {}, {transform_indices = @transform_9, window_bounds = array<i64: 2, 8>}, {transform_indices = @transform_10, window_bounds = array<i64: 2, 32>}, {transform_indices = @transform_11, window_bounds = array<i64: 2, 32, 256>}]} {
    %c0_i32 = arith.constant 0 : i32
    %0 = arith.cmpi eq, %arg1, %c0_i32 : i32
    %1 = arith.extui %0 : i1 to i32
    %c0_i32_0 = arith.constant 0 : i32
    %2 = arith.cmpi ne, %1, %c0_i32_0 : i32
    scf.if %2 {
      %cst_117 = arith.constant 0.000000e+00 : f32
      %186 = vector.broadcast %cst_117 : f32 to vector<2x256xf32>
      %c0_118 = arith.constant 0 : index
      %c0_119 = arith.constant 0 : index
      %187 = vector.load %arg14[%c0_118, %c0_119] : memref<2x256xf32, #tpu.memory_space<vmem>>, vector<2x256xf32>
      tpu.vector_store %arg14[%c0_118, %c0_119], %186 {strides = array<i32>} : memref<2x256xf32, #tpu.memory_space<vmem>>, vector<2x256xf32>,
      %cst_120 = arith.constant 0.000000e+00 : f32
      %188 = vector.broadcast %cst_120 : f32 to vector<2x32xf32>
      %c0_121 = arith.constant 0 : index
      %c0_122 = arith.constant 0 : index
      %189 = vector.load %arg12[%c0_121, %c0_122] : memref<2x32xf32, #tpu.memory_space<vmem>>, vector<2x32xf32>
      tpu.vector_store %arg12[%c0_121, %c0_122], %188 {strides = array<i32>} : memref<2x32xf32, #tpu.memory_space<vmem>>, vector<2x32xf32>,
      %cst_123 = arith.constant 0.000000e+00 : f32
      %190 = vector.broadcast %cst_123 : f32 to vector<2x32x256xf32>
      %c0_124 = arith.constant 0 : index
      %c0_125 = arith.constant 0 : index
      %c0_126 = arith.constant 0 : index
      %191 = vector.load %arg13[%c0_124, %c0_125, %c0_126] : memref<2x32x256xf32, #tpu.memory_space<vmem>>, vector<2x32x256xf32>
      tpu.vector_store %arg13[%c0_124, %c0_125, %c0_126], %190 {strides = array<i32>} : memref<2x32x256xf32, #tpu.memory_space<vmem>>, vector<2x32x256xf32>,
    } else {
    }
    %c0_i32_1 = arith.constant 0 : i32
    %3 = arith.index_cast %c0_i32_1 : i32 to index
    %c0 = arith.constant 0 : index
    %c0_2 = arith.constant 0 : index
    %4 = vector.load %arg2[%3, %c0, %c0_2] : memref<4x2x128xf32, #tpu.memory_space<vmem>>, vector<1x2x128xf32>
    %5 = vector.shape_cast %4 : vector<1x2x128xf32> to vector<2x128xf32>
    %c0_3 = arith.constant 0 : index
    %c0_4 = arith.constant 0 : index
    %6 = vector.load %arg14[%c0_3, %c0_4] : memref<2x256xf32, #tpu.memory_space<vmem>>, vector<2x128xf32>
    tpu.vector_store %arg14[%c0_3, %c0_4], %5 {strides = array<i32>} : memref<2x256xf32, #tpu.memory_space<vmem>>, vector<2x128xf32>,
    %c0_5 = arith.constant 0 : index
    %c0_6 = arith.constant 0 : index
    %7 = vector.load %arg12[%c0_5, %c0_6] : memref<2x32xf32, #tpu.memory_space<vmem>>, vector<2x32xf32>
    %c0_7 = arith.constant 0 : index
    %c128 = arith.constant 128 : index
    %8 = vector.load %arg14[%c0_7, %c128] : memref<2x256xf32, #tpu.memory_space<vmem>>, vector<2x32xf32>
    tpu.vector_store %arg14[%c0_7, %c128], %7 {strides = array<i32>} : memref<2x256xf32, #tpu.memory_space<vmem>>, vector<2x32xf32>,
    %c0_8 = arith.constant 0 : index
    %c0_9 = arith.constant 0 : index
    %9 = vector.load %arg14[%c0_8, %c0_9] : memref<2x256xf32, #tpu.memory_space<vmem>>, vector<2x256xf32>
    %c0_10 = arith.constant 0 : index
    %c0_11 = arith.constant 0 : index
    %c0_12 = arith.constant 0 : index
    %10 = vector.load %arg13[%c0_10, %c0_11, %c0_12] : memref<2x32x256xf32, #tpu.memory_space<vmem>>, vector<2x32x256xf32>
    %c0_13 = arith.constant 0 : index
    %c0_14 = arith.constant 0 : index
    %11 = vector.load %arg3[%c0_13, %c0_14] : memref<32x256xf32, #tpu.memory_space<vmem>>, vector<32x256xf32>
    %12 = vector.shape_cast %11 : vector<32x256xf32> to vector<1x32x256xf32>
    %13 = vector.broadcast %12 : vector<1x32x256xf32> to vector<2x32x256xf32>
    %14 = arith.addf %13, %10 : vector<2x32x256xf32>
    %15 = vector.shape_cast %9 : vector<2x256xf32> to vector<2x1x256xf32>
    %16 = vector.broadcast %15 : vector<2x1x256xf32> to vector<2x32x256xf32>
    %17 = arith.mulf %16, %14 : vector<2x32x256xf32>
    %cst = arith.constant dense<0.000000e+00> : vector<2x32xf32>
    %18 = vector.multi_reduction <add>, %17, %cst [2] : vector<2x32x256xf32> to vector<2x32xf32>
    %19 = arith.mulf %14, %14 : vector<2x32x256xf32>
    %cst_15 = arith.constant dense<0.000000e+00> : vector<2x32xf32>
    %20 = vector.multi_reduction <add>, %19, %cst_15 [2] : vector<2x32x256xf32> to vector<2x32xf32>
    %cst_16 = arith.constant 1.000000e-16 : f32
    %21 = vector.broadcast %cst_16 : f32 to vector<2x32xf32>
    %22 = arith.addf %20, %21 : vector<2x32xf32>
    %23 = math.rsqrt %22 : vector<2x32xf32>
    %24 = arith.mulf %18, %23 : vector<2x32xf32>
    %c0_17 = arith.constant 0 : index
    %c0_18 = arith.constant 0 : index
    %25 = vector.load %arg6[%c0_17, %c0_18] : memref<1x32xf32, #tpu.memory_space<vmem>>, vector<1x32xf32>
    %26 = vector.broadcast %25 : vector<1x32xf32> to vector<2x32xf32>
    %27 = arith.addf %24, %26 : vector<2x32xf32>
    %28 = math.tanh %27 : vector<2x32xf32>
    %c0_19 = arith.constant 0 : index
    %c0_20 = arith.constant 0 : index
    %29 = vector.load %arg4[%c0_19, %c0_20] : memref<32x256xf32, #tpu.memory_space<vmem>>, vector<32x256xf32>
    %30 = vector.shape_cast %23 : vector<2x32xf32> to vector<2x32x1xf32>
    %31 = vector.broadcast %30 : vector<2x32x1xf32> to vector<2x32x256xf32>
    %32 = arith.mulf %10, %31 : vector<2x32x256xf32>
    %33 = vector.shape_cast %29 : vector<32x256xf32> to vector<1x32x256xf32>
    %34 = vector.broadcast %33 : vector<1x32x256xf32> to vector<2x32x256xf32>
    %35 = arith.mulf %34, %32 : vector<2x32x256xf32>
    %c0_21 = arith.constant 0 : index
    %c0_22 = arith.constant 0 : index
    %36 = vector.load %arg5[%c0_21, %c0_22] : memref<32x256xf32, #tpu.memory_space<vmem>>, vector<32x256xf32>
    %37 = vector.shape_cast %28 : vector<2x32xf32> to vector<2x32x1xf32>
    %38 = vector.shape_cast %9 : vector<2x256xf32> to vector<2x1x256xf32>
    %39 = vector.broadcast %37 : vector<2x32x1xf32> to vector<2x32x256xf32>
    %40 = vector.broadcast %38 : vector<2x1x256xf32> to vector<2x32x256xf32>
    %41 = arith.mulf %39, %40 : vector<2x32x256xf32>
    %42 = vector.shape_cast %36 : vector<32x256xf32> to vector<1x32x256xf32>
    %43 = vector.broadcast %42 : vector<1x32x256xf32> to vector<2x32x256xf32>
    %44 = arith.mulf %43, %41 : vector<2x32x256xf32>
    %45 = arith.addf %35, %44 : vector<2x32x256xf32>
    %c0_23 = arith.constant 0 : index
    %c0_24 = arith.constant 0 : index
    %46 = vector.load %arg12[%c0_23, %c0_24] : memref<2x32xf32, #tpu.memory_space<vmem>>, vector<2x32xf32>
    tpu.vector_store %arg12[%c0_23, %c0_24], %28 {strides = array<i32>} : memref<2x32xf32, #tpu.memory_space<vmem>>, vector<2x32xf32>,
    %c0_25 = arith.constant 0 : index
    %c0_26 = arith.constant 0 : index
    %c0_27 = arith.constant 0 : index
    %47 = vector.load %arg13[%c0_25, %c0_26, %c0_27] : memref<2x32x256xf32, #tpu.memory_space<vmem>>, vector<2x32x256xf32>
    tpu.vector_store %arg13[%c0_25, %c0_26, %c0_27], %45 {strides = array<i32>} : memref<2x32x256xf32, #tpu.memory_space<vmem>>, vector<2x32x256xf32>,
    %c1_i32 = arith.constant 1 : i32
    %48 = arith.index_cast %c1_i32 : i32 to index
    %c0_28 = arith.constant 0 : index
    %c0_29 = arith.constant 0 : index
    %49 = vector.load %arg2[%48, %c0_28, %c0_29] : memref<4x2x128xf32, #tpu.memory_space<vmem>>, vector<1x2x128xf32>
    %50 = vector.shape_cast %49 : vector<1x2x128xf32> to vector<2x128xf32>
    %c0_30 = arith.constant 0 : index
    %c0_31 = arith.constant 0 : index
    %51 = vector.load %arg14[%c0_30, %c0_31] : memref<2x256xf32, #tpu.memory_space<vmem>>, vector<2x128xf32>
    tpu.vector_store %arg14[%c0_30, %c0_31], %50 {strides = array<i32>} : memref<2x256xf32, #tpu.memory_space<vmem>>, vector<2x128xf32>,
    %c0_32 = arith.constant 0 : index
    %c0_33 = arith.constant 0 : index
    %52 = vector.load %arg12[%c0_32, %c0_33] : memref<2x32xf32, #tpu.memory_space<vmem>>, vector<2x32xf32>
    %c0_34 = arith.constant 0 : index
    %c128_35 = arith.constant 128 : index
    %53 = vector.load %arg14[%c0_34, %c128_35] : memref<2x256xf32, #tpu.memory_space<vmem>>, vector<2x32xf32>
    tpu.vector_store %arg14[%c0_34, %c128_35], %52 {strides = array<i32>} : memref<2x256xf32, #tpu.memory_space<vmem>>, vector<2x32xf32>,
    %c0_36 = arith.constant 0 : index
    %c0_37 = arith.constant 0 : index
    %54 = vector.load %arg14[%c0_36, %c0_37] : memref<2x256xf32, #tpu.memory_space<vmem>>, vector<2x256xf32>
    %c0_38 = arith.constant 0 : index
    %c0_39 = arith.constant 0 : index
    %c0_40 = arith.constant 0 : index
    %55 = vector.load %arg13[%c0_38, %c0_39, %c0_40] : memref<2x32x256xf32, #tpu.memory_space<vmem>>, vector<2x32x256xf32>
    %c0_41 = arith.constant 0 : index
    %c0_42 = arith.constant 0 : index
    %56 = vector.load %arg3[%c0_41, %c0_42] : memref<32x256xf32, #tpu.memory_space<vmem>>, vector<32x256xf32>
    %57 = vector.shape_cast %56 : vector<32x256xf32> to vector<1x32x256xf32>
    %58 = vector.broadcast %57 : vector<1x32x256xf32> to vector<2x32x256xf32>
    %59 = arith.addf %58, %55 : vector<2x32x256xf32>
    %60 = vector.shape_cast %54 : vector<2x256xf32> to vector<2x1x256xf32>
    %61 = vector.broadcast %60 : vector<2x1x256xf32> to vector<2x32x256xf32>
    %62 = arith.mulf %61, %59 : vector<2x32x256xf32>
    %cst_43 = arith.constant dense<0.000000e+00> : vector<2x32xf32>
    %63 = vector.multi_reduction <add>, %62, %cst_43 [2] : vector<2x32x256xf32> to vector<2x32xf32>
    %64 = arith.mulf %59, %59 : vector<2x32x256xf32>
    %cst_44 = arith.constant dense<0.000000e+00> : vector<2x32xf32>
    %65 = vector.multi_reduction <add>, %64, %cst_44 [2] : vector<2x32x256xf32> to vector<2x32xf32>
    %cst_45 = arith.constant 1.000000e-16 : f32
    %66 = vector.broadcast %cst_45 : f32 to vector<2x32xf32>
    %67 = arith.addf %65, %66 : vector<2x32xf32>
    %68 = math.rsqrt %67 : vector<2x32xf32>
    %69 = arith.mulf %63, %68 : vector<2x32xf32>
    %c0_46 = arith.constant 0 : index
    %c0_47 = arith.constant 0 : index
    %70 = vector.load %arg6[%c0_46, %c0_47] : memref<1x32xf32, #tpu.memory_space<vmem>>, vector<1x32xf32>
    %71 = vector.broadcast %70 : vector<1x32xf32> to vector<2x32xf32>
    %72 = arith.addf %69, %71 : vector<2x32xf32>
    %73 = math.tanh %72 : vector<2x32xf32>
    %c0_48 = arith.constant 0 : index
    %c0_49 = arith.constant 0 : index
    %74 = vector.load %arg4[%c0_48, %c0_49] : memref<32x256xf32, #tpu.memory_space<vmem>>, vector<32x256xf32>
    %75 = vector.shape_cast %68 : vector<2x32xf32> to vector<2x32x1xf32>
    %76 = vector.broadcast %75 : vector<2x32x1xf32> to vector<2x32x256xf32>
    %77 = arith.mulf %55, %76 : vector<2x32x256xf32>
    %78 = vector.shape_cast %74 : vector<32x256xf32> to vector<1x32x256xf32>
    %79 = vector.broadcast %78 : vector<1x32x256xf32> to vector<2x32x256xf32>
    %80 = arith.mulf %79, %77 : vector<2x32x256xf32>
    %c0_50 = arith.constant 0 : index
    %c0_51 = arith.constant 0 : index
    %81 = vector.load %arg5[%c0_50, %c0_51] : memref<32x256xf32, #tpu.memory_space<vmem>>, vector<32x256xf32>
    %82 = vector.shape_cast %73 : vector<2x32xf32> to vector<2x32x1xf32>
    %83 = vector.shape_cast %54 : vector<2x256xf32> to vector<2x1x256xf32>
    %84 = vector.broadcast %82 : vector<2x32x1xf32> to vector<2x32x256xf32>
    %85 = vector.broadcast %83 : vector<2x1x256xf32> to vector<2x32x256xf32>
    %86 = arith.mulf %84, %85 : vector<2x32x256xf32>
    %87 = vector.shape_cast %81 : vector<32x256xf32> to vector<1x32x256xf32>
    %88 = vector.broadcast %87 : vector<1x32x256xf32> to vector<2x32x256xf32>
    %89 = arith.mulf %88, %86 : vector<2x32x256xf32>
    %90 = arith.addf %80, %89 : vector<2x32x256xf32>
    %c0_52 = arith.constant 0 : index
    %c0_53 = arith.constant 0 : index
    %91 = vector.load %arg12[%c0_52, %c0_53] : memref<2x32xf32, #tpu.memory_space<vmem>>, vector<2x32xf32>
    tpu.vector_store %arg12[%c0_52, %c0_53], %73 {strides = array<i32>} : memref<2x32xf32, #tpu.memory_space<vmem>>, vector<2x32xf32>,
    %c0_54 = arith.constant 0 : index
    %c0_55 = arith.constant 0 : index
    %c0_56 = arith.constant 0 : index
    %92 = vector.load %arg13[%c0_54, %c0_55, %c0_56] : memref<2x32x256xf32, #tpu.memory_space<vmem>>, vector<2x32x256xf32>
    tpu.vector_store %arg13[%c0_54, %c0_55, %c0_56], %90 {strides = array<i32>} : memref<2x32x256xf32, #tpu.memory_space<vmem>>, vector<2x32x256xf32>,
    %c2_i32 = arith.constant 2 : i32
    %93 = arith.index_cast %c2_i32 : i32 to index
    %c0_57 = arith.constant 0 : index
    %c0_58 = arith.constant 0 : index
    %94 = vector.load %arg2[%93, %c0_57, %c0_58] : memref<4x2x128xf32, #tpu.memory_space<vmem>>, vector<1x2x128xf32>
    %95 = vector.shape_cast %94 : vector<1x2x128xf32> to vector<2x128xf32>
    %c0_59 = arith.constant 0 : index
    %c0_60 = arith.constant 0 : index
    %96 = vector.load %arg14[%c0_59, %c0_60] : memref<2x256xf32, #tpu.memory_space<vmem>>, vector<2x128xf32>
    tpu.vector_store %arg14[%c0_59, %c0_60], %95 {strides = array<i32>} : memref<2x256xf32, #tpu.memory_space<vmem>>, vector<2x128xf32>,
    %c0_61 = arith.constant 0 : index
    %c0_62 = arith.constant 0 : index
    %97 = vector.load %arg12[%c0_61, %c0_62] : memref<2x32xf32, #tpu.memory_space<vmem>>, vector<2x32xf32>
    %c0_63 = arith.constant 0 : index
    %c128_64 = arith.constant 128 : index
    %98 = vector.load %arg14[%c0_63, %c128_64] : memref<2x256xf32, #tpu.memory_space<vmem>>, vector<2x32xf32>
    tpu.vector_store %arg14[%c0_63, %c128_64], %97 {strides = array<i32>} : memref<2x256xf32, #tpu.memory_space<vmem>>, vector<2x32xf32>,
    %c0_65 = arith.constant 0 : index
    %c0_66 = arith.constant 0 : index
    %99 = vector.load %arg14[%c0_65, %c0_66] : memref<2x256xf32, #tpu.memory_space<vmem>>, vector<2x256xf32>
    %c0_67 = arith.constant 0 : index
    %c0_68 = arith.constant 0 : index
    %c0_69 = arith.constant 0 : index
    %100 = vector.load %arg13[%c0_67, %c0_68, %c0_69] : memref<2x32x256xf32, #tpu.memory_space<vmem>>, vector<2x32x256xf32>
    %c0_70 = arith.constant 0 : index
    %c0_71 = arith.constant 0 : index
    %101 = vector.load %arg3[%c0_70, %c0_71] : memref<32x256xf32, #tpu.memory_space<vmem>>, vector<32x256xf32>
    %102 = vector.shape_cast %101 : vector<32x256xf32> to vector<1x32x256xf32>
    %103 = vector.broadcast %102 : vector<1x32x256xf32> to vector<2x32x256xf32>
    %104 = arith.addf %103, %100 : vector<2x32x256xf32>
    %105 = vector.shape_cast %99 : vector<2x256xf32> to vector<2x1x256xf32>
    %106 = vector.broadcast %105 : vector<2x1x256xf32> to vector<2x32x256xf32>
    %107 = arith.mulf %106, %104 : vector<2x32x256xf32>
    %cst_72 = arith.constant dense<0.000000e+00> : vector<2x32xf32>
    %108 = vector.multi_reduction <add>, %107, %cst_72 [2] : vector<2x32x256xf32> to vector<2x32xf32>
    %109 = arith.mulf %104, %104 : vector<2x32x256xf32>
    %cst_73 = arith.constant dense<0.000000e+00> : vector<2x32xf32>
    %110 = vector.multi_reduction <add>, %109, %cst_73 [2] : vector<2x32x256xf32> to vector<2x32xf32>
    %cst_74 = arith.constant 1.000000e-16 : f32
    %111 = vector.broadcast %cst_74 : f32 to vector<2x32xf32>
    %112 = arith.addf %110, %111 : vector<2x32xf32>
    %113 = math.rsqrt %112 : vector<2x32xf32>
    %114 = arith.mulf %108, %113 : vector<2x32xf32>
    %c0_75 = arith.constant 0 : index
    %c0_76 = arith.constant 0 : index
    %115 = vector.load %arg6[%c0_75, %c0_76] : memref<1x32xf32, #tpu.memory_space<vmem>>, vector<1x32xf32>
    %116 = vector.broadcast %115 : vector<1x32xf32> to vector<2x32xf32>
    %117 = arith.addf %114, %116 : vector<2x32xf32>
    %118 = math.tanh %117 : vector<2x32xf32>
    %c0_77 = arith.constant 0 : index
    %c0_78 = arith.constant 0 : index
    %119 = vector.load %arg4[%c0_77, %c0_78] : memref<32x256xf32, #tpu.memory_space<vmem>>, vector<32x256xf32>
    %120 = vector.shape_cast %113 : vector<2x32xf32> to vector<2x32x1xf32>
    %121 = vector.broadcast %120 : vector<2x32x1xf32> to vector<2x32x256xf32>
    %122 = arith.mulf %100, %121 : vector<2x32x256xf32>
    %123 = vector.shape_cast %119 : vector<32x256xf32> to vector<1x32x256xf32>
    %124 = vector.broadcast %123 : vector<1x32x256xf32> to vector<2x32x256xf32>
    %125 = arith.mulf %124, %122 : vector<2x32x256xf32>
    %c0_79 = arith.constant 0 : index
    %c0_80 = arith.constant 0 : index
    %126 = vector.load %arg5[%c0_79, %c0_80] : memref<32x256xf32, #tpu.memory_space<vmem>>, vector<32x256xf32>
    %127 = vector.shape_cast %118 : vector<2x32xf32> to vector<2x32x1xf32>
    %128 = vector.shape_cast %99 : vector<2x256xf32> to vector<2x1x256xf32>
    %129 = vector.broadcast %127 : vector<2x32x1xf32> to vector<2x32x256xf32>
    %130 = vector.broadcast %128 : vector<2x1x256xf32> to vector<2x32x256xf32>
    %131 = arith.mulf %129, %130 : vector<2x32x256xf32>
    %132 = vector.shape_cast %126 : vector<32x256xf32> to vector<1x32x256xf32>
    %133 = vector.broadcast %132 : vector<1x32x256xf32> to vector<2x32x256xf32>
    %134 = arith.mulf %133, %131 : vector<2x32x256xf32>
    %135 = arith.addf %125, %134 : vector<2x32x256xf32>
    %c0_81 = arith.constant 0 : index
    %c0_82 = arith.constant 0 : index
    %136 = vector.load %arg12[%c0_81, %c0_82] : memref<2x32xf32, #tpu.memory_space<vmem>>, vector<2x32xf32>
    tpu.vector_store %arg12[%c0_81, %c0_82], %118 {strides = array<i32>} : memref<2x32xf32, #tpu.memory_space<vmem>>, vector<2x32xf32>,
    %c0_83 = arith.constant 0 : index
    %c0_84 = arith.constant 0 : index
    %c0_85 = arith.constant 0 : index
    %137 = vector.load %arg13[%c0_83, %c0_84, %c0_85] : memref<2x32x256xf32, #tpu.memory_space<vmem>>, vector<2x32x256xf32>
    tpu.vector_store %arg13[%c0_83, %c0_84, %c0_85], %135 {strides = array<i32>} : memref<2x32x256xf32, #tpu.memory_space<vmem>>, vector<2x32x256xf32>,
    %c3_i32 = arith.constant 3 : i32
    %138 = arith.index_cast %c3_i32 : i32 to index
    %c0_86 = arith.constant 0 : index
    %c0_87 = arith.constant 0 : index
    %139 = vector.load %arg2[%138, %c0_86, %c0_87] : memref<4x2x128xf32, #tpu.memory_space<vmem>>, vector<1x2x128xf32>
    %140 = vector.shape_cast %139 : vector<1x2x128xf32> to vector<2x128xf32>
    %c0_88 = arith.constant 0 : index
    %c0_89 = arith.constant 0 : index
    %141 = vector.load %arg14[%c0_88, %c0_89] : memref<2x256xf32, #tpu.memory_space<vmem>>, vector<2x128xf32>
    tpu.vector_store %arg14[%c0_88, %c0_89], %140 {strides = array<i32>} : memref<2x256xf32, #tpu.memory_space<vmem>>, vector<2x128xf32>,
    %c0_90 = arith.constant 0 : index
    %c0_91 = arith.constant 0 : index
    %142 = vector.load %arg12[%c0_90, %c0_91] : memref<2x32xf32, #tpu.memory_space<vmem>>, vector<2x32xf32>
    %c0_92 = arith.constant 0 : index
    %c128_93 = arith.constant 128 : index
    %143 = vector.load %arg14[%c0_92, %c128_93] : memref<2x256xf32, #tpu.memory_space<vmem>>, vector<2x32xf32>
    tpu.vector_store %arg14[%c0_92, %c128_93], %142 {strides = array<i32>} : memref<2x256xf32, #tpu.memory_space<vmem>>, vector<2x32xf32>,
    %c0_94 = arith.constant 0 : index
    %c0_95 = arith.constant 0 : index
    %144 = vector.load %arg14[%c0_94, %c0_95] : memref<2x256xf32, #tpu.memory_space<vmem>>, vector<2x256xf32>
    %c0_96 = arith.constant 0 : index
    %c0_97 = arith.constant 0 : index
    %c0_98 = arith.constant 0 : index
    %145 = vector.load %arg13[%c0_96, %c0_97, %c0_98] : memref<2x32x256xf32, #tpu.memory_space<vmem>>, vector<2x32x256xf32>
    %c0_99 = arith.constant 0 : index
    %c0_100 = arith.constant 0 : index
    %146 = vector.load %arg3[%c0_99, %c0_100] : memref<32x256xf32, #tpu.memory_space<vmem>>, vector<32x256xf32>
    %147 = vector.shape_cast %146 : vector<32x256xf32> to vector<1x32x256xf32>
    %148 = vector.broadcast %147 : vector<1x32x256xf32> to vector<2x32x256xf32>
    %149 = arith.addf %148, %145 : vector<2x32x256xf32>
    %150 = vector.shape_cast %144 : vector<2x256xf32> to vector<2x1x256xf32>
    %151 = vector.broadcast %150 : vector<2x1x256xf32> to vector<2x32x256xf32>
    %152 = arith.mulf %151, %149 : vector<2x32x256xf32>
    %cst_101 = arith.constant dense<0.000000e+00> : vector<2x32xf32>
    %153 = vector.multi_reduction <add>, %152, %cst_101 [2] : vector<2x32x256xf32> to vector<2x32xf32>
    %154 = arith.mulf %149, %149 : vector<2x32x256xf32>
    %cst_102 = arith.constant dense<0.000000e+00> : vector<2x32xf32>
    %155 = vector.multi_reduction <add>, %154, %cst_102 [2] : vector<2x32x256xf32> to vector<2x32xf32>
    %cst_103 = arith.constant 1.000000e-16 : f32
    %156 = vector.broadcast %cst_103 : f32 to vector<2x32xf32>
    %157 = arith.addf %155, %156 : vector<2x32xf32>
    %158 = math.rsqrt %157 : vector<2x32xf32>
    %159 = arith.mulf %153, %158 : vector<2x32xf32>
    %c0_104 = arith.constant 0 : index
    %c0_105 = arith.constant 0 : index
    %160 = vector.load %arg6[%c0_104, %c0_105] : memref<1x32xf32, #tpu.memory_space<vmem>>, vector<1x32xf32>
    %161 = vector.broadcast %160 : vector<1x32xf32> to vector<2x32xf32>
    %162 = arith.addf %159, %161 : vector<2x32xf32>
    %163 = math.tanh %162 : vector<2x32xf32>
    %c0_106 = arith.constant 0 : index
    %c0_107 = arith.constant 0 : index
    %164 = vector.load %arg4[%c0_106, %c0_107] : memref<32x256xf32, #tpu.memory_space<vmem>>, vector<32x256xf32>
    %165 = vector.shape_cast %158 : vector<2x32xf32> to vector<2x32x1xf32>
    %166 = vector.broadcast %165 : vector<2x32x1xf32> to vector<2x32x256xf32>
    %167 = arith.mulf %145, %166 : vector<2x32x256xf32>
    %168 = vector.shape_cast %164 : vector<32x256xf32> to vector<1x32x256xf32>
    %169 = vector.broadcast %168 : vector<1x32x256xf32> to vector<2x32x256xf32>
    %170 = arith.mulf %169, %167 : vector<2x32x256xf32>
    %c0_108 = arith.constant 0 : index
    %c0_109 = arith.constant 0 : index
    %171 = vector.load %arg5[%c0_108, %c0_109] : memref<32x256xf32, #tpu.memory_space<vmem>>, vector<32x256xf32>
    %172 = vector.shape_cast %163 : vector<2x32xf32> to vector<2x32x1xf32>
    %173 = vector.shape_cast %144 : vector<2x256xf32> to vector<2x1x256xf32>
    %174 = vector.broadcast %172 : vector<2x32x1xf32> to vector<2x32x256xf32>
    %175 = vector.broadcast %173 : vector<2x1x256xf32> to vector<2x32x256xf32>
    %176 = arith.mulf %174, %175 : vector<2x32x256xf32>
    %177 = vector.shape_cast %171 : vector<32x256xf32> to vector<1x32x256xf32>
    %178 = vector.broadcast %177 : vector<1x32x256xf32> to vector<2x32x256xf32>
    %179 = arith.mulf %178, %176 : vector<2x32x256xf32>
    %180 = arith.addf %170, %179 : vector<2x32x256xf32>
    %c0_110 = arith.constant 0 : index
    %c0_111 = arith.constant 0 : index
    %181 = vector.load %arg12[%c0_110, %c0_111] : memref<2x32xf32, #tpu.memory_space<vmem>>, vector<2x32xf32>
    tpu.vector_store %arg12[%c0_110, %c0_111], %163 {strides = array<i32>} : memref<2x32xf32, #tpu.memory_space<vmem>>, vector<2x32xf32>,
    %c0_112 = arith.constant 0 : index
    %c0_113 = arith.constant 0 : index
    %c0_114 = arith.constant 0 : index
    %182 = vector.load %arg13[%c0_112, %c0_113, %c0_114] : memref<2x32x256xf32, #tpu.memory_space<vmem>>, vector<2x32x256xf32>
    tpu.vector_store %arg13[%c0_112, %c0_113, %c0_114], %180 {strides = array<i32>} : memref<2x32x256xf32, #tpu.memory_space<vmem>>, vector<2x32x256xf32>,
    %c4_i32 = arith.constant 4 : i32
    %c1_i32_115 = arith.constant 1 : i32
    %183 = arith.cmpi eq, %arg1, %c1_i32_115 : i32
    %184 = arith.extui %183 : i1 to i32
    %c0_i32_116 = arith.constant 0 : i32
    %185 = arith.cmpi ne, %184, %c0_i32_116 : i32
    scf.if %185 {
      %c0_117 = arith.constant 0 : index
      %c0_118 = arith.constant 0 : index
      %186 = vector.load %arg12[%c0_117, %c0_118] : memref<2x32xf32, #tpu.memory_space<vmem>>, vector<2x32xf32>
      %c0_119 = arith.constant 0 : index
      %c0_120 = arith.constant 0 : index
      %187 = vector.load %arg7[%c0_119, %c0_120] : memref<32x8xf32, #tpu.memory_space<vmem>>, vector<32x8xf32>
      %cst_121 = arith.constant dense<0.000000e+00> : vector<2x8xf32>
      %188 = tpu.matmul %186, %187, %cst_121 {dimension_numbers = #tpu.dot_dimension_numbers<[1], [0], [0], [1], [0, 0, 1, 1], [], []>, precision = #tpu.contract_precision<fp32>} : vector<2x32xf32>, vector<32x8xf32>, vector<2x8xf32> -> vector<2x8xf32>
      %c0_122 = arith.constant 0 : index
      %c0_123 = arith.constant 0 : index
      %189 = vector.load %arg8[%c0_122, %c0_123] : memref<1x8xf32, #tpu.memory_space<vmem>>, vector<1x8xf32>
      %190 = vector.broadcast %189 : vector<1x8xf32> to vector<2x8xf32>
      %191 = arith.addf %188, %190 : vector<2x8xf32>
      %c0_124 = arith.constant 0 : index
      %c0_125 = arith.constant 0 : index
      %192 = vector.load %arg11[%c0_124, %c0_125] : memref<2x8xf32, #tpu.memory_space<vmem>>, vector<2x8xf32>
      tpu.vector_store %arg11[%c0_124, %c0_125], %191 {strides = array<i32>} : memref<2x8xf32, #tpu.memory_space<vmem>>, vector<2x8xf32>,
    } else {
    }
    return
  }
  func.func @transform_0(%arg0: i32, %arg1: i32) -> (i32, i32, i32) {
    %c0_i32 = arith.constant 0 : i32
    %c0_i32_0 = arith.constant 0 : i32
    return %arg1, %arg0, %c0_i32 : i32, i32, i32
  }
  func.func @transform_1(%arg0: i32, %arg1: i32) -> (i32, i32) {
    %c0_i32 = arith.constant 0 : i32
    %c0_i32_0 = arith.constant 0 : i32
    %c0_i32_1 = arith.constant 0 : i32
    return %c0_i32, %c0_i32_0 : i32, i32
  }
  func.func @transform_2(%arg0: i32, %arg1: i32) -> (i32, i32) {
    %c0_i32 = arith.constant 0 : i32
    %c0_i32_0 = arith.constant 0 : i32
    %c0_i32_1 = arith.constant 0 : i32
    return %c0_i32, %c0_i32_0 : i32, i32
  }
  func.func @transform_3(%arg0: i32, %arg1: i32) -> (i32, i32) {
    %c0_i32 = arith.constant 0 : i32
    %c0_i32_0 = arith.constant 0 : i32
    %c0_i32_1 = arith.constant 0 : i32
    return %c0_i32, %c0_i32_0 : i32, i32
  }
  func.func @transform_4(%arg0: i32, %arg1: i32) -> (i32, i32) {
    %c0_i32 = arith.constant 0 : i32
    %c0_i32_0 = arith.constant 0 : i32
    %c0_i32_1 = arith.constant 0 : i32
    return %c0_i32, %c0_i32_0 : i32, i32
  }
  func.func @transform_5(%arg0: i32, %arg1: i32) -> (i32, i32) {
    %c0_i32 = arith.constant 0 : i32
    %c0_i32_0 = arith.constant 0 : i32
    %c0_i32_1 = arith.constant 0 : i32
    return %c0_i32, %c0_i32_0 : i32, i32
  }
  func.func @transform_6(%arg0: i32, %arg1: i32) -> (i32, i32) {
    %c0_i32 = arith.constant 0 : i32
    %c0_i32_0 = arith.constant 0 : i32
    %c0_i32_1 = arith.constant 0 : i32
    return %c0_i32, %c0_i32_0 : i32, i32
  }
  func.func @transform_7(%arg0: i32, %arg1: i32) -> (i32, i32) {
    %c0_i32 = arith.constant 0 : i32
    %c0_i32_0 = arith.constant 0 : i32
    return %arg0, %c0_i32 : i32, i32
  }
  func.func @transform_9(%arg0: i32, %arg1: i32) -> (i32, i32) {
    %c0_i32 = arith.constant 0 : i32
    %c0_i32_0 = arith.constant 0 : i32
    return %arg0, %c0_i32 : i32, i32
  }
  func.func @transform_10(%arg0: i32, %arg1: i32) -> (i32, i32) {
    %c0_i32 = arith.constant 0 : i32
    %c0_i32_0 = arith.constant 0 : i32
    return %arg0, %c0_i32 : i32, i32
  }
  func.func @transform_11(%arg0: i32, %arg1: i32) -> (i32, i32, i32) {
    %c0_i32 = arith.constant 0 : i32
    %c0_i32_0 = arith.constant 0 : i32
    %c0_i32_1 = arith.constant 0 : i32
    return %arg0, %c0_i32, %c0_i32_0 : i32, i32, i32
  }
}

module attributes {stable_mosaic.version = 11 : i64} {
  func.func @_stpnr_kernel(%arg0: i32, %arg1: i32, %arg2: memref<4x2x128xf32, #tpu.memory_space<vmem>>, %arg3: memref<32x256xf32, #tpu.memory_space<vmem>>, %arg4: memref<32x256xf32, #tpu.memory_space<vmem>>, %arg5: memref<32x256xf32, #tpu.memory_space<vmem>>, %arg6: memref<1x32xf32, #tpu.memory_space<vmem>>, %arg7: memref<32x8xf32, #tpu.memory_space<vmem>>, %arg8: memref<1x8xf32, #tpu.memory_space<vmem>>, %arg9: memref<2x32xf32, #tpu.memory_space<vmem>>, %arg10: memref<1x32x256xf32, #tpu.memory_space<any>>, %arg11: memref<2x8xf32, #tpu.memory_space<vmem>>, %arg12: memref<2x32xf32, #tpu.memory_space<vmem>>, %arg13: memref<2x32x256xf32, #tpu.memory_space<vmem>>, %arg14: memref<2x256xf32, #tpu.memory_space<vmem>>, %arg15: memref<!tpu.dma_semaphore, #tpu.memory_space<semaphore_mem>>) attributes {dimension_semantics = [#tpu.dimension_semantics<parallel>, #tpu.dimension_semantics<arbitrary>], iteration_bounds = array<i64: 1, 2>, scalar_prefetch = 0 : i64, scratch_operands = 2 : i64, tpu.core_type = #tpu.core_type<tc>, window_params = [{transform_indices = @transform_0, window_bounds = array<i64: 4, 2, 128>}, {pipeline_mode = #tpu.pipeline_mode<synchronous>, transform_indices = @transform_1, window_bounds = array<i64: 32, 256>}, {pipeline_mode = #tpu.pipeline_mode<synchronous>, transform_indices = @transform_2, window_bounds = array<i64: 32, 256>}, {pipeline_mode = #tpu.pipeline_mode<synchronous>, transform_indices = @transform_3, window_bounds = array<i64: 32, 256>}, {pipeline_mode = #tpu.pipeline_mode<synchronous>, transform_indices = @transform_4, window_bounds = array<i64: 1, 32>}, {pipeline_mode = #tpu.pipeline_mode<synchronous>, transform_indices = @transform_5, window_bounds = array<i64: 32, 8>}, {pipeline_mode = #tpu.pipeline_mode<synchronous>, transform_indices = @transform_6, window_bounds = array<i64: 1, 8>}, {transform_indices = @transform_7, window_bounds = array<i64: 2, 32>}, {}, {transform_indices = @transform_9, window_bounds = array<i64: 2, 8>}, {transform_indices = @transform_10, window_bounds = array<i64: 2, 32>}, {transform_indices = @transform_11, window_bounds = array<i64: 2, 32, 256>}]} {
    %c0_i32 = arith.constant 0 : i32
    %0 = arith.cmpi eq, %arg1, %c0_i32 : i32
    %1 = arith.extui %0 : i1 to i32
    %c0_i32_0 = arith.constant 0 : i32
    %2 = arith.cmpi ne, %1, %c0_i32_0 : i32
    scf.if %2 {
      %cst_117 = arith.constant 0.000000e+00 : f32
      %186 = vector.broadcast %cst_117 : f32 to vector<2x256xf32>
      %c0_118 = arith.constant 0 : index
      %c0_119 = arith.constant 0 : index
      %187 = vector.load %arg14[%c0_118, %c0_119] : memref<2x256xf32, #tpu.memory_space<vmem>>, vector<2x256xf32>
      tpu.vector_store %arg14[%c0_118, %c0_119], %186 {strides = array<i32>} : memref<2x256xf32, #tpu.memory_space<vmem>>, vector<2x256xf32>,
      %cst_120 = arith.constant 0.000000e+00 : f32
      %188 = vector.broadcast %cst_120 : f32 to vector<2x32xf32>
      %c0_121 = arith.constant 0 : index
      %c0_122 = arith.constant 0 : index
      %189 = vector.load %arg12[%c0_121, %c0_122] : memref<2x32xf32, #tpu.memory_space<vmem>>, vector<2x32xf32>
      tpu.vector_store %arg12[%c0_121, %c0_122], %188 {strides = array<i32>} : memref<2x32xf32, #tpu.memory_space<vmem>>, vector<2x32xf32>,
      %cst_123 = arith.constant 0.000000e+00 : f32
      %190 = vector.broadcast %cst_123 : f32 to vector<2x32x256xf32>
      %c0_124 = arith.constant 0 : index
      %c0_125 = arith.constant 0 : index
      %c0_126 = arith.constant 0 : index
      %191 = vector.load %arg13[%c0_124, %c0_125, %c0_126] : memref<2x32x256xf32, #tpu.memory_space<vmem>>, vector<2x32x256xf32>
      tpu.vector_store %arg13[%c0_124, %c0_125, %c0_126], %190 {strides = array<i32>} : memref<2x32x256xf32, #tpu.memory_space<vmem>>, vector<2x32x256xf32>,
    } else {
    }
    %c0_i32_1 = arith.constant 0 : i32
    %3 = arith.index_cast %c0_i32_1 : i32 to index
    %c0 = arith.constant 0 : index
    %c0_2 = arith.constant 0 : index
    %4 = vector.load %arg2[%3, %c0, %c0_2] : memref<4x2x128xf32, #tpu.memory_space<vmem>>, vector<1x2x128xf32>
    %5 = vector.shape_cast %4 : vector<1x2x128xf32> to vector<2x128xf32>
    %c0_3 = arith.constant 0 : index
    %c0_4 = arith.constant 0 : index
    %6 = vector.load %arg14[%c0_3, %c0_4] : memref<2x256xf32, #tpu.memory_space<vmem>>, vector<2x128xf32>
    tpu.vector_store %arg14[%c0_3, %c0_4], %5 {strides = array<i32>} : memref<2x256xf32, #tpu.memory_space<vmem>>, vector<2x128xf32>,
    %c0_5 = arith.constant 0 : index
    %c0_6 = arith.constant 0 : index
    %7 = vector.load %arg12[%c0_5, %c0_6] : memref<2x32xf32, #tpu.memory_space<vmem>>, vector<2x32xf32>
    %c0_7 = arith.constant 0 : index
    %c128 = arith.constant 128 : index
    %8 = vector.load %arg14[%c0_7, %c128] : memref<2x256xf32, #tpu.memory_space<vmem>>, vector<2x32xf32>
    tpu.vector_store %arg14[%c0_7, %c128], %7 {strides = array<i32>} : memref<2x256xf32, #tpu.memory_space<vmem>>, vector<2x32xf32>,
    %c0_8 = arith.constant 0 : index
    %c0_9 = arith.constant 0 : index
    %9 = vector.load %arg14[%c0_8, %c0_9] : memref<2x256xf32, #tpu.memory_space<vmem>>, vector<2x256xf32>
    %c0_10 = arith.constant 0 : index
    %c0_11 = arith.constant 0 : index
    %c0_12 = arith.constant 0 : index
    %10 = vector.load %arg13[%c0_10, %c0_11, %c0_12] : memref<2x32x256xf32, #tpu.memory_space<vmem>>, vector<2x32x256xf32>
    %c0_13 = arith.constant 0 : index
    %c0_14 = arith.constant 0 : index
    %11 = vector.load %arg3[%c0_13, %c0_14] : memref<32x256xf32, #tpu.memory_space<vmem>>, vector<32x256xf32>
    %12 = vector.shape_cast %11 : vector<32x256xf32> to vector<1x32x256xf32>
    %13 = vector.broadcast %12 : vector<1x32x256xf32> to vector<2x32x256xf32>
    %14 = arith.addf %13, %10 : vector<2x32x256xf32>
    %15 = vector.shape_cast %9 : vector<2x256xf32> to vector<2x1x256xf32>
    %16 = vector.broadcast %15 : vector<2x1x256xf32> to vector<2x32x256xf32>
    %17 = arith.mulf %16, %14 : vector<2x32x256xf32>
    %cst = arith.constant dense<0.000000e+00> : vector<2x32xf32>
    %18 = vector.multi_reduction <add>, %17, %cst [2] : vector<2x32x256xf32> to vector<2x32xf32>
    %19 = arith.mulf %14, %14 : vector<2x32x256xf32>
    %cst_15 = arith.constant dense<0.000000e+00> : vector<2x32xf32>
    %20 = vector.multi_reduction <add>, %19, %cst_15 [2] : vector<2x32x256xf32> to vector<2x32xf32>
    %cst_16 = arith.constant 1.000000e-16 : f32
    %21 = vector.broadcast %cst_16 : f32 to vector<2x32xf32>
    %22 = arith.addf %20, %21 : vector<2x32xf32>
    %23 = math.rsqrt %22 : vector<2x32xf32>
    %24 = arith.mulf %18, %23 : vector<2x32xf32>
    %c0_17 = arith.constant 0 : index
    %c0_18 = arith.constant 0 : index
    %25 = vector.load %arg6[%c0_17, %c0_18] : memref<1x32xf32, #tpu.memory_space<vmem>>, vector<1x32xf32>
    %26 = vector.broadcast %25 : vector<1x32xf32> to vector<2x32xf32>
    %27 = arith.addf %24, %26 : vector<2x32xf32>
    %28 = math.tanh %27 : vector<2x32xf32>
    %c0_19 = arith.constant 0 : index
    %c0_20 = arith.constant 0 : index
    %29 = vector.load %arg4[%c0_19, %c0_20] : memref<32x256xf32, #tpu.memory_space<vmem>>, vector<32x256xf32>
    %30 = vector.shape_cast %23 : vector<2x32xf32> to vector<2x32x1xf32>
    %31 = vector.broadcast %30 : vector<2x32x1xf32> to vector<2x32x256xf32>
    %32 = arith.mulf %10, %31 : vector<2x32x256xf32>
    %33 = vector.shape_cast %29 : vector<32x256xf32> to vector<1x32x256xf32>
    %34 = vector.broadcast %33 : vector<1x32x256xf32> to vector<2x32x256xf32>
    %35 = arith.mulf %34, %32 : vector<2x32x256xf32>
    %c0_21 = arith.constant 0 : index
    %c0_22 = arith.constant 0 : index
    %36 = vector.load %arg5[%c0_21, %c0_22] : memref<32x256xf32, #tpu.memory_space<vmem>>, vector<32x256xf32>
    %37 = vector.shape_cast %28 : vector<2x32xf32> to vector<2x32x1xf32>
    %38 = vector.shape_cast %9 : vector<2x256xf32> to vector<2x1x256xf32>
    %39 = vector.broadcast %37 : vector<2x32x1xf32> to vector<2x32x256xf32>
    %40 = vector.broadcast %38 : vector<2x1x256xf32> to vector<2x32x256xf32>
    %41 = arith.mulf %39, %40 : vector<2x32x256xf32>
    %42 = vector.shape_cast %36 : vector<32x256xf32> to vector<1x32x256xf32>
    %43 = vector.broadcast %42 : vector<1x32x256xf32> to vector<2x32x256xf32>
    %44 = arith.mulf %43, %41 : vector<2x32x256xf32>
    %45 = arith.addf %35, %44 : vector<2x32x256xf32>
    %c0_23 = arith.constant 0 : index
    %c0_24 = arith.constant 0 : index
    %46 = vector.load %arg12[%c0_23, %c0_24] : memref<2x32xf32, #tpu.memory_space<vmem>>, vector<2x32xf32>
    tpu.vector_store %arg12[%c0_23, %c0_24], %28 {strides = array<i32>} : memref<2x32xf32, #tpu.memory_space<vmem>>, vector<2x32xf32>,
    %c0_25 = arith.constant 0 : index
    %c0_26 = arith.constant 0 : index
    %c0_27 = arith.constant 0 : index
    %47 = vector.load %arg13[%c0_25, %c0_26, %c0_27] : memref<2x32x256xf32, #tpu.memory_space<vmem>>, vector<2x32x256xf32>
    tpu.vector_store %arg13[%c0_25, %c0_26, %c0_27], %45 {strides = array<i32>} : memref<2x32x256xf32, #tpu.memory_space<vmem>>, vector<2x32x256xf32>,
    %c1_i32 = arith.constant 1 : i32
    %48 = arith.index_cast %c1_i32 : i32 to index
    %c0_28 = arith.constant 0 : index
    %c0_29 = arith.constant 0 : index
    %49 = vector.load %arg2[%48, %c0_28, %c0_29] : memref<4x2x128xf32, #tpu.memory_space<vmem>>, vector<1x2x128xf32>
    %50 = vector.shape_cast %49 : vector<1x2x128xf32> to vector<2x128xf32>
    %c0_30 = arith.constant 0 : index
    %c0_31 = arith.constant 0 : index
    %51 = vector.load %arg14[%c0_30, %c0_31] : memref<2x256xf32, #tpu.memory_space<vmem>>, vector<2x128xf32>
    tpu.vector_store %arg14[%c0_30, %c0_31], %50 {strides = array<i32>} : memref<2x256xf32, #tpu.memory_space<vmem>>, vector<2x128xf32>,
    %c0_32 = arith.constant 0 : index
    %c0_33 = arith.constant 0 : index
    %52 = vector.load %arg12[%c0_32, %c0_33] : memref<2x32xf32, #tpu.memory_space<vmem>>, vector<2x32xf32>
    %c0_34 = arith.constant 0 : index
    %c128_35 = arith.constant 128 : index
    %53 = vector.load %arg14[%c0_34, %c128_35] : memref<2x256xf32, #tpu.memory_space<vmem>>, vector<2x32xf32>
    tpu.vector_store %arg14[%c0_34, %c128_35], %52 {strides = array<i32>} : memref<2x256xf32, #tpu.memory_space<vmem>>, vector<2x32xf32>,
    %c0_36 = arith.constant 0 : index
    %c0_37 = arith.constant 0 : index
    %54 = vector.load %arg14[%c0_36, %c0_37] : memref<2x256xf32, #tpu.memory_space<vmem>>, vector<2x256xf32>
    %c0_38 = arith.constant 0 : index
    %c0_39 = arith.constant 0 : index
    %c0_40 = arith.constant 0 : index
    %55 = vector.load %arg13[%c0_38, %c0_39, %c0_40] : memref<2x32x256xf32, #tpu.memory_space<vmem>>, vector<2x32x256xf32>
    %c0_41 = arith.constant 0 : index
    %c0_42 = arith.constant 0 : index
    %56 = vector.load %arg3[%c0_41, %c0_42] : memref<32x256xf32, #tpu.memory_space<vmem>>, vector<32x256xf32>
    %57 = vector.shape_cast %56 : vector<32x256xf32> to vector<1x32x256xf32>
    %58 = vector.broadcast %57 : vector<1x32x256xf32> to vector<2x32x256xf32>
    %59 = arith.addf %58, %55 : vector<2x32x256xf32>
    %60 = vector.shape_cast %54 : vector<2x256xf32> to vector<2x1x256xf32>
    %61 = vector.broadcast %60 : vector<2x1x256xf32> to vector<2x32x256xf32>
    %62 = arith.mulf %61, %59 : vector<2x32x256xf32>
    %cst_43 = arith.constant dense<0.000000e+00> : vector<2x32xf32>
    %63 = vector.multi_reduction <add>, %62, %cst_43 [2] : vector<2x32x256xf32> to vector<2x32xf32>
    %64 = arith.mulf %59, %59 : vector<2x32x256xf32>
    %cst_44 = arith.constant dense<0.000000e+00> : vector<2x32xf32>
    %65 = vector.multi_reduction <add>, %64, %cst_44 [2] : vector<2x32x256xf32> to vector<2x32xf32>
    %cst_45 = arith.constant 1.000000e-16 : f32
    %66 = vector.broadcast %cst_45 : f32 to vector<2x32xf32>
    %67 = arith.addf %65, %66 : vector<2x32xf32>
    %68 = math.rsqrt %67 : vector<2x32xf32>
    %69 = arith.mulf %63, %68 : vector<2x32xf32>
    %c0_46 = arith.constant 0 : index
    %c0_47 = arith.constant 0 : index
    %70 = vector.load %arg6[%c0_46, %c0_47] : memref<1x32xf32, #tpu.memory_space<vmem>>, vector<1x32xf32>
    %71 = vector.broadcast %70 : vector<1x32xf32> to vector<2x32xf32>
    %72 = arith.addf %69, %71 : vector<2x32xf32>
    %73 = math.tanh %72 : vector<2x32xf32>
    %c0_48 = arith.constant 0 : index
    %c0_49 = arith.constant 0 : index
    %74 = vector.load %arg4[%c0_48, %c0_49] : memref<32x256xf32, #tpu.memory_space<vmem>>, vector<32x256xf32>
    %75 = vector.shape_cast %68 : vector<2x32xf32> to vector<2x32x1xf32>
    %76 = vector.broadcast %75 : vector<2x32x1xf32> to vector<2x32x256xf32>
    %77 = arith.mulf %55, %76 : vector<2x32x256xf32>
    %78 = vector.shape_cast %74 : vector<32x256xf32> to vector<1x32x256xf32>
    %79 = vector.broadcast %78 : vector<1x32x256xf32> to vector<2x32x256xf32>
    %80 = arith.mulf %79, %77 : vector<2x32x256xf32>
    %c0_50 = arith.constant 0 : index
    %c0_51 = arith.constant 0 : index
    %81 = vector.load %arg5[%c0_50, %c0_51] : memref<32x256xf32, #tpu.memory_space<vmem>>, vector<32x256xf32>
    %82 = vector.shape_cast %73 : vector<2x32xf32> to vector<2x32x1xf32>
    %83 = vector.shape_cast %54 : vector<2x256xf32> to vector<2x1x256xf32>
    %84 = vector.broadcast %82 : vector<2x32x1xf32> to vector<2x32x256xf32>
    %85 = vector.broadcast %83 : vector<2x1x256xf32> to vector<2x32x256xf32>
    %86 = arith.mulf %84, %85 : vector<2x32x256xf32>
    %87 = vector.shape_cast %81 : vector<32x256xf32> to vector<1x32x256xf32>
    %88 = vector.broadcast %87 : vector<1x32x256xf32> to vector<2x32x256xf32>
    %89 = arith.mulf %88, %86 : vector<2x32x256xf32>
    %90 = arith.addf %80, %89 : vector<2x32x256xf32>
    %c0_52 = arith.constant 0 : index
    %c0_53 = arith.constant 0 : index
    %91 = vector.load %arg12[%c0_52, %c0_53] : memref<2x32xf32, #tpu.memory_space<vmem>>, vector<2x32xf32>
    tpu.vector_store %arg12[%c0_52, %c0_53], %73 {strides = array<i32>} : memref<2x32xf32, #tpu.memory_space<vmem>>, vector<2x32xf32>,
    %c0_54 = arith.constant 0 : index
    %c0_55 = arith.constant 0 : index
    %c0_56 = arith.constant 0 : index
    %92 = vector.load %arg13[%c0_54, %c0_55, %c0_56] : memref<2x32x256xf32, #tpu.memory_space<vmem>>, vector<2x32x256xf32>
    tpu.vector_store %arg13[%c0_54, %c0_55, %c0_56], %90 {strides = array<i32>} : memref<2x32x256xf32, #tpu.memory_space<vmem>>, vector<2x32x256xf32>,
    %c2_i32 = arith.constant 2 : i32
    %93 = arith.index_cast %c2_i32 : i32 to index
    %c0_57 = arith.constant 0 : index
    %c0_58 = arith.constant 0 : index
    %94 = vector.load %arg2[%93, %c0_57, %c0_58] : memref<4x2x128xf32, #tpu.memory_space<vmem>>, vector<1x2x128xf32>
    %95 = vector.shape_cast %94 : vector<1x2x128xf32> to vector<2x128xf32>
    %c0_59 = arith.constant 0 : index
    %c0_60 = arith.constant 0 : index
    %96 = vector.load %arg14[%c0_59, %c0_60] : memref<2x256xf32, #tpu.memory_space<vmem>>, vector<2x128xf32>
    tpu.vector_store %arg14[%c0_59, %c0_60], %95 {strides = array<i32>} : memref<2x256xf32, #tpu.memory_space<vmem>>, vector<2x128xf32>,
    %c0_61 = arith.constant 0 : index
    %c0_62 = arith.constant 0 : index
    %97 = vector.load %arg12[%c0_61, %c0_62] : memref<2x32xf32, #tpu.memory_space<vmem>>, vector<2x32xf32>
    %c0_63 = arith.constant 0 : index
    %c128_64 = arith.constant 128 : index
    %98 = vector.load %arg14[%c0_63, %c128_64] : memref<2x256xf32, #tpu.memory_space<vmem>>, vector<2x32xf32>
    tpu.vector_store %arg14[%c0_63, %c128_64], %97 {strides = array<i32>} : memref<2x256xf32, #tpu.memory_space<vmem>>, vector<2x32xf32>,
    %c0_65 = arith.constant 0 : index
    %c0_66 = arith.constant 0 : index
    %99 = vector.load %arg14[%c0_65, %c0_66] : memref<2x256xf32, #tpu.memory_space<vmem>>, vector<2x256xf32>
    %c0_67 = arith.constant 0 : index
    %c0_68 = arith.constant 0 : index
    %c0_69 = arith.constant 0 : index
    %100 = vector.load %arg13[%c0_67, %c0_68, %c0_69] : memref<2x32x256xf32, #tpu.memory_space<vmem>>, vector<2x32x256xf32>
    %c0_70 = arith.constant 0 : index
    %c0_71 = arith.constant 0 : index
    %101 = vector.load %arg3[%c0_70, %c0_71] : memref<32x256xf32, #tpu.memory_space<vmem>>, vector<32x256xf32>
    %102 = vector.shape_cast %101 : vector<32x256xf32> to vector<1x32x256xf32>
    %103 = vector.broadcast %102 : vector<1x32x256xf32> to vector<2x32x256xf32>
    %104 = arith.addf %103, %100 : vector<2x32x256xf32>
    %105 = vector.shape_cast %99 : vector<2x256xf32> to vector<2x1x256xf32>
    %106 = vector.broadcast %105 : vector<2x1x256xf32> to vector<2x32x256xf32>
    %107 = arith.mulf %106, %104 : vector<2x32x256xf32>
    %cst_72 = arith.constant dense<0.000000e+00> : vector<2x32xf32>
    %108 = vector.multi_reduction <add>, %107, %cst_72 [2] : vector<2x32x256xf32> to vector<2x32xf32>
    %109 = arith.mulf %104, %104 : vector<2x32x256xf32>
    %cst_73 = arith.constant dense<0.000000e+00> : vector<2x32xf32>
    %110 = vector.multi_reduction <add>, %109, %cst_73 [2] : vector<2x32x256xf32> to vector<2x32xf32>
    %cst_74 = arith.constant 1.000000e-16 : f32
    %111 = vector.broadcast %cst_74 : f32 to vector<2x32xf32>
    %112 = arith.addf %110, %111 : vector<2x32xf32>
    %113 = math.rsqrt %112 : vector<2x32xf32>
    %114 = arith.mulf %108, %113 : vector<2x32xf32>
    %c0_75 = arith.constant 0 : index
    %c0_76 = arith.constant 0 : index
    %115 = vector.load %arg6[%c0_75, %c0_76] : memref<1x32xf32, #tpu.memory_space<vmem>>, vector<1x32xf32>
    %116 = vector.broadcast %115 : vector<1x32xf32> to vector<2x32xf32>
    %117 = arith.addf %114, %116 : vector<2x32xf32>
    %118 = math.tanh %117 : vector<2x32xf32>
    %c0_77 = arith.constant 0 : index
    %c0_78 = arith.constant 0 : index
    %119 = vector.load %arg4[%c0_77, %c0_78] : memref<32x256xf32, #tpu.memory_space<vmem>>, vector<32x256xf32>
    %120 = vector.shape_cast %113 : vector<2x32xf32> to vector<2x32x1xf32>
    %121 = vector.broadcast %120 : vector<2x32x1xf32> to vector<2x32x256xf32>
    %122 = arith.mulf %100, %121 : vector<2x32x256xf32>
    %123 = vector.shape_cast %119 : vector<32x256xf32> to vector<1x32x256xf32>
    %124 = vector.broadcast %123 : vector<1x32x256xf32> to vector<2x32x256xf32>
    %125 = arith.mulf %124, %122 : vector<2x32x256xf32>
    %c0_79 = arith.constant 0 : index
    %c0_80 = arith.constant 0 : index
    %126 = vector.load %arg5[%c0_79, %c0_80] : memref<32x256xf32, #tpu.memory_space<vmem>>, vector<32x256xf32>
    %127 = vector.shape_cast %118 : vector<2x32xf32> to vector<2x32x1xf32>
    %128 = vector.shape_cast %99 : vector<2x256xf32> to vector<2x1x256xf32>
    %129 = vector.broadcast %127 : vector<2x32x1xf32> to vector<2x32x256xf32>
    %130 = vector.broadcast %128 : vector<2x1x256xf32> to vector<2x32x256xf32>
    %131 = arith.mulf %129, %130 : vector<2x32x256xf32>
    %132 = vector.shape_cast %126 : vector<32x256xf32> to vector<1x32x256xf32>
    %133 = vector.broadcast %132 : vector<1x32x256xf32> to vector<2x32x256xf32>
    %134 = arith.mulf %133, %131 : vector<2x32x256xf32>
    %135 = arith.addf %125, %134 : vector<2x32x256xf32>
    %c0_81 = arith.constant 0 : index
    %c0_82 = arith.constant 0 : index
    %136 = vector.load %arg12[%c0_81, %c0_82] : memref<2x32xf32, #tpu.memory_space<vmem>>, vector<2x32xf32>
    tpu.vector_store %arg12[%c0_81, %c0_82], %118 {strides = array<i32>} : memref<2x32xf32, #tpu.memory_space<vmem>>, vector<2x32xf32>,
    %c0_83 = arith.constant 0 : index
    %c0_84 = arith.constant 0 : index
    %c0_85 = arith.constant 0 : index
    %137 = vector.load %arg13[%c0_83, %c0_84, %c0_85] : memref<2x32x256xf32, #tpu.memory_space<vmem>>, vector<2x32x256xf32>
    tpu.vector_store %arg13[%c0_83, %c0_84, %c0_85], %135 {strides = array<i32>} : memref<2x32x256xf32, #tpu.memory_space<vmem>>, vector<2x32x256xf32>,
    %c3_i32 = arith.constant 3 : i32
    %138 = arith.index_cast %c3_i32 : i32 to index
    %c0_86 = arith.constant 0 : index
    %c0_87 = arith.constant 0 : index
    %139 = vector.load %arg2[%138, %c0_86, %c0_87] : memref<4x2x128xf32, #tpu.memory_space<vmem>>, vector<1x2x128xf32>
    %140 = vector.shape_cast %139 : vector<1x2x128xf32> to vector<2x128xf32>
    %c0_88 = arith.constant 0 : index
    %c0_89 = arith.constant 0 : index
    %141 = vector.load %arg14[%c0_88, %c0_89] : memref<2x256xf32, #tpu.memory_space<vmem>>, vector<2x128xf32>
    tpu.vector_store %arg14[%c0_88, %c0_89], %140 {strides = array<i32>} : memref<2x256xf32, #tpu.memory_space<vmem>>, vector<2x128xf32>,
    %c0_90 = arith.constant 0 : index
    %c0_91 = arith.constant 0 : index
    %142 = vector.load %arg12[%c0_90, %c0_91] : memref<2x32xf32, #tpu.memory_space<vmem>>, vector<2x32xf32>
    %c0_92 = arith.constant 0 : index
    %c128_93 = arith.constant 128 : index
    %143 = vector.load %arg14[%c0_92, %c128_93] : memref<2x256xf32, #tpu.memory_space<vmem>>, vector<2x32xf32>
    tpu.vector_store %arg14[%c0_92, %c128_93], %142 {strides = array<i32>} : memref<2x256xf32, #tpu.memory_space<vmem>>, vector<2x32xf32>,
    %c0_94 = arith.constant 0 : index
    %c0_95 = arith.constant 0 : index
    %144 = vector.load %arg14[%c0_94, %c0_95] : memref<2x256xf32, #tpu.memory_space<vmem>>, vector<2x256xf32>
    %c0_96 = arith.constant 0 : index
    %c0_97 = arith.constant 0 : index
    %c0_98 = arith.constant 0 : index
    %145 = vector.load %arg13[%c0_96, %c0_97, %c0_98] : memref<2x32x256xf32, #tpu.memory_space<vmem>>, vector<2x32x256xf32>
    %c0_99 = arith.constant 0 : index
    %c0_100 = arith.constant 0 : index
    %146 = vector.load %arg3[%c0_99, %c0_100] : memref<32x256xf32, #tpu.memory_space<vmem>>, vector<32x256xf32>
    %147 = vector.shape_cast %146 : vector<32x256xf32> to vector<1x32x256xf32>
    %148 = vector.broadcast %147 : vector<1x32x256xf32> to vector<2x32x256xf32>
    %149 = arith.addf %148, %145 : vector<2x32x256xf32>
    %150 = vector.shape_cast %144 : vector<2x256xf32> to vector<2x1x256xf32>
    %151 = vector.broadcast %150 : vector<2x1x256xf32> to vector<2x32x256xf32>
    %152 = arith.mulf %151, %149 : vector<2x32x256xf32>
    %cst_101 = arith.constant dense<0.000000e+00> : vector<2x32xf32>
    %153 = vector.multi_reduction <add>, %152, %cst_101 [2] : vector<2x32x256xf32> to vector<2x32xf32>
    %154 = arith.mulf %149, %149 : vector<2x32x256xf32>
    %cst_102 = arith.constant dense<0.000000e+00> : vector<2x32xf32>
    %155 = vector.multi_reduction <add>, %154, %cst_102 [2] : vector<2x32x256xf32> to vector<2x32xf32>
    %cst_103 = arith.constant 1.000000e-16 : f32
    %156 = vector.broadcast %cst_103 : f32 to vector<2x32xf32>
    %157 = arith.addf %155, %156 : vector<2x32xf32>
    %158 = math.rsqrt %157 : vector<2x32xf32>
    %159 = arith.mulf %153, %158 : vector<2x32xf32>
    %c0_104 = arith.constant 0 : index
    %c0_105 = arith.constant 0 : index
    %160 = vector.load %arg6[%c0_104, %c0_105] : memref<1x32xf32, #tpu.memory_space<vmem>>, vector<1x32xf32>
    %161 = vector.broadcast %160 : vector<1x32xf32> to vector<2x32xf32>
    %162 = arith.addf %159, %161 : vector<2x32xf32>
    %163 = math.tanh %162 : vector<2x32xf32>
    %c0_106 = arith.constant 0 : index
    %c0_107 = arith.constant 0 : index
    %164 = vector.load %arg4[%c0_106, %c0_107] : memref<32x256xf32, #tpu.memory_space<vmem>>, vector<32x256xf32>
    %165 = vector.shape_cast %158 : vector<2x32xf32> to vector<2x32x1xf32>
    %166 = vector.broadcast %165 : vector<2x32x1xf32> to vector<2x32x256xf32>
    %167 = arith.mulf %145, %166 : vector<2x32x256xf32>
    %168 = vector.shape_cast %164 : vector<32x256xf32> to vector<1x32x256xf32>
    %169 = vector.broadcast %168 : vector<1x32x256xf32> to vector<2x32x256xf32>
    %170 = arith.mulf %169, %167 : vector<2x32x256xf32>
    %c0_108 = arith.constant 0 : index
    %c0_109 = arith.constant 0 : index
    %171 = vector.load %arg5[%c0_108, %c0_109] : memref<32x256xf32, #tpu.memory_space<vmem>>, vector<32x256xf32>
    %172 = vector.shape_cast %163 : vector<2x32xf32> to vector<2x32x1xf32>
    %173 = vector.shape_cast %144 : vector<2x256xf32> to vector<2x1x256xf32>
    %174 = vector.broadcast %172 : vector<2x32x1xf32> to vector<2x32x256xf32>
    %175 = vector.broadcast %173 : vector<2x1x256xf32> to vector<2x32x256xf32>
    %176 = arith.mulf %174, %175 : vector<2x32x256xf32>
    %177 = vector.shape_cast %171 : vector<32x256xf32> to vector<1x32x256xf32>
    %178 = vector.broadcast %177 : vector<1x32x256xf32> to vector<2x32x256xf32>
    %179 = arith.mulf %178, %176 : vector<2x32x256xf32>
    %180 = arith.addf %170, %179 : vector<2x32x256xf32>
    %c0_110 = arith.constant 0 : index
    %c0_111 = arith.constant 0 : index
    %181 = vector.load %arg12[%c0_110, %c0_111] : memref<2x32xf32, #tpu.memory_space<vmem>>, vector<2x32xf32>
    tpu.vector_store %arg12[%c0_110, %c0_111], %163 {strides = array<i32>} : memref<2x32xf32, #tpu.memory_space<vmem>>, vector<2x32xf32>,
    %c0_112 = arith.constant 0 : index
    %c0_113 = arith.constant 0 : index
    %c0_114 = arith.constant 0 : index
    %182 = vector.load %arg13[%c0_112, %c0_113, %c0_114] : memref<2x32x256xf32, #tpu.memory_space<vmem>>, vector<2x32x256xf32>
    tpu.vector_store %arg13[%c0_112, %c0_113, %c0_114], %180 {strides = array<i32>} : memref<2x32x256xf32, #tpu.memory_space<vmem>>, vector<2x32x256xf32>,
    %c4_i32 = arith.constant 4 : i32
    %c1_i32_115 = arith.constant 1 : i32
    %183 = arith.cmpi eq, %arg1, %c1_i32_115 : i32
    %184 = arith.extui %183 : i1 to i32
    %c0_i32_116 = arith.constant 0 : i32
    %185 = arith.cmpi ne, %184, %c0_i32_116 : i32
    scf.if %185 {
      %c0_117 = arith.constant 0 : index
      %c0_118 = arith.constant 0 : index
      %186 = vector.load %arg12[%c0_117, %c0_118] : memref<2x32xf32, #tpu.memory_space<vmem>>, vector<2x32xf32>
      %c0_119 = arith.constant 0 : index
      %c0_120 = arith.constant 0 : index
      %187 = vector.load %arg7[%c0_119, %c0_120] : memref<32x8xf32, #tpu.memory_space<vmem>>, vector<32x8xf32>
      %cst_121 = arith.constant dense<0.000000e+00> : vector<2x8xf32>
      %188 = tpu.matmul %186, %187, %cst_121 {dimension_numbers = #tpu.dot_dimension_numbers<[1], [0], [0], [1], [0, 0, 1, 1], [], []>, precision = #tpu.contract_precision<fp32>} : vector<2x32xf32>, vector<32x8xf32>, vector<2x8xf32> -> vector<2x8xf32>
      %c0_122 = arith.constant 0 : index
      %c0_123 = arith.constant 0 : index
      %189 = vector.load %arg8[%c0_122, %c0_123] : memref<1x8xf32, #tpu.memory_space<vmem>>, vector<1x8xf32>
      %190 = vector.broadcast %189 : vector<1x8xf32> to vector<2x8xf32>
      %191 = arith.addf %188, %190 : vector<2x8xf32>
      %c0_124 = arith.constant 0 : index
      %c0_125 = arith.constant 0 : index
      %192 = vector.load %arg11[%c0_124, %c0_125] : memref<2x8xf32, #tpu.memory_space<vmem>>, vector<2x8xf32>
      tpu.vector_store %arg11[%c0_124, %c0_125], %191 {strides = array<i32>} : memref<2x8xf32, #tpu.memory_space<vmem>>, vector<2x8xf32>,
    } else {
    }
    return
  }
  func.func @transform_0(%arg0: i32, %arg1: i32) -> (i32, i32, i32) {
    %c0_i32 = arith.constant 0 : i32
    %c0_i32_0 = arith.constant 0 : i32
    return %arg1, %arg0, %c0_i32 : i32, i32, i32
  }
  func.func @transform_1(%arg0: i32, %arg1: i32) -> (i32, i32) {
    %c0_i32 = arith.constant 0 : i32
    %c0_i32_0 = arith.constant 0 : i32
    %c0_i32_1 = arith.constant 0 : i32
    return %c0_i32, %c0_i32_0 : i32, i32
  }
  func.func @transform_2(%arg0: i32, %arg1: i32) -> (i32, i32) {
    %c0_i32 = arith.constant 0 : i32
    %c0_i32_0 = arith.constant 0 : i32
    %c0_i32_1 = arith.constant 0 : i32
    return %c0_i32, %c0_i32_0 : i32, i32
  }
  func.func @transform_3(%arg0: i32, %arg1: i32) -> (i32, i32) {
    %c0_i32 = arith.constant 0 : i32
    %c0_i32_0 = arith.constant 0 : i32
    %c0_i32_1 = arith.constant 0 : i32
    return %c0_i32, %c0_i32_0 : i32, i32
  }
  func.func @transform_4(%arg0: i32, %arg1: i32) -> (i32, i32) {
    %c0_i32 = arith.constant 0 : i32
    %c0_i32_0 = arith.constant 0 : i32
    %c0_i32_1 = arith.constant 0 : i32
    return %c0_i32, %c0_i32_0 : i32, i32
  }
  func.func @transform_5(%arg0: i32, %arg1: i32) -> (i32, i32) {
    %c0_i32 = arith.constant 0 : i32
    %c0_i32_0 = arith.constant 0 : i32
    %c0_i32_1 = arith.constant 0 : i32
    return %c0_i32, %c0_i32_0 : i32, i32
  }
  func.func @transform_6(%arg0: i32, %arg1: i32) -> (i32, i32) {
    %c0_i32 = arith.constant 0 : i32
    %c0_i32_0 = arith.constant 0 : i32
    %c0_i32_1 = arith.constant 0 : i32
    return %c0_i32, %c0_i32_0 : i32, i32
  }
  func.func @transform_7(%arg0: i32, %arg1: i32) -> (i32, i32) {
    %c0_i32 = arith.constant 0 : i32
    %c0_i32_0 = arith.constant 0 : i32
    return %arg0, %c0_i32 : i32, i32
  }
  func.func @transform_9(%arg0: i32, %arg1: i32) -> (i32, i32) {
    %c0_i32 = arith.constant 0 : i32
    %c0_i32_0 = arith.constant 0 : i32
    return %arg0, %c0_i32 : i32, i32
  }
  func.func @transform_10(%arg0: i32, %arg1: i32) -> (i32, i32) {
    %c0_i32 = arith.constant 0 : i32
    %c0_i32_0 = arith.constant 0 : i32
    return %arg0, %c0_i32 : i32, i32
  }
  func.func @transform_11(%arg0: i32, %arg1: i32) -> (i32, i32, i32) {
    %c0_i32 = arith.constant 0 : i32
    %c0_i32_0 = arith.constant 0 : i32
    %c0_i32_1 = arith.constant 0 : i32
    return %arg0, %c0_i32, %c0_i32_0 : i32, i32, i32
  }
}

</mosaic_0001>

<bundles_post_ra>
// kernel: tpu_custom_call.1
= control target key start
LH: loop header
LB: loop body
LE: loop exit
PB: predicated region body
PF: predicated region fallthrough
CT: control target
= control target key end

     0   :  { %s5057_s0 = inlined_call_operand.hbm [shape: f32[8,2,128], index: 0, kind: input, shape index: {}]   ;;  %s5058_s1 = inlined_call_operand.hbm [shape: f32[32,256], index: 1, kind: input, shape index: {}]   ;;  %s5059_s2 = inlined_call_operand.hbm [shape: f32[32,256], index: 2, kind: input, shape index: {}]   ;;  %s5060_s3 = inlined_call_operand.hbm [shape: f32[32,256], index: 3, kind: input, shape index: {}]   ;;  %s5061_s4 = inlined_call_operand.vmem [shape: f32[1,32], index: 4, kind: input, shape index: {}]   ;;  %s5062_s5 = inlined_call_operand.vmem [shape: f32[32,8], index: 5, kind: input, shape index: {}]   ;;  %s5063_s6 = inlined_call_operand.vmem [shape: f32[1,8], index: 6, kind: input, shape index: {}]   ;;  %s5064_s7 = inlined_call_operand.vmem [shape: f32[2,32], index: 7, kind: input, shape index: {}]   ;;  %s5065_s8 = inlined_call_operand.vmem [shape: f32[1,32,256], index: 8, kind: input, shape index: {}]   ;;  %s5066_s9 = inlined_call_operand.hbm [shape: f32[2,8], index: 9, kind: output, shape index: {0}]   ;;  %s5067_s10 = inlined_call_operand.hbm [shape: f32[2,32], index: 10, kind: output, shape index: {1}]   ;;  %s5068_s11 = inlined_call_operand.hbm [shape: f32[2,32,256], index: 11, kind: output, shape index: {2}]  }
   0x1   :  { %5108 = sst [smem:[#allocation29_spill]] %s5066_s9 }
   0x2   :  { %5109 = sst [smem:[#allocation30_spill]] %s5067_s10 }
   0x3   :  { %5110 = sst [smem:[#allocation31_spill]] %s5068_s11 }
   0x4   :  { %17 = vsyncpa [#allocation5], 0 }
   0x5   :  { %19 = vsyncpa [#allocation5 + $0x1], 0 }
   0x6   :  { %20 = vsyncpa [#allocation8], 0 }
   0x7   :  { %21 = vsyncpa [#allocation11], 0 }
   0x8   :  { %22 = vsyncpa [#allocation6], 0 }
   0x9   :  { %23 = vsyncpa [#allocation14], 0  ;;  %s3592_s17 = smov 0   ;;  %s3594_s7 = smov 0  }
   0xa   :  { %s3596_s8 = smov 0   ;;  %s3598_s18 = smov 0  }
   0xb   :  { %s3600_s19 = smov 0   ;;  %s3602_s20 = smov 0  }
   0xc LB: > { %s5071_s21 = sadd.s32 4294967295, %s3512_s20   ;;  %p63_p0 = scmp.ne.s32.totalorder %s3496_s7, %s3492_s17  ;;  %s3512_s20 = sphi %s3602_s20, %s29_s20   ;;  %s3508_s19 = sphi %s3600_s19, %s5160_s19   ;;  %s3504_s18 = sphi %s3598_s18, %s5159_s18   ;;  %s3500_s8 = sphi %s3596_s8, %s5158_s8   ;;  %s3496_s7 = sphi %s3594_s7, %s5157_s7   ;;  %s3492_s17 = sphi %s3592_s17, %s5156_s17  }
   0xd   : > { %p3624_p1 = scmp.eq.s32.totalorder %s5071_s21, 0  ;;  %p2825_p2 = scmp.ge.s32.totalorder %s3512_s20, 1 }
   0xe   : > { %p304_p3 = scmp.lt.s32.totalorder %s3512_s20, 3  ;;  %s3514_s25 = smov [#allocation7]  }
   0xf   : > { %s5111_s22 = scalar_select %p3624_p1, 1, 0 }
  0x10   : > { %p3632_p4 = por %p3624_p1, %p63_p0  ;;  %p3636_p5 = pnand %p2825_p2, %p304_p3 }
  0x11   : > { %s316_s26 = sshll.u32 %s3514_s25, 4  ;;  %s3515_s28 = smov [#allocation9]   ;;  %s3640_s26 = int_to_ptr.vmem [resolvable:$true] %s316_s26 }
  0x12   : > { %s5112_s23 = scalar_select %p3632_p4, 1, 0 }
  0x13   : > { %s5113_s24 = scalar_select %p3636_p5, 1, 0 }
  0x14   : > { %p3031_p6 = pneg %p3636_p5  ;;  %s329_s29 = sshll.u32 %s3515_s28, 4  ;;  %s3650_s29 = int_to_ptr.vmem [resolvable:$true] %s329_s29 }
  0x15   : > { %s3516_s30 = smov [#allocation10]   ;;  %s3254_s15 = scalar_lea.hbm %s5058_s1, 1024 }
  0x16   : > { %p3646_p7 = pnand %p3031_p6, %p3624_p1  ;;  %s3652_s12 = sshll.u32 %s3516_s30, 4  ;;  %s343_s12 = int_to_ptr.vmem [resolvable:$true] %s3652_s12 }
  0x17   : > { %p3255_p8 = scmp.ne.s32.totalorder %s5058_s1, %s3254_s15  ;;  %p3261_p12 = scmp.lt.u32.totalorder %s3254_s15, %s5058_s1 }
  0x18   : > { %p3662_p9 = pneg %p3646_p7 }
  0x1a   : > { %p3257_p10 = pnand %p3662_p9, %p3255_p8 }
  0x1c   : > { %p3258_p11 = pneg %p3257_p10 }
  0x1e   : > { %p3263_p13 = pnand %p3261_p12, %p3258_p11 }
  0x20   : > { %3266 = shalt.err (!%p3263_p13)
}
  0x21   : > { %s3267_s13 = scalar_lea.vmem %s3640_s26, 1024  ;;  %p3275_p6 = scmp.lt.s32.totalorder %s3640_s26, %s3640_s26 }
  0x22   : > { %p3268_p0 = scmp.ne.s32.totalorder %s3640_s26, %s3267_s13  ;;  %p3276_p1 = scmp.lt.s32.totalorder %s3267_s13, %s3267_s13 }
  0x24   : > { %p3270_p2 = pnand %p3268_p0, %p3662_p9  ;;  %p3277_p8 = por %p3276_p1, %p3275_p6 }
  0x26   : > { %p3271_p3 = pneg %p3270_p2 }
  0x28   : > { %p3278_p10 = pnand %p3277_p8, %p3271_p3 }
  0x2a   : > { %3281 = shalt.err (!%p3278_p10)
}
  0x2b   : > { %s3517_s14 = smov 256   ;;  %s3518_s15 = smov 16  }
  0x2c   : > { %3034 = dma.hbm_to_vmem [thread:$0]  (!%p3646_p7), %s5058_s1, 1024, %s3640_s26, [#allocation8], %s3517_s14, %s3517_s14, %s3518_s15  }
  0x2d   : > { %s3282_s13 = scalar_lea.hbm %s5059_s2, 1024 }
  0x2e   : > { %p3283_p1 = scmp.ne.s32.totalorder %s5059_s2, %s3282_s13  ;;  %p3289_p13 = scmp.lt.u32.totalorder %s3282_s13, %s5059_s2 }
  0x30   : > { %p3285_p11 = pnand %p3283_p1, %p3662_p9 }
  0x32   : > { %p3286_p12 = pneg %p3285_p11 }
  0x34   : > { %p3291_p0 = pnand %p3289_p13, %p3286_p12 }
  0x36   : > { %3294 = shalt.err (!%p3291_p0)
}
  0x37   : > { %s3295_s26 = scalar_lea.vmem %s3650_s29, 1024  ;;  %p3303_p8 = scmp.lt.s32.totalorder %s3650_s29, %s3650_s29 }
  0x38   : > { %p3296_p2 = scmp.ne.s32.totalorder %s3650_s29, %s3295_s26  ;;  %p3304_p10 = scmp.lt.s32.totalorder %s3295_s26, %s3295_s26 }
  0x3a   : > { %p3298_p3 = pnand %p3296_p2, %p3662_p9  ;;  %p3305_p1 = por %p3304_p10, %p3303_p8 }
  0x3c   : > { %p3299_p6 = pneg %p3298_p3 }
  0x3e   : > { %p3306_p11 = pnand %p3305_p1, %p3299_p6 }
  0x40   : > { %3309 = shalt.err (!%p3306_p11)
}
  0x41   : > { %3037 = dma.hbm_to_vmem [thread:$0]  (!%p3646_p7), %s5059_s2, 1024, %s3650_s29, [#allocation8], %s3517_s14, %s3517_s14, %s3518_s15  }
  0x42   : > { %s3310_s16 = scalar_lea.hbm %s5060_s3, 1024 }
  0x43   : > { %p3311_p12 = scmp.ne.s32.totalorder %s5060_s3, %s3310_s16  ;;  %p3317_p2 = scmp.lt.u32.totalorder %s3310_s16, %s5060_s3 }
  0x45   : > { %p3313_p13 = pnand %p3311_p12, %p3662_p9 }
  0x47   : > { %p3314_p0 = pneg %p3313_p13 }
  0x49   : > { %p3319_p3 = pnand %p3317_p2, %p3314_p0 }
  0x4b   : > { %3322 = shalt.err (!%p3319_p3)
}
  0x4c   : > { %s3323_s26 = scalar_lea.vmem %s343_s12, 1024  ;;  %p3331_p1 = scmp.lt.s32.totalorder %s343_s12, %s343_s12 }
  0x4d   : > { %p3324_p6 = scmp.ne.s32.totalorder %s343_s12, %s3323_s26  ;;  %p3332_p11 = scmp.lt.s32.totalorder %s3323_s26, %s3323_s26 }
  0x4f   : > { %p3326_p8 = pnand %p3324_p6, %p3662_p9  ;;  %p3333_p4 = por %p3332_p11, %p3331_p1 }
  0x51   : > { %p3327_p10 = pneg %p3326_p8 }
  0x53   : > { %p3334_p5 = pnand %p3333_p4, %p3327_p10 }
  0x55   : > { %3337 = shalt.err (!%p3334_p5)
}
  0x56   : > { %3040 = dma.hbm_to_vmem [thread:$0]  (!%p3646_p7), %s5060_s3, 1024, %s343_s12, [#allocation11], %s3517_s14, %s3517_s14, %s3518_s15  }
  0x57   : > { %s50_s25 = sadd.s32 1, %s3500_s8  ;;  %s38_s10 = sadd.s32 1, %s3508_s19 }
  0x58   : > { %p57_p4 = scmp.ne.s32.totalorder %s3500_s8, %s3496_s7  ;;  %p39_p5 = scmp.ge.s32.totalorder %s38_s10, 2 }
  0x59   : > { %p58_p9 = scmp.eq.s32.totalorder %s3512_s20, 0  ;;  %p3048_p12 = scmp.lt.s32.totalorder %s3512_s20, 2 }
  0x5a   : > { %s372_s27 = sand.u32 1, %s3500_s8   ;;  %s5162_s10 = smov (%p39_p5, %s38_s10), 0 }
  0x5b   : > { %p59_p13 = por %p58_p9, %p57_p4  ;;  %s45_s11 = ssub.s32 %s3508_s19, %s5162_s10 }
  0x5c   : > { %s2831_s21 = sshll.u32 %s372_s27, 3  ;;  %p48_p0 = scmp.eq.s32.totalorder %s45_s11, 0 }
  0x5d   : > { %s2862_s16 = sshll.u32 %s3508_s19, 7  ;;  %s376_s17 = scalar_lea.vmem [#allocation4], %s2831_s21 }
  0x5e   : > { %s384_s28 = sshll.u32 %s376_s17, 4  ;;  %s3752_s30 = scalar_lea.hbm %s5057_s0, %s2862_s16  ;;  %s3754_s28 = int_to_ptr.vmem [resolvable:$true] %s384_s28 }
  0x5f   : > { %s3747_s12 = scalar_select %p48_p0, %s3500_s8, %s50_s25  }
  0x60   : > { %p3758_p7 = pnand %p3048_p12, %p59_p13  ;;  %s3762_s26 = scalar_lea.sflag [#allocation5], %s372_s27 }
  0x61   : > { %s3338_s29 = scalar_lea.hbm %s3752_s30, 128  ;;  %s3343_s11 = scalar_lea.hbm %s5057_s0, 256 }
  0x62   : > { %p3339_p2 = scmp.ne.s32.totalorder %s3752_s30, %s3338_s29  ;;  %p3340_p3 = pneg %p3758_p7 }
  0x63   : > { %p3344_p10 = scmp.lt.u32.totalorder %s3752_s30, %s5057_s0  ;;  %p3345_p1 = scmp.lt.u32.totalorder %s3343_s11, %s3338_s29 }
  0x64   : > { %p3341_p6 = pnand %p3340_p3, %p3339_p2  ;;  %p3347_p4 = scmp.lt.u32.totalorder %s3338_s29, %s3752_s30 }
  0x65   : > { %p3346_p11 = por %p3345_p1, %p3344_p10 }
  0x66   : > { %p3342_p8 = pneg %p3341_p6 }
  0x67   : > { %p3348_p5 = por %p3347_p4, %p3346_p11 }
  0x69   : > { %p3349_p9 = pnand %p3348_p5, %p3342_p8 }
  0x6b   : > { %3352 = shalt.err (!%p3349_p9)
}
  0x6c   : > { %s3353_s27 = scalar_lea.vmem %s3754_s28, 128  ;;  %s3519_s17 = smov [#allocation4]  }
  0x6d   : > { %p3354_p12 = scmp.ne.s32.totalorder %s3754_s28, %s3353_s27  ;;  %s3358_s14 = sshll.u32 %s3519_s17, 4  ;;  %s3359_s14 = int_to_ptr.vmem [resolvable:$false] %s3358_s14 }
  0x6e   : > { %s3360_s15 = scalar_lea.vmem %s3359_s14, 256  ;;  %p3361_p2 = scmp.lt.s32.totalorder %s3754_s28, %s3359_s14 }
  0x6f   : > { %p3356_p13 = pnand %p3354_p12, %p3340_p3  ;;  %p3362_p6 = scmp.lt.s32.totalorder %s3360_s15, %s3353_s27 }
  0x71   : > { %p3357_p0 = pneg %p3356_p13  ;;  %p3363_p10 = por %p3362_p6, %p3361_p2 }
  0x73   : > { %p3364_p1 = pnand %p3363_p10, %p3357_p0 }
  0x75   : > { %3367 = shalt.err (!%p3364_p1)
}
  0x76   : > { %s3520_s29 = smov 32   ;;  %s3521_s9 = smov 2  }
  0x77   : > { %3044 = dma.hbm_to_vmem [thread:$0]  (!%p3758_p7), %s3752_s30, 128, %s3754_s28, %s3762_s26, %s3520_s29, %s3520_s29, %s3521_s9  }
  0x78   : > { %p5117_p3 = scmp.ne.s32.totalorder %s5113_s24, 0 }
  0x7a   : > { %396 = sbr.rel (%p5117_p3) target bundleno = 1857 (0x741), region = 52 }
  0x81   : > { %s398_s25 = sand.u32 1, %s3496_s7   ;;  %p5118_p8 = scmp.ne.s32.totalorder %s5112_s23, 0 }
  0x82   : > { %s2835_s11 = sshll.u32 %s398_s25, 3  ;;  %s399_s21 = scalar_lea.sflag [#allocation5], %s398_s25 }
  0x83   : > { %s3793_s16 = scalar_lea.vmem [#allocation4], %s2835_s11 }
  0x84   : > { %3471 = dma.done.wait (%p5118_p8), %s399_s21, 128  }
  0x85   : > { %3473 = vsyncadd (%p5118_p8), %s399_s21, 4294967168  ;;  %p5119_p11 = scmp.ne.s32.totalorder %s5111_s22, 0 }
  0x87   : > { %3475 = dma.done.wait (%p5119_p11), [#allocation8], 2048  }
  0x88   : > { %3477 = vsyncadd (%p5119_p11), [#allocation8], 4294965248 }
  0x89   : > { %3479 = dma.done.wait (%p5119_p11), [#allocation11], 1024  }
  0x8a   : > { %3481 = vsyncadd (%p5119_p11), [#allocation11], 4294966272  ;;  %p2839_p7 = scmp.ne.s32.totalorder %s3504_s18, 0 }
  0x8b   : > { %vm461_vm0 = vcmask (!%p2839_p7), 254976   ;;  %v3522_v0 = vmov (!%p2839_p7), 0.0  }
  0x8c   : > { %459 = sbr.rel (%p2839_p7) target bundleno = 149 (0x95), region = 72  ;;  %460 = vst [vmem:[#allocation2] sm:$0xf] (!%p2839_p7), %v3522_v0  ;;  %463 = vst [vmem:[#allocation15] sm:$0xff] (!%p2839_p7), %v3522_v0 }
  0x8d   : > { %464 = vst [vmem:[#allocation15 + $0x8] sm:$0xff] (!%p2839_p7), %v3522_v0  ;;  %465 = vst [vmem:[#allocation15 + $0x10] sm:$0xff] (!%p2839_p7), %v3522_v0 }
  0x8e   : > { %466 = vst [vmem:[#allocation15 + $0x18] sm:$0xff] (!%p2839_p7), %v3522_v0  ;;  %467 = vst [vmem:[#allocation15 + $0x20] sm:$0xff] (!%p2839_p7), %v3522_v0 }
  0x8f   : > { %468 = vst [vmem:[#allocation15 + $0x28] sm:$0xff] (!%p2839_p7), %v3522_v0  ;;  %469 = vst [vmem:[#allocation15 + $0x30] sm:$0xff] (!%p2839_p7), %v3522_v0 }
  0x90   : > { %470 = vst [vmem:[#allocation15 + $0x38] sm:$0xff] (!%p2839_p7), %v3522_v0  ;;  %471 = vst [vmem:[#allocation15 + $0x40] sm:$0xff] (!%p2839_p7), %v3522_v0 }
  0x91   : > { %472 = vst [vmem:[#allocation15 + $0x48] sm:$0xff] (!%p2839_p7), %v3522_v0  ;;  %473 = vst [vmem:[#allocation15 + $0x50] sm:$0xff] (!%p2839_p7), %v3522_v0 }
  0x92   : > { %474 = vst [vmem:[#allocation15 + $0x58] sm:$0xff] (!%p2839_p7), %v3522_v0  ;;  %475 = vst [vmem:[#allocation15 + $0x60] sm:$0xff] (!%p2839_p7), %v3522_v0 }
  0x93   : > { %476 = vst [vmem:[#allocation15 + $0x68] sm:$0xff] %v3522_v0  ;;  %477 = vst [vmem:[#allocation15 + $0x70] sm:$0xff] %v3522_v0 }
  0x94   : > { %478 = vst [vmem:[#allocation15 + $0x78] sm:$0xff] %v3522_v0  ;;  %462 = vst.msk [vmem:[#allocation13] sm:$0x3] %vm461_vm0, %v3522_v0 }
  0x95 PF: > { %v3813_v3 = vld [vmem:[#allocation7 + $0x20] sm:$0xff]  ;;  %v3815_v4 = vld [vmem:[#allocation7 + $0x28] sm:$0xff]  ;;  %v534_v8 = vlaneseq  ;;  %v3847_v17 = vld [vmem:[#allocation7 + $0x30] sm:$0xff]  ;;  %vm482_vm1 = vcmask 254976   ;;  %vm846_vm2 = vcmask 130112   ;;  %vm853_vm3 = vcmask 195712  }
  0x96   : > { %v3821_v6 = vld [vmem:[#allocation15] sm:$0xff]  ;;  %v3823_v7 = vld [vmem:[#allocation15 + $0x8] sm:$0xff]  ;;  %v3849_v18 = vld [vmem:[#allocation7 + $0x38] sm:$0xff]  ;;  %vm860_vm4 = vcmask 261312   ;;  %vm881_vm5 = vcmask 1041409   ;;  %p2851_p4 = scmp.ne.s32.totalorder %s3504_s18, 1 }
  0x97   : > { %v3809_v1 = vld [vmem:[#allocation15 + $0x20] sm:$0xff]  ;;  %v3861_v22 = vld [vmem:[#allocation15 + $0x10] sm:$0xff]  ;;  %v3863_v23 = vld [vmem:[#allocation15 + $0x18] sm:$0xff]  ;;  %v3880_v31 = vshrl.u32 %v534_v8, 7  ;;  %vm3525_vm6 = vmmov (!%p2851_p4), 0   ;;  %vm2156_vm7 = vcmask (!%p2851_p4), 261120  }
  0x98   : > { %v3811_v2 = vld [vmem:[#allocation15 + $0x28] sm:$0xff]  ;;  %v3819_v5 = vadd.f32 %v3813_v3, %v3809_v1  ;;  %v3829_v10 = vld [vmem:[#allocation7] sm:$0xff]  ;;  %v3833_v12 = vld [vmem:[#allocation15 + $0x30] sm:$0xff]  ;;  %vm2645_vm8 = vcmask (!%p2851_p4), 58368  }
  0x99   : > { %v3827_v9 = vadd.f32 %v3815_v4, %v3811_v2  ;;  %v3831_v11 = vld [vmem:[#allocation7 + $0x8] sm:$0xff]  ;;  %v3839_v14 = vadd.f32 %v3829_v10, %v3821_v6  ;;  %v3845_v16 = vld [vmem:[#allocation15 + $0x38] sm:$0xff]  ;;  %v3855_v20 = vadd.f32 %v3847_v17, %v3833_v12  ;;  %v3865_v24 = vld [vmem:[#allocation7 + $0x10] sm:$0xff]  ;;  %v3919_v0 = vsub.s32 0, %v3880_v31 }
  0x9a   : > { %v598_v13 = vmul.f32 %v3819_v5, %v3819_v5  ;;  %v3843_v15 = vadd.f32 %v3831_v11, %v3823_v7  ;;  %v3859_v21 = vadd.f32 %v3849_v18, %v3845_v16  ;;  %v3871_v27 = vld [vmem:[#allocation7 + $0x18] sm:$0xff]  ;;  %v511_v28 = vadd.f32 %v3865_v24, %v3861_v22  ;;  %v3888_v36 = vld [vmem:[#allocation15 + $0x40] sm:$0xff]  ;;  %v3890_v37 = vld [vmem:[#allocation15 + $0x48] sm:$0xff] }
  0x9b   : > { %v599_v19 = vmul.f32 %v3827_v9, %v3827_v9  ;;  %v594_v25 = vmul.f32 %v3839_v14, %v3839_v14  ;;  %v3875_v29 = vld [vmem:[#allocation15 + $0x50] sm:$0xff]  ;;  %v3877_v30 = vld [vmem:[#allocation15 + $0x58] sm:$0xff]  ;;  %v600_v33 = vmul.f32 %v3855_v20, %v3855_v20  ;;  %v512_v35 = vadd.f32 %v3871_v27, %v3863_v23  ;;  %v3900_v44 = vld [vmem:[#allocation15 + $0x60] sm:$0xff] }
  0x9c   : > { %v595_v26 = vmul.f32 %v3843_v15, %v3843_v15  ;;  %v601_v34 = vmul.f32 %v3859_v21, %v3859_v21  ;;  %v3892_v38 = vld [vmem:[#allocation15 + $0x70] sm:$0xff]  ;;  %v596_v40 = vmul.f32 %v511_v28, %v511_v28  ;;  %v519_v41 = vadd.f32 %v3865_v24, %v3875_v29  ;;  %v3898_v43 = vld [vmem:[#allocation15 + $0x78] sm:$0xff]  ;;  %v3906_v49 = vld [vmem:[#allocation15 + $0x68] sm:$0xff] }
  0x9d   : > { %v616_v32 = vadd.f32 %v599_v19, %v598_v13  ;;  %v520_v42 = vadd.f32 %v3871_v27, %v3877_v30  ;;  %v597_v46 = vmul.f32 %v512_v35, %v512_v35  ;;  %v517_v47 = vadd.f32 %v3829_v10, %v3888_v36  ;;  %v479_v50 = vld [vmem:[%s3793_s16] sm:$0x3]  ;;  %v481_v51 = vld [vmem:[#allocation13] sm:$0x3] }
  0x9e   : > { %v610_v39 = vadd.f32 %v595_v26, %v594_v25  ;;  %v619_v45 = vadd.f32 %v601_v34, %v600_v33  ;;  %v518_v48 = vadd.f32 %v3831_v11, %v3890_v37  ;;  %v604_v52 = vmul.f32 %v519_v41, %v519_v41  ;;  %480 = vst [vmem:[#allocation2] sm:$0x3] %v479_v50 }
  0x9f   : > { %617 = vadd.xlane.f32.xlu1 %v616_v32  ;;  %v605_v53 = vmul.f32 %v520_v42, %v520_v42  ;;  %v523_v54 = vadd.f32 %v3847_v17, %v3892_v38  ;;  %v524_v55 = vadd.f32 %v3849_v18, %v3898_v43  ;;  %483 = vst.msk [vmem:[#allocation2 + $0x2] sm:$0x3] %vm482_vm1, %v481_v51  ;;  %v3922_v26 = vsub.s32 1, %v3880_v31  ;;  %v2842_v32 = vld [vmem:[%s3793_s16 + $0x2] sm:$0x3] }
  0xa0   : > { %611 = vadd.xlane.f32.xlu0 %v610_v39  ;;  %v613_v56 = vadd.f32 %v597_v46, %v596_v40  ;;  %v602_v57 = vmul.f32 %v517_v47, %v517_v47  ;;  %v603_v58 = vmul.f32 %v518_v48, %v518_v48  ;;  %v521_v59 = vadd.f32 %v3813_v3, %v3900_v44 }
  0xa1   : > { %v522_v60 = vadd.f32 %v3815_v4, %v3906_v49  ;;  %v625_v61 = vadd.f32 %v605_v53, %v604_v52  ;;  %v608_v62 = vmul.f32 %v523_v54, %v523_v54  ;;  %v609_v63 = vmul.f32 %v524_v55, %v524_v55 }
  0xa2   : > { %v622_v13 = vadd.f32 %v603_v58, %v602_v57  ;;  %v606_v19 = vmul.f32 %v521_v59, %v521_v59 }
  0xa3   : > { %620 = vadd.xlane.f32.xlu1 %v619_v45  ;;  %v607_v25 = vmul.f32 %v522_v60, %v522_v60  ;;  %v631_v33 = vadd.f32 %v609_v63, %v608_v62 }
  0xa4   : > { %614 = vadd.xlane.f32.xlu0 %v613_v56 }
  0xa5   : > { %v628_v39 = vadd.f32 %v607_v25, %v606_v19 }
  0xa6   : > { %v2840_v34 = vld.sshfl [vmem:[#allocation2] sm:$0x33 pattern:$0x75316420] }
  0xa7   : > { %626 = vadd.xlane.f32.xlu1 %v625_v61  ;;  %v3926_v40 = vrot.slane %v2840_v34, %v3919_v0  ;;  %v3929_v45 = vrot.slane %v2840_v34, %v3922_v26  ;;  %903 = vst [vmem:[#allocation2] sm:$0x3] %v2842_v32  ;;  %v533_v46 = vcombine.high %v2840_v34, %v2840_v34 }
  0xa8   : > { %623 = vadd.xlane.f32.xlu0 %v622_v13 }
  0xa9   : > { %v556_v50 = vmul.f32 %v3926_v40, %v511_v28  ;;  %v557_v51 = vmul.f32 %v3929_v45, %v512_v35  ;;  %v554_v52 = vmul.f32 %v3926_v40, %v3839_v14  ;;  %v555_v53 = vmul.f32 %v3929_v45, %v3843_v15 }
  0xaa   : > { %v560_v56 = vmul.f32 %v3926_v40, %v3855_v20  ;;  %v561_v57 = vmul.f32 %v3929_v45, %v3859_v21  ;;  %v558_v58 = vmul.f32 %v3926_v40, %v3819_v5  ;;  %v559_v28 = vmul.f32 %v3929_v45, %v3827_v9 }
  0xab   : > { %632 = vadd.xlane.f32.xlu1 %v631_v33  ;;  %v573_v35 = vadd.f32 %v557_v51, %v556_v50  ;;  %v570_v61 = vadd.f32 %v555_v53, %v554_v52  ;;  %v3946_v14 = vrot.slane %v533_v46, %v3919_v0  ;;  %v3949_v15 = vrot.slane %v533_v46, %v3922_v26 }
  0xac   : > { %629 = vadd.xlane.f32.xlu0 %v628_v39  ;;  %v579_v20 = vadd.f32 %v561_v57, %v560_v56  ;;  %v576_v5 = vadd.f32 %v559_v28, %v558_v58 }
  0xad   : > { %v564_v62 = vmul.f32 %v3946_v14, %v519_v41  ;;  %v565_v21 = vmul.f32 %v3949_v15, %v520_v42  ;;  %v562_v63 = vmul.f32 %v3946_v14, %v517_v47  ;;  %v563_v9 = vmul.f32 %v3949_v15, %v518_v48  ;;  %v3962_v47 = vld [vmem:[%s5061_s4] ss:$0 sm:$0xff] }
  0xae   : > { %v568_v19 = vmul.f32 %v3946_v14, %v523_v54  ;;  %v569_v25 = vmul.f32 %v3949_v15, %v524_v55  ;;  %v566_v33 = vmul.f32 %v3946_v14, %v521_v59  ;;  %v567_v41 = vmul.f32 %v3949_v15, %v522_v60 }
  0xaf   : > { %574 = vadd.xlane.f32.xlu1 %v573_v35  ;;  %v585_v13 = vadd.f32 %v565_v21, %v564_v62  ;;  %v582_v32 = vadd.f32 %v563_v9, %v562_v63  ;;  %v3523_v48 = vmov 0  }
  0xb0   : > { %571 = vadd.xlane.f32.xlu0 %v570_v61  ;;  %v591_v42 = vadd.f32 %v569_v25, %v568_v19  ;;  %v588_v34 = vadd.f32 %v567_v41, %v566_v33  ;;  %3124 = vset.pattern.permute.xlu1 %v3523_v48 }
  0xb1   : > { %3123 = vset.pattern.permute.xlu0 %v3523_v48 }
  0xb3   : > { %580 = vadd.xlane.f32.xlu1 %v579_v20 }
  0xb4   : > { %577 = vadd.xlane.f32.xlu0 %v576_v5 }
  0xb7   : > { %586 = vadd.xlane.f32.xlu1 %v585_v13 }
  0xb8   : > { %583 = vadd.xlane.f32.xlu0 %v582_v32 }
  0xbb   : > { %592 = vadd.xlane.f32.xlu1 %v591_v42 }
  0xbc   : > { %589 = vadd.xlane.f32.xlu0 %v588_v34 }
  0xcc   : > { %669 = vbcast.lane.b32.xlu1 %v3962_v47, 264 }
  0xd0   : > { %673 = vbcast.lane.b32.xlu1 %v3962_v47, 272 }
  0xd2   : > { %665 = vbcast.lane.b32.xlu0 %v3962_v47, 256 }
  0xd4   : > { %677 = vbcast.lane.b32.xlu1 %v3962_v47, 280 }
 0x12c   : > { %v618_v54 = vpop.xlane.xlu1 %617 }
 0x12d   : > { %v612_v55 = vpop.xlane.xlu0 %611  ;;  %v636_v28 = vadd.f32 1e-16, %v618_v54 }
 0x12e   : > { %v634_v53 = vadd.f32 1e-16, %v612_v55 }
 0x130   : > { %v621_v59 = vpop.xlane.xlu1 %620 }
 0x131   : > { %v615_v60 = vpop.xlane.xlu0 %614  ;;  %v637_v20 = vadd.f32 1e-16, %v621_v59 }
 0x132   : > { %v635_v52 = vadd.f32 1e-16, %v615_v60 }
 0x134   : > { %v627_v39 = vpop.xlane.xlu1 %626  ;;  %3125 = vrsqrt.f32 %v635_v52 }
 0x135   : > { %v624_v46 = vpop.xlane.xlu0 %623  ;;  %3127 = vrsqrt.f32 %v634_v53  ;;  %v639_v5 = vadd.f32 1e-16, %v627_v39 }
 0x136   : > { %v638_v58 = vadd.f32 1e-16, %v624_v46 }
 0x138   : > { %v633_v50 = vpop.xlane.xlu1 %632  ;;  %3129 = vrsqrt.f32 %v638_v58 }
 0x139   : > { %v630_v51 = vpop.xlane.xlu0 %629  ;;  %3131 = vrsqrt.f32 %v636_v28  ;;  %v641_v32 = vadd.f32 1e-16, %v633_v50 }
 0x13a   : > { %v640_v62 = vadd.f32 1e-16, %v630_v51  ;;  %3133 = vrsqrt.f32 %v637_v20 }
 0x13c   : > { %v575_v56 = vpop.xlane.xlu1 %574  ;;  %3135 = vrsqrt.f32 %v640_v62 }
 0x13d   : > { %v572_v57 = vpop.xlane.xlu0 %571  ;;  %3137 = vrsqrt.f32 %v639_v5 }
 0x13e   : > { %v3968_v9 = vpop.eup %3125  ;;  %3139 = vrsqrt.f32 %v641_v32 }
 0x13f   : > { %v3970_v19 = vpop.eup %3127  ;;  %v651_v33 = vmul.f32 %v3968_v9, %v575_v56 }
 0x140   : > { %v581_v35 = vpop.xlane.xlu1 %580  ;;  %v650_v41 = vmul.f32 %v3970_v19, %v572_v57 }
 0x141   : > { %v578_v61 = vpop.xlane.xlu0 %577 }
 0x142   : > { %v3974_v34 = vpop.eup %3129 }
 0x143   : > { %v3132_v55 = vpop.eup %3131 }
 0x144   : > { %v587_v21 = vpop.xlane.xlu1 %586  ;;  %v652_v60 = vmul.f32 %v3132_v55, %v578_v61  ;;  %v3134_v51 = vpop.eup %3133 }
 0x145   : > { %v584_v63 = vpop.xlane.xlu0 %583  ;;  %v653_v57 = vmul.f32 %v3134_v51, %v581_v35 }
 0x146   : > { %v654_v39 = vmul.f32 %v3974_v34, %v584_v63  ;;  %v3977_v52 = vpop.eup %3135 }
 0x147   : > { %v3138_v56 = vpop.eup %3137 }
 0x148   : > { %v593_v13 = vpop.xlane.xlu1 %592  ;;  %v655_v58 = vmul.f32 %v3138_v56, %v587_v21  ;;  %v3140_v63 = vpop.eup %3139 }
 0x149   : > { %v590_v25 = vpop.xlane.xlu0 %589 }
 0x14a   : > { %v656_v20 = vmul.f32 %v3977_v52, %v590_v25 }
 0x14c   : > { %v670_v42 = vpop.permute.xlu1 %669 }
 0x14d   : > { %v684_v48 = vadd.f32 %v670_v42, %v651_v33  ;;  %v666_v54 = vpop.permute.xlu0 %665  ;;  %v688_v5 = vadd.f32 %v670_v42, %v655_v58  ;;  %v657_v33 = vmul.f32 %v3140_v63, %v593_v13  ;;  %v836_v13 = vand.u32 127, %v534_v8 }
 0x14e   : > { %v683_v59 = vadd.f32 %v666_v54, %v650_v41  ;;  %v687_v53 = vadd.f32 %v666_v54, %v654_v39  ;;  %v711_v39 = vmul.f32 %v3132_v55, %v3809_v1  ;;  %v708_v58 = vmul.f32 %v3970_v19, %v3823_v7  ;;  %v3998_v1 = vld [vmem:[#allocation9 + $0x8] sm:$0xff] }
 0x14f   : > { %3141 = vtanh.f32 %v684_v48  ;;  %v710_v7 = vmul.f32 %v3968_v9, %v3863_v23  ;;  %v716_v23 = vmul.f32 %v3974_v34, %v3890_v37 }
 0x150   : > { %v674_v46 = vpop.permute.xlu1 %673  ;;  %3143 = vtanh.f32 %v683_v59 }
 0x151   : > { %v685_v50 = vadd.f32 %v674_v46, %v652_v60  ;;  %v689_v61 = vadd.f32 %v674_v46, %v656_v20  ;;  %v841_v60 = vadd.s32 4294967288, %v836_v13  ;;  %v3983_v46 = vld [vmem:[#allocation9 + $0x20] sm:$0xff]  ;;  %v713_v20 = vmul.f32 %v3134_v51, %v3833_v12 }
 0x152   : > { %5120 = vst [vmem:[#allocation21_spill] sm:$0xff] %v3983_v46  ;;  %v717_v12 = vmul.f32 %v3138_v56, %v3875_v29 }
 0x153   : > { %3145 = vtanh.f32 %v685_v50  ;;  %v707_v50 = vmul.f32 %v3970_v19, %v3821_v6  ;;  %v3996_v8 = vsub.s32 %v841_v60, %v3880_v31  ;;  %v4003_v6 = vld [vmem:[#allocation9 + $0x30] sm:$0xff]  ;;  %v4010_v19 = vld [vmem:[#allocation9 + $0x38] sm:$0xff] }
 0x154   : > { %v678_v28 = vpop.permute.xlu1 %677  ;;  %3147 = vtanh.f32 %v687_v53  ;;  %v712_v53 = vmul.f32 %v3132_v55, %v3811_v2  ;;  %5122 = vst [vmem:[#allocation23_spill] sm:$0xff] %v4003_v6  ;;  %v714_v2 = vmul.f32 %v3134_v51, %v3845_v16  ;;  %v709_v55 = vmul.f32 %v3968_v9, %v3861_v22  ;;  %5123 = vst [vmem:[#allocation24_spill] sm:$0xff] %v4010_v19 }
 0x155   : > { %v686_v62 = vadd.f32 %v678_v28, %v653_v57  ;;  %v690_v48 = vadd.f32 %v678_v28, %v657_v33  ;;  %v3988_v57 = vld [vmem:[#allocation9] sm:$0xff]  ;;  %v3992_v28 = vld [vmem:[#allocation9 + $0x28] sm:$0xff]  ;;  %v715_v22 = vmul.f32 %v3974_v34, %v3888_v36  ;;  %v724_v9 = vmul.f32 %v708_v58, %v3998_v1 }
 0x156   : > { %5121 = vst [vmem:[#allocation22_spill] sm:$0xff] %v3992_v28  ;;  %v723_v33 = vmul.f32 %v707_v50, %v3988_v57  ;;  %v4020_v16 = vmul.f32 %v712_v53, %v3992_v28  ;;  %v4028_v29 = vmul.f32 %v713_v20, %v4003_v6  ;;  %v722_v51 = vmul.f32 %v3140_v63, %v3898_v43  ;;  %v4047_v43 = vld [vmem:[#allocation10 + $0x10] sm:$0xff]  ;;  %v4069_v50 = vld [vmem:[#allocation10] sm:$0xff]  ;;  %v4071_v53 = vld [vmem:[#allocation10 + $0x8] sm:$0xff] }
 0x157   : > { %3149 = vtanh.f32 %v686_v62  ;;  %v4001_v62 = vmul.f32 %v711_v39, %v3983_v46  ;;  %v720_v36 = vmul.f32 %v3977_v52, %v3906_v49  ;;  %5126 = vst [vmem:[#allocation27_spill] sm:$0xff] %v4047_v43  ;;  %v4055_v49 = vmul.f32 %v715_v22, %v3988_v57 }
 0x158   : > { %3151 = vtanh.f32 %v688_v5  ;;  %v718_v5 = vmul.f32 %v3138_v56, %v3877_v30  ;;  %v721_v30 = vmul.f32 %v3140_v63, %v3892_v38  ;;  %v848_v56 = vadd.s32 4294967280, %v836_v13  ;;  %v4049_v63 = vld [vmem:[#allocation10 + $0x18] sm:$0xff] }
 0x159   : > { %v3142_v32 = vpop.eup %3141  ;;  %3153 = vtanh.f32 %v689_v61  ;;  %v4014_v61 = vld [vmem:[#allocation9 + $0x10] sm:$0xff]  ;;  %v4066_v60 = vmul.f32 %v722_v51, %v4010_v19 }
 0x15a   : > { %754 = vperm.xlu1 %3124, %v3142_v32   ;;  %v3144_v41 = vpop.eup %3143  ;;  %3155 = vtanh.f32 %v690_v48  ;;  %5124 = vst [vmem:[#allocation25_spill] sm:$0xff] %v4014_v61  ;;  %v4016_v32 = vld [vmem:[#allocation9 + $0x18] sm:$0xff]  ;;  %v719_v48 = vmul.f32 %v3977_v52, %v3900_v44  ;;  %v725_v37 = vmul.f32 %v709_v55, %v4014_v61  ;;  %v4052_v44 = vsub.s32 %v836_v13, %v3880_v31 }
 0x15b   : > { %749 = vperm.xlu0 %3123, %v3144_v41   ;;  %5125 = vst [vmem:[#allocation26_spill] sm:$0xff] %v4016_v32  ;;  %v4033_v41 = vmul.f32 %v714_v2, %v4010_v19  ;;  %v726_v34 = vmul.f32 %v710_v7, %v4016_v32  ;;  %v4045_v38 = vmul.f32 %v718_v5, %v4016_v32 }
 0x15c   : > { %5127 = vst [vmem:[#allocation28_spill] sm:$0xff] %v4052_v44  ;;  %v4058_v52 = vmul.f32 %v716_v23, %v3998_v1  ;;  %v4074_v20 = vsub.s32 %v848_v56, %v3880_v31  ;;  %v4080_v2 = vmul.f32 %v720_v36, %v3992_v28 }
 0x15d   : > { %v3146_v35 = vpop.eup %3145 }
 0x15e   : > { %759 = vperm.xlu1 %3124, %v3146_v35   ;;  %v3148_v21 = vpop.eup %3147  ;;  %v4042_v35 = vmul.f32 %v717_v12, %v4014_v61 }
 0x161   : > { %v3150_v54 = vpop.eup %3149 }
 0x162   : > { %769 = vperm.xlu1 %3124, %v3148_v21   ;;  %764 = vperm.xlu0 %3123, %v3150_v54   ;;  %v3152_v25 = vpop.eup %3151  ;;  %v855_v54 = vadd.s32 4294967272, %v836_v13  ;;  %v4077_v13 = vmul.f32 %v719_v48, %v3983_v46 }
 0x163   : > { %v3154_v42 = vpop.eup %3153 }
 0x164   : > { %v3156_v59 = vpop.eup %3155 }
 0x166   : > { %779 = vperm.xlu1 %3124, %v3154_v42   ;;  %774 = vperm.xlu0 %3123, %v3152_v25  }
 0x16a   : > { %784 = vperm.xlu0 %3123, %v3156_v59   ;;  %1087 = vbcast.lane.b32.xlu1 %v3962_v47, 256  ;;  %v4063_v59 = vmul.f32 %v721_v30, %v4003_v6  ;;  %v4088_v30 = vsub.s32 %v855_v54, %v3880_v31  ;;  %v4115_v6 = vld [vmem:[#allocation10 + $0x30] sm:$0xff] }
 0x1d9   : > { %v755_v21 = vpop.permute.xlu1 %754 }
 0x1da   : > { %v789_v25 = vmul.f32 %v755_v21, %v3926_v40  ;;  %v790_v42 = vmul.f32 %v755_v21, %v3929_v45  ;;  %v845_v39 = vrot.slane %v755_v21, %v3996_v8  ;;  %v750_v58 = vpop.permute.xlu0 %749  ;;  %v4096_v21 = vld [vmem:[#allocation10 + $0x20] sm:$0xff] }
 0x1db   : > { %v787_v12 = vmul.f32 %v750_v58, %v3926_v40  ;;  %v788_v5 = vmul.f32 %v750_v58, %v3929_v45  ;;  %v840_v22 = vrot.slane %v750_v58, %v4052_v44 }
 0x1dc   : > { %v805_v55 = vmul.f32 %v789_v25, %v4047_v43  ;;  %v806_v7 = vmul.f32 %v790_v42, %v4049_v63  ;;  %v4098_v25 = vld [vmem:[#allocation10 + $0x28] sm:$0xff] }
 0x1dd   : > { %v760_v23 = vpop.permute.xlu1 %759  ;;  %v803_v48 = vmul.f32 %v787_v12, %v4069_v50  ;;  %v804_v36 = vmul.f32 %v788_v5, %v4071_v53 }
 0x1de   : > { %v4090_v51 = vadd.f32 %v805_v55, %v725_v37  ;;  %v4092_v56 = vadd.f32 %v806_v7, %v726_v34  ;;  %v791_v42 = vmul.f32 %v760_v23, %v3926_v40  ;;  %v792_v58 = vmul.f32 %v760_v23, %v3929_v45 }
 0x1df   : > { %v852_v19 = vrot.slane %v760_v23, %v4074_v20  ;;  %v4103_v31 = vadd.f32 %v803_v48, %v723_v33  ;;  %v4105_v37 = vadd.f32 %v804_v36, %v724_v9  ;;  %v847_v34 = vsel %vm846_vm2, %v845_v39, %v840_v22  ;;  %v4124_v48 = vld [vmem:[#allocation10 + $0x38] sm:$0xff] }
 0x1e0   : > { %v4110_v54 = vadd.f32 %v4090_v51, %v3865_v24  ;;  %v807_v55 = vmul.f32 %v791_v42, %v4096_v21  ;;  %v808_v7 = vmul.f32 %v792_v58, %v4098_v25  ;;  %v4119_v33 = vadd.f32 %v4092_v56, %v3871_v27 }
 0x1e1   : > { %v854_v12 = vsel %vm853_vm3, %v852_v19, %v847_v34  ;;  %v770_v5 = vpop.permute.xlu1 %769  ;;  %v765_v23 = vpop.permute.xlu0 %764 }
 0x1e2   : > { %v795_v9 = vmul.f32 %v770_v5, %v3946_v14  ;;  %v796_v39 = vmul.f32 %v770_v5, %v3949_v15  ;;  %v865_v22 = vrot.slane %v770_v5, %v4052_v44  ;;  %v793_v36 = vmul.f32 %v765_v23, %v3926_v40 }
 0x1e3   : > { %v4128_v19 = vadd.f32 %v807_v55, %v4001_v62  ;;  %v4131_v42 = vadd.f32 %v808_v7, %v4020_v16  ;;  %v794_v58 = vmul.f32 %v765_v23, %v3929_v45  ;;  %v859_v34 = vrot.slane %v765_v23, %v4088_v30 }
 0x1e4   : > { %v811_v32 = vmul.f32 %v795_v9, %v4069_v50  ;;  %v812_v61 = vmul.f32 %v796_v39, %v4071_v53  ;;  %v809_v5 = vmul.f32 %v793_v36, %v4115_v6  ;;  %v1018_v40 = vmul.f32 %v4110_v54, %v4110_v54 }
 0x1e5   : > { %v810_v62 = vmul.f32 %v794_v58, %v4124_v48  ;;  %v861_v55 = vsel %vm860_vm4, %v859_v34, %v854_v12  ;;  %v780_v16 = vpop.permute.xlu1 %779  ;;  %v775_v7 = vpop.permute.xlu0 %774  ;;  %v1019_v45 = vmul.f32 %v4119_v33, %v4119_v33  ;;  %v4146_v23 = vadd.f32 %v4103_v31, %v3829_v10 }
 0x1e6   : > { %v4149_v9 = vadd.f32 %v811_v32, %v4055_v49  ;;  %v4152_v39 = vadd.f32 %v812_v61, %v4058_v52  ;;  %v4155_v36 = vadd.f32 %v809_v5, %v4028_v29  ;;  %v799_v12 = vmul.f32 %v780_v16, %v3946_v14 }
 0x1e7   : > { %v4159_v58 = vadd.f32 %v810_v62, %v4033_v41  ;;  %v800_v34 = vmul.f32 %v780_v16, %v3949_v15  ;;  %v874_v44 = vrot.slane %v780_v16, %v4074_v20  ;;  %v797_v28 = vmul.f32 %v775_v7, %v3946_v14 }
 0x1e8   : > { %v815_v32 = vmul.f32 %v799_v12, %v4096_v21  ;;  %v798_v49 = vmul.f32 %v775_v7, %v3949_v15  ;;  %v869_v61 = vrot.slane %v775_v7, %v3996_v8  ;;  %v1035_v52 = vadd.f32 %v1019_v45, %v1018_v40 }
 0x1e9   : > { %v816_v29 = vmul.f32 %v800_v34, %v4098_v25  ;;  %v813_v5 = vmul.f32 %v797_v28, %v4047_v43  ;;  %v785_v46 = vpop.permute.xlu0 %784  ;;  %v4171_v41 = vadd.f32 %v4105_v37, %v3831_v11  ;;  %v1016_v62 = vmul.f32 %v4146_v23, %v4146_v23 }
 0x1ea   : > { %v4176_v16 = vadd.f32 %v815_v32, %v4077_v13  ;;  %v814_v12 = vmul.f32 %v798_v49, %v4049_v63  ;;  %v870_v7 = vsel %vm846_vm2, %v869_v61, %v865_v22  ;;  %v801_v40 = vmul.f32 %v785_v46, %v3946_v14  ;;  %1036 = vadd.xlane.f32.xlu0 %v1035_v52 }
 0x1eb   : > { %v4182_v28 = vadd.f32 %v816_v29, %v4080_v2  ;;  %v4185_v45 = vadd.f32 %v813_v5, %v4042_v35  ;;  %v875_v34 = vsel %vm853_vm3, %v874_v44, %v870_v7  ;;  %v802_v43 = vmul.f32 %v785_v46, %v3949_v15 }
 0x1ec   : > { %v4190_v13 = vadd.f32 %v814_v12, %v4045_v38  ;;  %v817_v32 = vmul.f32 %v801_v40, %v4115_v6  ;;  %v879_v22 = vrot.slane %v785_v46, %v4088_v30  ;;  %v1017_v14 = vmul.f32 %v4171_v41, %v4171_v41 }
 0x1ed   : > { %v818_v2 = vmul.f32 %v802_v43, %v4124_v48  ;;  %v935_v35 = vadd.f32 %v4128_v19, %v3813_v3  ;;  %v936_v44 = vadd.f32 %v4131_v42, %v3815_v4  ;;  %v4203_v15 = vadd.f32 %v4149_v9, %v3829_v10 }
 0x1ee   : > { %v4206_v38 = vadd.f32 %v817_v32, %v4063_v59  ;;  %v880_v46 = vsel %vm860_vm4, %v879_v22, %v875_v34  ;;  %v1032_v49 = vadd.f32 %v1017_v14, %v1016_v62  ;;  %v940_v61 = vadd.f32 %v4152_v39, %v3831_v11 }
 0x1ef   : > { %v4212_v43 = vadd.f32 %v818_v2, %v4066_v60  ;;  %v882_v52 = vsel %vm881_vm5, %v880_v46, %v861_v55  ;;  %v1020_v29 = vmul.f32 %v935_v35, %v935_v35  ;;  %v1021_v5 = vmul.f32 %v936_v44, %v936_v44 }
 0x1f0   : > { %884 = vst.msk [vmem:[#allocation13] sm:$0x3] %vm482_vm1, %v882_v52  ;;  %1033 = vadd.xlane.f32.xlu1 %v1032_v49  ;;  %v1024_v10 = vmul.f32 %v4203_v15, %v4203_v15  ;;  %v1025_v59 = vmul.f32 %v940_v61, %v940_v61  ;;  %v937_v62 = vadd.f32 %v4155_v36, %v3847_v17 }
 0x1f1   : > { %v938_v11 = vadd.f32 %v4159_v58, %v3849_v18  ;;  %v1038_v12 = vadd.f32 %v1021_v5, %v1020_v29  ;;  %v943_v60 = vadd.f32 %v4176_v16, %v3813_v3  ;;  %v944_v55 = vadd.f32 %v4182_v28, %v3815_v4 }
 0x1f2   : > { %v941_v7 = vadd.f32 %v4185_v45, %v3865_v24  ;;  %v1044_v40 = vadd.f32 %v1025_v59, %v1024_v10  ;;  %v1022_v34 = vmul.f32 %v937_v62, %v937_v62  ;;  %v942_v22 = vadd.f32 %v4190_v13, %v3871_v27 }
 0x1f3   : > { %v1023_v32 = vmul.f32 %v938_v11, %v938_v11  ;;  %1039 = vadd.xlane.f32.xlu0 %v1038_v12  ;;  %v1028_v14 = vmul.f32 %v943_v60, %v943_v60  ;;  %v1029_v2 = vmul.f32 %v944_v55, %v944_v55  ;;  %v945_v49 = vadd.f32 %v4206_v38, %v3847_v17 }
 0x1f4   : > { %v1026_v46 = vmul.f32 %v941_v7, %v941_v7  ;;  %1045 = vadd.xlane.f32.xlu1 %v1044_v40  ;;  %v1027_v52 = vmul.f32 %v942_v22, %v942_v22  ;;  %v946_v4 = vadd.f32 %v4212_v43, %v3849_v18 }
 0x1f5   : > { %v1041_v3 = vadd.f32 %v1023_v32, %v1022_v34  ;;  %v1050_v24 = vadd.f32 %v1029_v2, %v1028_v14  ;;  %v1030_v10 = vmul.f32 %v945_v49, %v945_v49 }
 0x1f6   : > { %v1047_v5 = vadd.f32 %v1027_v52, %v1026_v46  ;;  %v1031_v59 = vmul.f32 %v946_v4, %v946_v4 }
 0x1f7   : > { %v904_v29 = vld [vmem:[#allocation13] sm:$0x3]  ;;  %1042 = vadd.xlane.f32.xlu0 %v1041_v3 }
 0x1f8   : > { %905 = vst.msk [vmem:[#allocation2 + $0x2] sm:$0x3] %vm482_vm1, %v904_v29  ;;  %1051 = vadd.xlane.f32.xlu1 %v1050_v24  ;;  %v1053_v27 = vadd.f32 %v1031_v59, %v1030_v10 }
 0x1fb   : > { %1048 = vadd.xlane.f32.xlu0 %v1047_v5 }
 0x1ff   : > { %1054 = vadd.xlane.f32.xlu0 %v1053_v27  ;;  %v2843_v12 = vld.sshfl [vmem:[#allocation2] sm:$0x33 pattern:$0x75316420] }
 0x200   : > { %v4236_v17 = vrot.slane %v2843_v12, %v3919_v0  ;;  %v4239_v40 = vrot.slane %v2843_v12, %v3922_v26  ;;  %v955_v18 = vcombine.high %v2843_v12, %v2843_v12 }
 0x202   : > { %v978_v34 = vmul.f32 %v4236_v17, %v4110_v54  ;;  %v979_v32 = vmul.f32 %v4239_v40, %v4119_v33  ;;  %v976_v14 = vmul.f32 %v4236_v17, %v4146_v23  ;;  %v977_v2 = vmul.f32 %v4239_v40, %v4171_v41 }
 0x203   : > { %v982_v46 = vmul.f32 %v4236_v17, %v937_v62  ;;  %v983_v3 = vmul.f32 %v4239_v40, %v938_v11  ;;  %v980_v52 = vmul.f32 %v4236_v17, %v935_v35  ;;  %v981_v24 = vmul.f32 %v4239_v40, %v936_v44 }
 0x204   : > { %v995_v29 = vadd.f32 %v979_v32, %v978_v34  ;;  %v992_v5 = vadd.f32 %v977_v2, %v976_v14  ;;  %v4254_v54 = vrot.slane %v955_v18, %v3919_v0  ;;  %v4257_v33 = vrot.slane %v955_v18, %v3922_v26 }
 0x205   : > { %v1001_v23 = vadd.f32 %v983_v3, %v982_v46  ;;  %v998_v41 = vadd.f32 %v981_v24, %v980_v52 }
 0x206   : > { %996 = vadd.xlane.f32.xlu0 %v995_v29  ;;  %993 = vadd.xlane.f32.xlu1 %v992_v5  ;;  %v986_v62 = vmul.f32 %v4254_v54, %v941_v7  ;;  %v987_v11 = vmul.f32 %v4257_v33, %v942_v22  ;;  %v984_v35 = vmul.f32 %v4254_v54, %v4203_v15 }
 0x207   : > { %v985_v44 = vmul.f32 %v4257_v33, %v940_v61  ;;  %v990_v10 = vmul.f32 %v4254_v54, %v945_v49  ;;  %v991_v59 = vmul.f32 %v4257_v33, %v946_v4  ;;  %v988_v18 = vmul.f32 %v4254_v54, %v943_v60  ;;  %v1088_v61 = vpop.permute.xlu1 %1087 }
 0x208   : > { %v1007_v27 = vadd.f32 %v987_v11, %v986_v62  ;;  %v989_v34 = vmul.f32 %v4257_v33, %v944_v55 }
 0x209   : > { %v1004_v12 = vadd.f32 %v985_v44, %v984_v35  ;;  %v1013_v7 = vadd.f32 %v991_v59, %v990_v10 }
 0x20a   : > { %1002 = vadd.xlane.f32.xlu0 %v1001_v23  ;;  %999 = vadd.xlane.f32.xlu1 %v998_v41  ;;  %v1010_v22 = vadd.f32 %v989_v34, %v988_v18 }
 0x20e   : > { %1008 = vadd.xlane.f32.xlu0 %v1007_v27  ;;  %1005 = vadd.xlane.f32.xlu1 %v1004_v12 }
 0x212   : > { %1014 = vadd.xlane.f32.xlu0 %v1013_v7  ;;  %1011 = vadd.xlane.f32.xlu1 %v1010_v22 }
 0x223   : > { %1095 = vbcast.lane.b32.xlu1 %v3962_v47, 272 }
 0x227   : > { %1099 = vbcast.lane.b32.xlu1 %v3962_v47, 280 }
 0x228   : > { %1091 = vbcast.lane.b32.xlu0 %v3962_v47, 264 }
 0x277   : > { %v1037_v15 = vpop.xlane.xlu0 %1036 }
 0x278   : > { %v1057_v3 = vadd.f32 1e-16, %v1037_v15 }
 0x27d   : > { %v1034_v4 = vpop.xlane.xlu1 %1033 }
 0x27e   : > { %v1056_v60 = vadd.f32 1e-16, %v1034_v4 }
 0x280   : > { %v1040_v49 = vpop.xlane.xlu0 %1039  ;;  %3157 = vrsqrt.f32 %v1056_v60 }
 0x281   : > { %v1046_v55 = vpop.xlane.xlu1 %1045  ;;  %v1058_v29 = vadd.f32 1e-16, %v1040_v49  ;;  %3159 = vrsqrt.f32 %v1057_v3 }
 0x282   : > { %v1060_v52 = vadd.f32 1e-16, %v1046_v55 }
 0x284   : > { %v1043_v32 = vpop.xlane.xlu0 %1042  ;;  %3161 = vrsqrt.f32 %v1060_v52 }
 0x285   : > { %v1052_v2 = vpop.xlane.xlu1 %1051  ;;  %3163 = vrsqrt.f32 %v1058_v29  ;;  %v1059_v11 = vadd.f32 1e-16, %v1043_v32 }
 0x286   : > { %v1062_v10 = vadd.f32 1e-16, %v1052_v2 }
 0x288   : > { %v1049_v14 = vpop.xlane.xlu0 %1048 }
 0x289   : > { %v1061_v59 = vadd.f32 1e-16, %v1049_v14 }
 0x28a   : > { %v4271_v24 = vpop.eup %3157 }
 0x28b   : > { %v4274_v18 = vpop.eup %3159 }
 0x28c   : > { %v1055_v46 = vpop.xlane.xlu0 %1054 }
 0x28d   : > { %v1063_v34 = vadd.f32 1e-16, %v1055_v46 }
 0x28e   : > { %v4276_v15 = vpop.eup %3161 }
 0x28f   : > { %v4278_v49 = vpop.eup %3163 }
 0x293   : > { %v994_v5 = vpop.xlane.xlu1 %993  ;;  %v997_v23 = vpop.xlane.xlu0 %996 }
 0x294   : > { %v1072_v41 = vmul.f32 %v4271_v24, %v994_v5  ;;  %v1073_v60 = vmul.f32 %v4274_v18, %v997_v23 }
 0x296   : > { %v1105_v62 = vadd.f32 %v1088_v61, %v1072_v41 }
 0x297   : > { %v1000_v35 = vpop.xlane.xlu1 %999  ;;  %v1003_v44 = vpop.xlane.xlu0 %1002 }
 0x298   : > { %3165 = vtanh.f32 %v1105_v62  ;;  %v1074_v55 = vmul.f32 %v4278_v49, %v1000_v35 }
 0x299   : > { %3167 = vrsqrt.f32 %v1059_v11 }
 0x29a   : > { %3169 = vrsqrt.f32 %v1062_v10 }
 0x29b   : > { %v1006_v27 = vpop.xlane.xlu1 %1005  ;;  %v1009_v12 = vpop.xlane.xlu0 %1008  ;;  %3171 = vrsqrt.f32 %v1061_v59 }
 0x29c   : > { %v1076_v4 = vmul.f32 %v4276_v15, %v1006_v27  ;;  %3173 = vrsqrt.f32 %v1063_v34 }
 0x29e   : > { %v1109_v29 = vadd.f32 %v1088_v61, %v1076_v4 }
 0x29f   : > { %v1012_v7 = vpop.xlane.xlu1 %1011  ;;  %v1015_v22 = vpop.xlane.xlu0 %1014 }
 0x2a2   : > { %v3166_v32 = vpop.eup %3165 }
 0x2a3   : > { %1171 = vperm.xlu1 %3124, %v3166_v32   ;;  %v1096_v14 = vpop.permute.xlu1 %1095  ;;  %v1092_v2 = vpop.permute.xlu0 %1091 }
 0x2a4   : > { %v1107_v3 = vadd.f32 %v1096_v14, %v1074_v55  ;;  %v1106_v52 = vadd.f32 %v1092_v2, %v1073_v60  ;;  %v3168_v46 = vpop.eup %3167 }
 0x2a5   : > { %v1075_v5 = vmul.f32 %v3168_v46, %v1003_v44  ;;  %v3170_v41 = vpop.eup %3169 }
 0x2a6   : > { %3175 = vtanh.f32 %v1107_v3  ;;  %v1078_v11 = vmul.f32 %v3170_v41, %v1012_v7  ;;  %v3172_v59 = vpop.eup %3171  ;;  %v1130_v3 = vmul.f32 %v4271_v24, %v4105_v37 }
 0x2a7   : > { %v1100_v62 = vpop.permute.xlu1 %1099  ;;  %3177 = vtanh.f32 %v1106_v52  ;;  %v1077_v23 = vmul.f32 %v3172_v59, %v1009_v12  ;;  %v4283_v34 = vpop.eup %3173 }
 0x2a8   : > { %v1108_v10 = vadd.f32 %v1100_v62, %v1075_v5  ;;  %3179 = vtanh.f32 %v1109_v29  ;;  %v1111_v27 = vadd.f32 %v1096_v14, %v1078_v11  ;;  %v1079_v32 = vmul.f32 %v4283_v34, %v1015_v22  ;;  %v2845_v14 = vld [vmem:[%s3793_s16 + $0x4] sm:$0x3] }
 0x2a9   : > { %v1110_v35 = vadd.f32 %v1092_v2, %v1077_v23  ;;  %1316 = vst [vmem:[#allocation2] sm:$0x3] %v2845_v14  ;;  %v1129_v2 = vmul.f32 %v4271_v24, %v4103_v31  ;;  %v1146_v11 = vmul.f32 %v1130_v3, %v3998_v1  ;;  %v4298_v23 = vld [vmem:[#allocation7] sm:$0xff]  ;;  %v5129_v3 = vld [vmem:[#allocation22_spill] sm:$0xff] }
 0x2aa   : > { %3181 = vtanh.f32 %v1108_v10  ;;  %v1112_v61 = vadd.f32 %v1100_v62, %v1079_v32  ;;  %v1131_v32 = vmul.f32 %v4274_v18, %v4090_v51  ;;  %v1138_v51 = vmul.f32 %v4276_v15, %v4152_v39  ;;  %v5128_v14 = vld [vmem:[#allocation21_spill] sm:$0xff]  ;;  %v5131_v39 = vld [vmem:[#allocation26_spill] sm:$0xff] }
 0x2ab   : > { %3183 = vtanh.f32 %v1111_v27  ;;  %v1145_v62 = vmul.f32 %v1129_v2, %v3988_v57  ;;  %v4300_v27 = vld [vmem:[#allocation7 + $0x8] sm:$0xff] }
 0x2ac   : > { %3185 = vtanh.f32 %v1110_v35 }
 0x2ad   : > { %3187 = vtanh.f32 %v1112_v61  ;;  %v1133_v61 = vmul.f32 %v4278_v49, %v4128_v19 }
 0x2af   : > { %v1149_v2 = vmul.f32 %v1133_v61, %v5128_v14 }
 0x2b0   : > { %v3176_v60 = vpop.eup %3175 }
 0x2b1   : > { %1181 = vperm.xlu1 %3124, %v3176_v60   ;;  %v3178_v44 = vpop.eup %3177  ;;  %v1132_v60 = vmul.f32 %v4274_v18, %v4092_v56  ;;  %v1135_v56 = vmul.f32 %v3168_v46, %v4155_v36  ;;  %v1136_v18 = vmul.f32 %v3168_v46, %v4159_v58  ;;  %v5132_v46 = vld [vmem:[#allocation23_spill] sm:$0xff] }
 0x2b2   : > { %v3180_v7 = vpop.eup %3179  ;;  %1176 = vperm.xlu0 %3123, %v3178_v44   ;;  %v1134_v44 = vmul.f32 %v4278_v49, %v4131_v42  ;;  %v1142_v42 = vmul.f32 %v3170_v41, %v4182_v28  ;;  %v1139_v49 = vmul.f32 %v3172_v59, %v4185_v45  ;;  %v1143_v45 = vmul.f32 %v4283_v34, %v4206_v38 }
 0x2b3   : > { %v1151_v28 = vmul.f32 %v1135_v56, %v5132_v46  ;;  %v4361_v56 = vmul.f32 %v4283_v34, %v4212_v43 }
 0x2b4   : > { %v3182_v4 = vpop.eup %3181 }
 0x2b5   : > { %1191 = vperm.xlu1 %3124, %v3180_v7   ;;  %v3184_v12 = vpop.eup %3183 }
 0x2b6   : > { %1186 = vperm.xlu0 %3123, %v3182_v4   ;;  %v3186_v55 = vpop.eup %3185 }
 0x2b7   : > { %v3188_v22 = vpop.eup %3187 }
 0x2b9   : > { %1201 = vperm.xlu1 %3124, %v3184_v12   ;;  %v1137_v12 = vmul.f32 %v4276_v15, %v4149_v9  ;;  %v1150_v9 = vmul.f32 %v1134_v44, %v5129_v3  ;;  %v1148_v15 = vmul.f32 %v1132_v60, %v5131_v39 }
 0x2ba   : > { %1196 = vperm.xlu0 %3123, %v3186_v55   ;;  %v1141_v55 = vmul.f32 %v3170_v41, %v4176_v16  ;;  %v1154_v16 = vmul.f32 %v1138_v51, %v3998_v1 }
 0x2bb   : > { %v1153_v58 = vmul.f32 %v1137_v12, %v3988_v57  ;;  %v1158_v57 = vmul.f32 %v1142_v42, %v5129_v3  ;;  %v5135_v42 = vld [vmem:[#allocation27_spill] sm:$0xff] }
 0x2bd   : > { %1500 = vbcast.lane.b32.xlu1 %v3962_v47, 256 }
 0x2be   : > { %1206 = vperm.xlu0 %3123, %v3188_v22   ;;  %v1140_v22 = vmul.f32 %v3172_v59, %v4190_v13  ;;  %v5133_v59 = vld [vmem:[#allocation24_spill] sm:$0xff] }
 0x322   : > { %v1172_v52 = vpop.permute.xlu1 %1171 }
 0x323   : > { %v1209_v29 = vmul.f32 %v1172_v52, %v4236_v17  ;;  %v1210_v5 = vmul.f32 %v1172_v52, %v4239_v40 }
 0x325   : > { %v1225_v47 = vmul.f32 %v1209_v29, %v4069_v50  ;;  %v1226_v10 = vmul.f32 %v1210_v5, %v4071_v53  ;;  %v5130_v29 = vld [vmem:[#allocation25_spill] sm:$0xff] }
 0x326   : > { %v1147_v5 = vmul.f32 %v1131_v32, %v5130_v29  ;;  %v1155_v1 = vmul.f32 %v1139_v49, %v5130_v29  ;;  %v1156_v32 = vmul.f32 %v1140_v22, %v5131_v39 }
 0x327   : > { %v4302_v31 = vadd.f32 %v1225_v47, %v1145_v62  ;;  %v4304_v37 = vadd.f32 %v1226_v10, %v1146_v11  ;;  %v1152_v62 = vmul.f32 %v1136_v18, %v5133_v59  ;;  %v1157_v11 = vmul.f32 %v1141_v55, %v5128_v14 }
 0x328   : > { %v4364_v18 = vmul.f32 %v1143_v45, %v5132_v46 }
 0x329   : > { %v4308_v24 = vadd.f32 %v4298_v23, %v4302_v31  ;;  %v4312_v35 = vadd.f32 %v4300_v27, %v4304_v37 }
 0x32b   : > { %v1429_v7 = vmul.f32 %v4308_v24, %v4308_v24  ;;  %v1430_v4 = vmul.f32 %v4312_v35, %v4312_v35 }
 0x32d   : > { %v1445_v19 = vadd.f32 %v1430_v4, %v1429_v7  ;;  %v5134_v7 = vld [vmem:[#allocation28_spill] sm:$0xff] }
 0x32e   : > { %v1260_v4 = vrot.slane %v1172_v52, %v5134_v7 }
 0x32f   : > { %1446 = vadd.xlane.f32.xlu1 %v1445_v19 }
 0x330   : > { %v1182_v36 = vpop.permute.xlu1 %1181 }
 0x331   : > { %v1213_v13 = vmul.f32 %v1182_v36, %v4236_v17  ;;  %v1214_v41 = vmul.f32 %v1182_v36, %v4239_v40  ;;  %v1269_v47 = vrot.slane %v1182_v36, %v4074_v20  ;;  %v1177_v10 = vpop.permute.xlu0 %1176 }
 0x332   : > { %v1211_v61 = vmul.f32 %v1177_v10, %v4236_v17  ;;  %v1212_v44 = vmul.f32 %v1177_v10, %v4239_v40  ;;  %v1264_v12 = vrot.slane %v1177_v10, %v3996_v8 }
 0x333   : > { %v1229_v60 = vmul.f32 %v1213_v13, %v4096_v21  ;;  %v1230_v38 = vmul.f32 %v1214_v41, %v4098_v25 }
 0x334   : > { %v1192_v51 = vpop.permute.xlu1 %1191  ;;  %v1227_v49 = vmul.f32 %v1211_v61, %v5135_v42  ;;  %v1228_v22 = vmul.f32 %v1212_v44, %v4049_v63  ;;  %v1265_v52 = vsel %vm846_vm2, %v1264_v12, %v1260_v4  ;;  %v4398_v61 = vld [vmem:[#allocation7 + $0x18] sm:$0xff] }
 0x335   : > { %v4366_v19 = vadd.f32 %v1229_v60, %v1149_v2  ;;  %v4368_v55 = vadd.f32 %v1230_v38, %v1150_v9  ;;  %v1217_v14 = vmul.f32 %v1192_v51, %v4254_v54  ;;  %v1218_v3 = vmul.f32 %v1192_v51, %v4257_v33  ;;  %v1187_v34 = vpop.permute.xlu0 %1186 }
 0x336   : > { %v1279_v43 = vrot.slane %v1192_v51, %v5134_v7  ;;  %v4376_v29 = vadd.f32 %v1227_v49, %v1147_v5  ;;  %v4378_v39 = vadd.f32 %v1228_v22, %v1148_v15  ;;  %v1270_v2 = vsel %vm853_vm3, %v1269_v47, %v1265_v52  ;;  %v4390_v47 = vld [vmem:[#allocation7 + $0x10] sm:$0xff] }
 0x337   : > { %v1215_v9 = vmul.f32 %v1187_v34, %v4236_v17  ;;  %v1233_v36 = vmul.f32 %v1217_v14, %v4069_v50  ;;  %v1234_v46 = vmul.f32 %v1218_v3, %v4071_v53  ;;  %v1216_v45 = vmul.f32 %v1187_v34, %v4239_v40 }
 0x338   : > { %v1274_v13 = vrot.slane %v1187_v34, %v4088_v30  ;;  %v1202_v41 = vpop.permute.xlu1 %1201  ;;  %v4411_v22 = vadd.f32 %v4390_v47, %v4376_v29 }
 0x339   : > { %v1231_v10 = vmul.f32 %v1215_v9, %v4115_v6  ;;  %v1221_v5 = vmul.f32 %v1202_v41, %v4254_v54  ;;  %v1222_v15 = vmul.f32 %v1202_v41, %v4257_v33  ;;  %v1288_v60 = vrot.slane %v1202_v41, %v4074_v20  ;;  %v1197_v38 = vpop.permute.xlu0 %1196 }
 0x33a   : > { %v4392_v17 = vadd.f32 %v1233_v36, %v1153_v58  ;;  %v4394_v50 = vadd.f32 %v1234_v46, %v1154_v16  ;;  %v1232_v53 = vmul.f32 %v1216_v45, %v4124_v48  ;;  %v1275_v40 = vsel %vm860_vm4, %v1274_v13, %v1270_v2  ;;  %v4437_v36 = vld [vmem:[#allocation7 + $0x28] sm:$0xff] }
 0x33b   : > { %v4400_v44 = vadd.f32 %v1231_v10, %v1151_v28  ;;  %v1237_v4 = vmul.f32 %v1221_v5, %v4096_v21  ;;  %v1238_v12 = vmul.f32 %v1222_v15, %v4098_v25  ;;  %v1219_v51 = vmul.f32 %v1197_v38, %v4254_v54 }
 0x33c   : > { %v4405_v49 = vadd.f32 %v1232_v53, %v1152_v62  ;;  %v1220_v58 = vmul.f32 %v1197_v38, %v4257_v33  ;;  %v1283_v16 = vrot.slane %v1197_v38, %v3996_v8  ;;  %v4420_v25 = vadd.f32 %v4398_v61, %v4378_v39 }
 0x33d   : > { %v4413_v52 = vadd.f32 %v1237_v4, %v1157_v11  ;;  %v4415_v28 = vadd.f32 %v1238_v12, %v1158_v57  ;;  %v1235_v21 = vmul.f32 %v1219_v51, %v5135_v42  ;;  %v1207_v3 = vpop.permute.xlu0 %1206  ;;  %v1431_v34 = vmul.f32 %v4411_v22, %v4411_v22  ;;  %v4430_v57 = vld [vmem:[#allocation7 + $0x20] sm:$0xff] }
 0x33e   : > { %v1236_v62 = vmul.f32 %v1220_v58, %v4049_v63  ;;  %v1284_v14 = vsel %vm846_vm2, %v1283_v16, %v1279_v43  ;;  %v4428_v11 = vadd.f32 %v4298_v23, %v4392_v17  ;;  %v1223_v9 = vmul.f32 %v1207_v3, %v4254_v54 }
 0x33f   : > { %v4432_v2 = vadd.f32 %v1235_v21, %v1155_v1  ;;  %v1289_v42 = vsel %vm853_vm3, %v1288_v60, %v1284_v14  ;;  %v1224_v63 = vmul.f32 %v1207_v3, %v4257_v33  ;;  %v1293_v46 = vrot.slane %v1207_v3, %v4088_v30  ;;  %v4459_v60 = vld [vmem:[#allocation7 + $0x30] sm:$0xff] }
 0x340   : > { %v4439_v43 = vadd.f32 %v1236_v62, %v1156_v32  ;;  %v1432_v45 = vmul.f32 %v4420_v25, %v4420_v25  ;;  %v4446_v13 = vadd.f32 %v4300_v27, %v4394_v50  ;;  %v1239_v1 = vmul.f32 %v1223_v9, %v4115_v6  ;;  %v4461_v6 = vld [vmem:[#allocation7 + $0x38] sm:$0xff] }
 0x341   : > { %v1240_v41 = vmul.f32 %v1224_v63, %v4124_v48  ;;  %v1437_v54 = vmul.f32 %v4428_v11, %v4428_v11  ;;  %v1348_v33 = vadd.f32 %v4430_v57, %v4366_v19  ;;  %v1294_v32 = vsel %vm860_vm4, %v1293_v46, %v1289_v42 }
 0x342   : > { %v1448_v10 = vadd.f32 %v1432_v45, %v1431_v34  ;;  %v1438_v5 = vmul.f32 %v4446_v13, %v4446_v13  ;;  %v1349_v15 = vadd.f32 %v4437_v36, %v4368_v55  ;;  %v1160_v48 = vmul.f32 %v4361_v56, %v5133_v59 }
 0x343   : > { %v4466_v53 = vadd.f32 %v1239_v1, %v4364_v18  ;;  %v1295_v38 = vsel %vm881_vm5, %v1294_v32, %v1275_v40  ;;  %v1433_v4 = vmul.f32 %v1348_v33, %v1348_v33  ;;  %v1356_v58 = vadd.f32 %v4430_v57, %v4413_v52 }
 0x344   : > { %1297 = vst.msk [vmem:[#allocation13] sm:$0x3] %vm482_vm1, %v1295_v38  ;;  %1449 = vadd.xlane.f32.xlu0 %v1448_v10  ;;  %v1457_v12 = vadd.f32 %v1438_v5, %v1437_v54  ;;  %v1434_v51 = vmul.f32 %v1349_v15, %v1349_v15  ;;  %v1357_v16 = vadd.f32 %v4437_v36, %v4415_v28 }
 0x345   : > { %v4474_v21 = vadd.f32 %v1240_v41, %v1160_v48  ;;  %v1350_v59 = vadd.f32 %v4459_v60, %v4400_v44  ;;  %v1351_v56 = vadd.f32 %v4461_v6, %v4405_v49  ;;  %v1354_v18 = vadd.f32 %v4390_v47, %v4432_v2  ;;  %v2848_v48 = vld [vmem:[%s3793_s16 + $0x6] sm:$0x3] }
 0x346   : > { %1458 = vadd.xlane.f32.xlu1 %v1457_v12  ;;  %v1451_v40 = vadd.f32 %v1434_v51, %v1433_v4  ;;  %v1441_v62 = vmul.f32 %v1356_v58, %v1356_v58  ;;  %v1442_v14 = vmul.f32 %v1357_v16, %v1357_v16  ;;  %v1355_v3 = vadd.f32 %v4398_v61, %v4439_v43 }
 0x347   : > { %v1435_v34 = vmul.f32 %v1350_v59, %v1350_v59  ;;  %v1436_v42 = vmul.f32 %v1351_v56, %v1351_v56  ;;  %v1358_v63 = vadd.f32 %v4459_v60, %v4466_v53  ;;  %v1439_v45 = vmul.f32 %v1354_v18, %v1354_v18 }
 0x348   : > { %1452 = vadd.xlane.f32.xlu0 %v1451_v40  ;;  %v1463_v9 = vadd.f32 %v1442_v14, %v1441_v62  ;;  %v1440_v1 = vmul.f32 %v1355_v3, %v1355_v3  ;;  %v1359_v41 = vadd.f32 %v4461_v6, %v4474_v21 }
 0x349   : > { %v1454_v46 = vadd.f32 %v1436_v42, %v1435_v34  ;;  %v1443_v10 = vmul.f32 %v1358_v63, %v1358_v63 }
 0x34a   : > { %1464 = vadd.xlane.f32.xlu1 %v1463_v9  ;;  %v1460_v32 = vadd.f32 %v1440_v1, %v1439_v45  ;;  %v1444_v5 = vmul.f32 %v1359_v41, %v1359_v41 }
 0x34b   : > { %v1317_v54 = vld [vmem:[#allocation13] sm:$0x3] }
 0x34c   : > { %1318 = vst.msk [vmem:[#allocation2 + $0x2] sm:$0x3] %vm482_vm1, %v1317_v54  ;;  %1455 = vadd.xlane.f32.xlu0 %v1454_v46  ;;  %v1466_v38 = vadd.f32 %v1444_v5, %v1443_v10 }
 0x350   : > { %1461 = vadd.xlane.f32.xlu0 %v1460_v32 }
 0x353   : > { %v2846_v4 = vld.sshfl [vmem:[#allocation2] sm:$0x33 pattern:$0x75316420] }
 0x354   : > { %1467 = vadd.xlane.f32.xlu0 %v1466_v38  ;;  %v4491_v12 = vrot.slane %v2846_v4, %v3919_v0  ;;  %v4494_v51 = vrot.slane %v2846_v4, %v3922_v26  ;;  %1729 = vst [vmem:[#allocation2] sm:$0x3] %v2848_v48  ;;  %v1368_v40 = vcombine.high %v2846_v4, %v2846_v4 }
 0x356   : > { %v1389_v62 = vmul.f32 %v4491_v12, %v4308_v24  ;;  %v1390_v14 = vmul.f32 %v4494_v51, %v4312_v35  ;;  %v1391_v34 = vmul.f32 %v4491_v12, %v4411_v22  ;;  %v1392_v42 = vmul.f32 %v4494_v51, %v4420_v25 }
 0x357   : > { %v1393_v9 = vmul.f32 %v4491_v12, %v1348_v33  ;;  %v1394_v46 = vmul.f32 %v4494_v51, %v1349_v15  ;;  %v1395_v45 = vmul.f32 %v4491_v12, %v1350_v59  ;;  %v1396_v1 = vmul.f32 %v4494_v51, %v1351_v56 }
 0x358   : > { %v1405_v54 = vadd.f32 %v1390_v14, %v1389_v62  ;;  %v1408_v32 = vadd.f32 %v1392_v42, %v1391_v34  ;;  %v4509_v24 = vrot.slane %v1368_v40, %v3919_v0  ;;  %v4512_v35 = vrot.slane %v1368_v40, %v3922_v26 }
 0x359   : > { %v1411_v22 = vadd.f32 %v1394_v46, %v1393_v9  ;;  %v1414_v25 = vadd.f32 %v1396_v1, %v1395_v45 }
 0x35a   : > { %1406 = vadd.xlane.f32.xlu1 %v1405_v54  ;;  %1409 = vadd.xlane.f32.xlu0 %v1408_v32  ;;  %v1397_v33 = vmul.f32 %v4509_v24, %v4428_v11  ;;  %v1398_v15 = vmul.f32 %v4512_v35, %v4446_v13  ;;  %v1399_v59 = vmul.f32 %v4509_v24, %v1354_v18  ;;  %v3253_v18 = vld [vmem:[%s5061_s4] ss:$0 sm:$0xff] }
 0x35b   : > { %v1400_v56 = vmul.f32 %v4512_v35, %v1355_v3  ;;  %v1401_v10 = vmul.f32 %v4509_v24, %v1356_v58  ;;  %v1402_v5 = vmul.f32 %v4512_v35, %v1357_v16  ;;  %v1403_v4 = vmul.f32 %v4509_v24, %v1358_v63  ;;  %v1501_v16 = vpop.permute.xlu1 %1500 }
 0x35c   : > { %v1417_v48 = vadd.f32 %v1398_v15, %v1397_v33  ;;  %v1404_v40 = vmul.f32 %v4512_v35, %v1359_v41 }
 0x35d   : > { %v1420_v38 = vadd.f32 %v1400_v56, %v1399_v59  ;;  %v1423_v11 = vadd.f32 %v1402_v5, %v1401_v10 }
 0x35e   : > { %1412 = vadd.xlane.f32.xlu1 %v1411_v22  ;;  %1415 = vadd.xlane.f32.xlu0 %v1414_v25  ;;  %v1426_v13 = vadd.f32 %v1404_v40, %v1403_v4 }
 0x362   : > { %1418 = vadd.xlane.f32.xlu1 %v1417_v48  ;;  %1421 = vadd.xlane.f32.xlu0 %v1420_v38 }
 0x366   : > { %1424 = vadd.xlane.f32.xlu1 %v1423_v11  ;;  %1427 = vadd.xlane.f32.xlu0 %v1426_v13 }
 0x377   : > { %1508 = vbcast.lane.b32.xlu1 %v3253_v18, 272 }
 0x37b   : > { %1512 = vbcast.lane.b32.xlu1 %v3253_v18, 280 }
 0x37c   : > { %1504 = vbcast.lane.b32.xlu0 %v3253_v18, 264 }
 0x3bc   : > { %v1447_v62 = vpop.xlane.xlu1 %1446 }
 0x3bd   : > { %v1469_v63 = vadd.f32 1e-16, %v1447_v62 }
 0x3bf   : > { %3189 = vrsqrt.f32 %v1469_v63 }
 0x3c9   : > { %v4527_v1 = vpop.eup %3189 }
 0x3d1   : > { %v1450_v58 = vpop.xlane.xlu0 %1449 }
 0x3d2   : > { %v1470_v46 = vadd.f32 1e-16, %v1450_v58 }
 0x3d3   : > { %v1459_v41 = vpop.xlane.xlu1 %1458 }
 0x3d4   : > { %v1473_v45 = vadd.f32 1e-16, %v1459_v41  ;;  %3191 = vrsqrt.f32 %v1470_v46 }
 0x3d5   : > { %v1453_v3 = vpop.xlane.xlu0 %1452 }
 0x3d6   : > { %v1471_v54 = vadd.f32 1e-16, %v1453_v3  ;;  %3193 = vrsqrt.f32 %v1473_v45 }
 0x3d7   : > { %v1465_v42 = vpop.xlane.xlu1 %1464 }
 0x3d8   : > { %3195 = vrsqrt.f32 %v1471_v54  ;;  %v1475_v10 = vadd.f32 1e-16, %v1465_v42 }
 0x3d9   : > { %v1456_v14 = vpop.xlane.xlu0 %1455 }
 0x3da   : > { %v1472_v15 = vadd.f32 1e-16, %v1456_v14 }
 0x3dd   : > { %v1462_v34 = vpop.xlane.xlu0 %1461 }
 0x3de   : > { %v1474_v5 = vadd.f32 1e-16, %v1462_v34  ;;  %v4530_v4 = vpop.eup %3191 }
 0x3e0   : > { %v4532_v18 = vpop.eup %3193 }
 0x3e1   : > { %v1468_v9 = vpop.xlane.xlu0 %1467 }
 0x3e2   : > { %v1476_v40 = vadd.f32 1e-16, %v1468_v9  ;;  %v4534_v58 = vpop.eup %3195 }
 0x3e7   : > { %v1407_v32 = vpop.xlane.xlu1 %1406  ;;  %v1410_v22 = vpop.xlane.xlu0 %1409 }
 0x3e8   : > { %v1485_v25 = vmul.f32 %v4527_v1, %v1407_v32  ;;  %v1486_v63 = vmul.f32 %v4530_v4, %v1410_v22 }
 0x3ea   : > { %v1518_v33 = vadd.f32 %v1501_v16, %v1485_v25 }
 0x3eb   : > { %v1413_v59 = vpop.xlane.xlu1 %1412  ;;  %v1416_v56 = vpop.xlane.xlu0 %1415 }
 0x3ec   : > { %3197 = vtanh.f32 %v1518_v33  ;;  %v1487_v14 = vmul.f32 %v4534_v58, %v1413_v59 }
 0x3ed   : > { %3199 = vrsqrt.f32 %v1472_v15 }
 0x3ee   : > { %3201 = vrsqrt.f32 %v1475_v10 }
 0x3ef   : > { %v1419_v48 = vpop.xlane.xlu1 %1418  ;;  %v1422_v38 = vpop.xlane.xlu0 %1421  ;;  %3203 = vrsqrt.f32 %v1474_v5 }
 0x3f0   : > { %v1489_v3 = vmul.f32 %v4532_v18, %v1419_v48  ;;  %3205 = vrsqrt.f32 %v1476_v40 }
 0x3f2   : > { %v1522_v45 = vadd.f32 %v1501_v16, %v1489_v3 }
 0x3f3   : > { %v1425_v11 = vpop.xlane.xlu1 %1424  ;;  %v1428_v13 = vpop.xlane.xlu0 %1427 }
 0x3f6   : > { %v3198_v62 = vpop.eup %3197 }
 0x3f7   : > { %1584 = vperm.xlu1 %3124, %v3198_v62   ;;  %v1509_v41 = vpop.permute.xlu1 %1508  ;;  %v1505_v34 = vpop.permute.xlu0 %1504 }
 0x3f8   : > { %v1520_v42 = vadd.f32 %v1509_v41, %v1487_v14  ;;  %v1519_v46 = vadd.f32 %v1505_v34, %v1486_v63  ;;  %v4539_v9 = vpop.eup %3199  ;;  %v4554_v14 = vld [vmem:[%s5061_s4] ss:$0 sm:$0xff] }
 0x3f9   : > { %v1488_v54 = vmul.f32 %v4539_v9, %v1416_v56  ;;  %v4542_v32 = vpop.eup %3201 }
 0x3fa   : > { %3207 = vtanh.f32 %v1520_v42  ;;  %v1491_v33 = vmul.f32 %v4542_v32, %v1425_v11  ;;  %v4545_v15 = vpop.eup %3203  ;;  %v1543_v42 = vmul.f32 %v4527_v1, %v4304_v37 }
 0x3fb   : > { %v1513_v25 = vpop.permute.xlu1 %1512  ;;  %3209 = vtanh.f32 %v1519_v46  ;;  %v1490_v59 = vmul.f32 %v4545_v15, %v1422_v38  ;;  %v4548_v48 = vpop.eup %3205  ;;  %v4563_v46 = vld [vmem:[#allocation9 + $0x8] sm:$0xff] }
 0x3fc   : > { %v1521_v22 = vadd.f32 %v1513_v25, %v1488_v54  ;;  %3211 = vtanh.f32 %v1522_v45  ;;  %v1524_v10 = vadd.f32 %v1509_v41, %v1491_v33  ;;  %v1492_v16 = vmul.f32 %v4548_v48, %v1428_v13  ;;  %v4557_v41 = vld [vmem:[#allocation9] sm:$0xff]  ;;  %5136 = vst [vmem:[#allocation21_spill] sm:$0xff] %v4563_v46  ;;  %v4567_v54 = vld [vmem:[#allocation10 + $0x8] sm:$0xff] }
 0x3fd   : > { %v1523_v5 = vadd.f32 %v1505_v34, %v1490_v59  ;;  %v1542_v34 = vmul.f32 %v4527_v1, %v4302_v31  ;;  %v4565_v45 = vld [vmem:[#allocation10] sm:$0xff]  ;;  %5137 = vst [vmem:[#allocation22_spill] sm:$0xff] %v4567_v54  ;;  %v1559_v31 = vmul.f32 %v1543_v42, %v4563_v46 }
 0x3fe   : > { %3213 = vtanh.f32 %v1521_v22  ;;  %v1525_v40 = vadd.f32 %v1513_v25, %v1492_v16 }
 0x3ff   : > { %3215 = vtanh.f32 %v1524_v10  ;;  %v1558_v59 = vmul.f32 %v1542_v34, %v4557_v41  ;;  %v4607_v34 = vld [vmem:[#allocation9 + $0x10] sm:$0xff] }
 0x400   : > { %3217 = vtanh.f32 %v1523_v5  ;;  %5138 = vst [vmem:[#allocation25_spill] sm:$0xff] %v4607_v34 }
 0x401   : > { %3219 = vtanh.f32 %v1525_v40  ;;  %v1544_v40 = vmul.f32 %v4530_v4, %v4376_v29  ;;  %v1547_v29 = vmul.f32 %v4534_v58, %v4368_v55  ;;  %v1549_v55 = vmul.f32 %v4539_v9, %v4405_v49 }
 0x404   : > { %v3208_v56 = vpop.eup %3207 }
 0x405   : > { %1594 = vperm.xlu1 %3124, %v3208_v56   ;;  %v3210_v11 = vpop.eup %3209 }
 0x406   : > { %v3212_v3 = vpop.eup %3211  ;;  %1589 = vperm.xlu0 %3123, %v3210_v11   ;;  %v1545_v11 = vmul.f32 %v4530_v4, %v4378_v39  ;;  %v4609_v39 = vld [vmem:[#allocation9 + $0x18] sm:$0xff]  ;;  %v4615_v4 = vld [vmem:[#allocation9 + $0x28] sm:$0xff] }
 0x407   : > { %5139 = vst [vmem:[#allocation26_spill] sm:$0xff] %v4609_v39  ;;  %5141 = vst [vmem:[#allocation24_spill] sm:$0xff] %v4615_v4  ;;  %v1563_v49 = vmul.f32 %v1547_v29, %v4615_v4 }
 0x408   : > { %v3214_v62 = vpop.eup %3213 }
 0x409   : > { %1604 = vperm.xlu1 %3124, %v3212_v3   ;;  %v3216_v38 = vpop.eup %3215  ;;  %v1550_v3 = vmul.f32 %v4532_v18, %v4392_v17  ;;  %v1554_v17 = vmul.f32 %v4542_v32, %v4413_v52  ;;  %v1553_v52 = vmul.f32 %v4545_v15, %v4439_v43 }
 0x40a   : > { %1599 = vperm.xlu0 %3123, %v3214_v62   ;;  %v3218_v63 = vpop.eup %3217  ;;  %v1551_v62 = vmul.f32 %v4532_v18, %v4394_v50  ;;  %v4613_v50 = vld [vmem:[#allocation9 + $0x20] sm:$0xff]  ;;  %v1548_v18 = vmul.f32 %v4539_v9, %v4400_v44 }
 0x40b   : > { %v3220_v13 = vpop.eup %3219  ;;  %5140 = vst [vmem:[#allocation23_spill] sm:$0xff] %v4613_v50  ;;  %v1566_v44 = vmul.f32 %v1550_v3, %v4557_v41  ;;  %v4637_v9 = vld [vmem:[#allocation10 + $0x20] sm:$0xff] }
 0x40d   : > { %1614 = vperm.xlu1 %3124, %v3216_v38  }
 0x40e   : > { %1609 = vperm.xlu0 %3123, %v3218_v63  }
 0x411   : > { %1913 = vbcast.lane.b32.xlu1 %v4554_v14, 256 }
 0x412   : > { %1619 = vperm.xlu0 %3123, %v3220_v13   ;;  %v1546_v13 = vmul.f32 %v4534_v58, %v4366_v19  ;;  %v1555_v19 = vmul.f32 %v4542_v32, %v4415_v28  ;;  %v1552_v58 = vmul.f32 %v4545_v15, %v4432_v2  ;;  %v4633_v28 = vld [vmem:[#allocation9 + $0x38] sm:$0xff]  ;;  %v4639_v2 = vld [vmem:[#allocation10 + $0x28] sm:$0xff]  ;;  %v1570_v15 = vmul.f32 %v1554_v17, %v4613_v50 }
 0x413   : > { %v1565_v29 = vmul.f32 %v1549_v55, %v4633_v28  ;;  %v4665_v55 = vmul.f32 %v4548_v48, %v4474_v21 }
 0x414   : > { %v1562_v32 = vmul.f32 %v1546_v13, %v4613_v50  ;;  %v1571_v3 = vmul.f32 %v1555_v19, %v4615_v4  ;;  %v1568_v17 = vmul.f32 %v1552_v58, %v4607_v34 }
 0x476   : > { %v4569_v25 = vpop.permute.xlu1 %1584 }
 0x477   : > { %v1622_v33 = vmul.f32 %v4569_v25, %v4491_v12  ;;  %v1623_v22 = vmul.f32 %v4569_v25, %v4494_v51 }
 0x479   : > { %v1638_v37 = vmul.f32 %v1622_v33, %v4565_v45  ;;  %v1639_v1 = vmul.f32 %v1623_v22, %v4567_v54  ;;  %v4621_v33 = vld [vmem:[#allocation9 + $0x30] sm:$0xff]  ;;  %v1560_v22 = vmul.f32 %v1544_v40, %v4607_v34 }
 0x47a   : > { %5142 = vst [vmem:[#allocation27_spill] sm:$0xff] %v4621_v33 }
 0x47b   : > { %v4579_v10 = vadd.f32 %v1638_v37, %v1558_v59  ;;  %v4581_v5 = vadd.f32 %v1639_v1, %v1559_v31  ;;  %v1561_v59 = vmul.f32 %v1545_v11, %v4609_v39  ;;  %v1567_v31 = vmul.f32 %v1551_v62, %v4563_v46 }
 0x47c   : > { %v1556_v37 = vmul.f32 %v4548_v48, %v4466_v53  ;;  %v1564_v11 = vmul.f32 %v1548_v18, %v4621_v33  ;;  %v1569_v53 = vmul.f32 %v1553_v52, %v4609_v39  ;;  %v4680_v48 = vld [vmem:[#allocation10 + $0x30] sm:$0xff] }
 0x47d   : > { %v4585_v16 = vadd.f32 %v4579_v10, %v4298_v23  ;;  %v4589_v56 = vadd.f32 %v4581_v5, %v4300_v27 }
 0x47e   : > { %v4668_v58 = vmul.f32 %v1556_v37, %v4621_v33 }
 0x47f   : > { %v1842_v38 = vmul.f32 %v4585_v16, %v4585_v16  ;;  %v1843_v63 = vmul.f32 %v4589_v56, %v4589_v56 }
 0x481   : > { %v1858_v42 = vadd.f32 %v1843_v63, %v1842_v38  ;;  %v4649_v38 = vld [vmem:[#allocation10 + $0x10] sm:$0xff]  ;;  %v4651_v63 = vld [vmem:[#allocation10 + $0x18] sm:$0xff] }
 0x483   : > { %1859 = vadd.xlane.f32.xlu1 %v1858_v42 }
 0x484   : > { %v1595_v43 = vpop.permute.xlu1 %1594 }
 0x485   : > { %v1626_v1 = vmul.f32 %v1595_v43, %v4491_v12  ;;  %v1627_v40 = vmul.f32 %v1595_v43, %v4494_v51  ;;  %v1682_v62 = vrot.slane %v1595_v43, %v4074_v20  ;;  %v1590_v13 = vpop.permute.xlu0 %1589  ;;  %v1673_v43 = vrot.slane %v4569_v25, %v5134_v7 }
 0x486   : > { %v1624_v18 = vmul.f32 %v1590_v13, %v4491_v12  ;;  %v1625_v19 = vmul.f32 %v1590_v13, %v4494_v51  ;;  %v1677_v4 = vrot.slane %v1590_v13, %v3996_v8 }
 0x487   : > { %v1642_v42 = vmul.f32 %v1626_v1, %v4637_v9  ;;  %v1643_v50 = vmul.f32 %v1627_v40, %v4639_v2 }
 0x488   : > { %v1605_v46 = vpop.permute.xlu1 %1604  ;;  %v1640_v40 = vmul.f32 %v1624_v18, %v4649_v38  ;;  %v1641_v39 = vmul.f32 %v1625_v19, %v4651_v63  ;;  %v1678_v25 = vsel %vm846_vm2, %v1677_v4, %v1673_v43 }
 0x489   : > { %v4670_v52 = vadd.f32 %v1642_v42, %v1562_v32  ;;  %v4672_v1 = vadd.f32 %v1643_v50, %v1563_v49  ;;  %v1630_v13 = vmul.f32 %v1605_v46, %v4509_v24  ;;  %v1631_v34 = vmul.f32 %v1605_v46, %v4512_v35  ;;  %v1600_v37 = vpop.permute.xlu0 %1599  ;;  %v4686_v50 = vld [vmem:[#allocation10 + $0x38] sm:$0xff] }
 0x48a   : > { %v1692_v21 = vrot.slane %v1605_v46, %v5134_v7  ;;  %v4682_v33 = vadd.f32 %v1640_v40, %v1560_v22  ;;  %v4684_v32 = vadd.f32 %v1641_v39, %v1561_v59  ;;  %v1683_v49 = vsel %vm853_vm3, %v1682_v62, %v1678_v25 }
 0x48b   : > { %v1628_v42 = vmul.f32 %v1600_v37, %v4491_v12  ;;  %v1646_v4 = vmul.f32 %v1630_v13, %v4565_v45  ;;  %v1647_v18 = vmul.f32 %v1631_v34, %v4567_v54  ;;  %v1629_v19 = vmul.f32 %v1600_v37, %v4494_v51 }
 0x48c   : > { %v1687_v46 = vrot.slane %v1600_v37, %v4088_v30  ;;  %v1615_v43 = vpop.permute.xlu1 %1614 }
 0x48d   : > { %v1644_v22 = vmul.f32 %v1628_v42, %v4680_v48  ;;  %v1634_v39 = vmul.f32 %v1615_v43, %v4509_v24  ;;  %v1635_v59 = vmul.f32 %v1615_v43, %v4512_v35  ;;  %v1701_v40 = vrot.slane %v1615_v43, %v4074_v20  ;;  %v1610_v51 = vpop.permute.xlu0 %1609 }
 0x48e   : > { %v4698_v62 = vadd.f32 %v1646_v4, %v1566_v44  ;;  %v4700_v12 = vadd.f32 %v1647_v18, %v1567_v31  ;;  %v1645_v25 = vmul.f32 %v1629_v19, %v4686_v50  ;;  %v1688_v34 = vsel %vm860_vm4, %v1687_v46, %v1683_v49 }
 0x48f   : > { %v4704_v13 = vadd.f32 %v1644_v22, %v1564_v11  ;;  %v1650_v37 = vmul.f32 %v1634_v39, %v4637_v9  ;;  %v1651_v42 = vmul.f32 %v1635_v59, %v4639_v2  ;;  %v1632_v7 = vmul.f32 %v1610_v51, %v4509_v24 }
 0x490   : > { %v4709_v54 = vadd.f32 %v1645_v25, %v1565_v29  ;;  %v1633_v44 = vmul.f32 %v1610_v51, %v4512_v35  ;;  %v1696_v31 = vrot.slane %v1610_v51, %v3996_v8  ;;  %v4715_v4 = vadd.f32 %v4682_v33, %v4390_v47 }
 0x491   : > { %v4717_v49 = vadd.f32 %v1650_v37, %v1570_v15  ;;  %v4719_v11 = vadd.f32 %v1651_v42, %v1571_v3  ;;  %v1648_v18 = vmul.f32 %v1632_v7, %v4649_v38  ;;  %v4724_v19 = vadd.f32 %v4684_v32, %v4398_v61  ;;  %v1620_v43 = vpop.permute.xlu0 %1619 }
 0x492   : > { %v1649_v29 = vmul.f32 %v1633_v44, %v4651_v63  ;;  %v1697_v46 = vsel %vm846_vm2, %v1696_v31, %v1692_v21  ;;  %v1844_v22 = vmul.f32 %v4715_v4, %v4715_v4  ;;  %v4732_v15 = vadd.f32 %v4698_v62, %v4298_v23 }
 0x493   : > { %v4734_v3 = vadd.f32 %v1648_v18, %v1568_v17  ;;  %v1702_v7 = vsel %vm853_vm3, %v1701_v40, %v1697_v46  ;;  %v1636_v39 = vmul.f32 %v1620_v43, %v4509_v24  ;;  %v1637_v59 = vmul.f32 %v1620_v43, %v4512_v35 }
 0x494   : > { %v4739_v25 = vadd.f32 %v1649_v29, %v1569_v53  ;;  %v1706_v21 = vrot.slane %v1620_v43, %v4088_v30  ;;  %v1845_v51 = vmul.f32 %v4724_v19, %v4724_v19  ;;  %v4746_v37 = vadd.f32 %v4700_v12, %v4300_v27 }
 0x495   : > { %v1652_v23 = vmul.f32 %v1636_v39, %v4680_v48  ;;  %v1653_v17 = vmul.f32 %v1637_v59, %v4686_v50  ;;  %v1850_v24 = vmul.f32 %v4732_v15, %v4732_v15  ;;  %v1761_v35 = vadd.f32 %v4670_v52, %v4430_v57 }
 0x496   : > { %v1707_v53 = vsel %vm860_vm4, %v1706_v21, %v1702_v7  ;;  %v1861_v40 = vadd.f32 %v1845_v51, %v1844_v22  ;;  %v1851_v42 = vmul.f32 %v4746_v37, %v4746_v37  ;;  %v1762_v27 = vadd.f32 %v4672_v1, %v4437_v36 }
 0x497   : > { %v1573_v44 = vmul.f32 %v4665_v55, %v4633_v28  ;;  %v4762_v31 = vadd.f32 %v1652_v23, %v4668_v58  ;;  %v1708_v18 = vsel %vm881_vm5, %v1707_v53, %v1688_v34  ;;  %v1846_v29 = vmul.f32 %v1761_v35, %v1761_v35 }
 0x498   : > { %1710 = vst.msk [vmem:[#allocation13] sm:$0x3] %vm482_vm1, %v1708_v18  ;;  %1862 = vadd.xlane.f32.xlu0 %v1861_v40  ;;  %v1870_v46 = vadd.f32 %v1851_v42, %v1850_v24  ;;  %v1847_v43 = vmul.f32 %v1762_v27, %v1762_v27  ;;  %v1769_v22 = vadd.f32 %v4717_v49, %v4430_v57 }
 0x499   : > { %v1770_v7 = vadd.f32 %v4719_v11, %v4437_v36  ;;  %v4770_v39 = vadd.f32 %v1653_v17, %v1573_v44  ;;  %v1763_v55 = vadd.f32 %v4704_v13, %v4459_v60  ;;  %v1764_v58 = vadd.f32 %v4709_v54, %v4461_v6 }
 0x49a   : > { %v1767_v34 = vadd.f32 %v4734_v3, %v4390_v47  ;;  %1871 = vadd.xlane.f32.xlu1 %v1870_v46  ;;  %v1864_v59 = vadd.f32 %v1847_v43, %v1846_v29  ;;  %v1854_v21 = vmul.f32 %v1769_v22, %v1769_v22  ;;  %v1768_v57 = vadd.f32 %v4739_v25, %v4398_v61 }
 0x49b   : > { %v1855_v51 = vmul.f32 %v1770_v7, %v1770_v7  ;;  %v1848_v23 = vmul.f32 %v1763_v55, %v1763_v55  ;;  %v1849_v36 = vmul.f32 %v1764_v58, %v1764_v58  ;;  %v1771_v24 = vadd.f32 %v4762_v31, %v4459_v60 }
 0x49c   : > { %1865 = vadd.xlane.f32.xlu0 %v1864_v59  ;;  %v1852_v40 = vmul.f32 %v1767_v34, %v1767_v34  ;;  %v1853_v42 = vmul.f32 %v1768_v57, %v1768_v57  ;;  %v1772_v47 = vadd.f32 %v4770_v39, %v4461_v6 }
 0x49d   : > { %v1876_v17 = vadd.f32 %v1855_v51, %v1854_v21  ;;  %v1867_v53 = vadd.f32 %v1849_v36, %v1848_v23  ;;  %v1856_v61 = vmul.f32 %v1771_v24, %v1771_v24 }
 0x49e   : > { %v1873_v18 = vadd.f32 %v1853_v42, %v1852_v40  ;;  %v1857_v29 = vmul.f32 %v1772_v47, %v1772_v47 }
 0x49f   : > { %1877 = vadd.xlane.f32.xlu1 %v1876_v17  ;;  %v1730_v44 = vld [vmem:[#allocation13] sm:$0x3] }
 0x4a0   : > { %1731 = vst.msk [vmem:[#allocation2 + $0x2] sm:$0x3] %vm482_vm1, %v1730_v44  ;;  %1868 = vadd.xlane.f32.xlu0 %v1867_v53  ;;  %v1879_v46 = vadd.f32 %v1857_v29, %v1856_v61 }
 0x4a4   : > { %1874 = vadd.xlane.f32.xlu0 %v1873_v18 }
 0x4a7   : > { %v2849_v43 = vld.sshfl [vmem:[#allocation2] sm:$0x33 pattern:$0x75316420] }
 0x4a8   : > { %1880 = vadd.xlane.f32.xlu0 %v1879_v46  ;;  %v4786_v60 = vrot.slane %v2849_v43, %v3919_v0  ;;  %v4789_v59 = vrot.slane %v2849_v43, %v3922_v26  ;;  %v1781_v21 = vcombine.high %v2849_v43, %v2849_v43 }
 0x4aa   : > { %v1802_v6 = vmul.f32 %v4786_v60, %v4585_v16  ;;  %v1803_v51 = vmul.f32 %v4789_v59, %v4589_v56  ;;  %v1804_v23 = vmul.f32 %v4786_v60, %v4715_v4  ;;  %v1805_v36 = vmul.f32 %v4789_v59, %v4724_v19 }
 0x4ab   : > { %v1806_v17 = vmul.f32 %v4786_v60, %v1761_v35  ;;  %v1807_v53 = vmul.f32 %v4789_v59, %v1762_v27  ;;  %v1808_v40 = vmul.f32 %v4786_v60, %v1763_v55  ;;  %v1809_v42 = vmul.f32 %v4789_v59, %v1764_v58 }
 0x4ac   : > { %v1818_v44 = vadd.f32 %v1803_v51, %v1802_v6  ;;  %v1821_v18 = vadd.f32 %v1805_v36, %v1804_v23  ;;  %v4804_v16 = vrot.slane %v1781_v21, %v3919_v0  ;;  %v4807_v56 = vrot.slane %v1781_v21, %v3922_v26 }
 0x4ad   : > { %v1824_v4 = vadd.f32 %v1807_v53, %v1806_v17  ;;  %v1827_v19 = vadd.f32 %v1809_v42, %v1808_v40 }
 0x4ae   : > { %1819 = vadd.xlane.f32.xlu1 %v1818_v44  ;;  %1822 = vadd.xlane.f32.xlu0 %v1821_v18  ;;  %v1810_v35 = vmul.f32 %v4804_v16, %v4732_v15  ;;  %v1811_v27 = vmul.f32 %v4807_v56, %v4746_v37  ;;  %v1812_v55 = vmul.f32 %v4804_v16, %v1767_v34 }
 0x4af   : > { %v1813_v58 = vmul.f32 %v4807_v56, %v1768_v57  ;;  %v1814_v0 = vmul.f32 %v4804_v16, %v1769_v22  ;;  %v1815_v26 = vmul.f32 %v4807_v56, %v1770_v7  ;;  %v1816_v46 = vmul.f32 %v4804_v16, %v1771_v24  ;;  %v1914_v7 = vpop.permute.xlu1 %1913 }
 0x4b0   : > { %v1830_v61 = vadd.f32 %v1811_v27, %v1810_v35  ;;  %v1817_v43 = vmul.f32 %v4807_v56, %v1772_v47 }
 0x4b1   : > { %v1833_v29 = vadd.f32 %v1813_v58, %v1812_v55  ;;  %v1836_v15 = vadd.f32 %v1815_v26, %v1814_v0 }
 0x4b2   : > { %1825 = vadd.xlane.f32.xlu1 %v1824_v4  ;;  %1828 = vadd.xlane.f32.xlu0 %v1827_v19  ;;  %v1839_v37 = vadd.f32 %v1817_v43, %v1816_v46 }
 0x4b6   : > { %1831 = vadd.xlane.f32.xlu1 %v1830_v61  ;;  %1834 = vadd.xlane.f32.xlu0 %v1833_v29 }
 0x4ba   : > { %1837 = vadd.xlane.f32.xlu1 %v1836_v15  ;;  %1840 = vadd.xlane.f32.xlu0 %v1839_v37 }
 0x4cb   : > { %1921 = vbcast.lane.b32.xlu1 %v4554_v14, 272 }
 0x4cf   : > { %1925 = vbcast.lane.b32.xlu1 %v4554_v14, 280 }
 0x4d0   : > { %1917 = vbcast.lane.b32.xlu0 %v4554_v14, 264 }
 0x510   : > { %v1860_v57 = vpop.xlane.xlu1 %1859 }
 0x511   : > { %v1882_v21 = vadd.f32 1e-16, %v1860_v57 }
 0x513   : > { %3221 = vrsqrt.f32 %v1882_v21 }
 0x51d   : > { %v4822_v53 = vpop.eup %3221 }
 0x525   : > { %v1863_v22 = vpop.xlane.xlu0 %1862 }
 0x526   : > { %v1883_v36 = vadd.f32 1e-16, %v1863_v22 }
 0x527   : > { %v1872_v47 = vpop.xlane.xlu1 %1871 }
 0x528   : > { %v1886_v17 = vadd.f32 1e-16, %v1872_v47  ;;  %3223 = vrsqrt.f32 %v1883_v36 }
 0x529   : > { %v1866_v34 = vpop.xlane.xlu0 %1865 }
 0x52a   : > { %v1884_v40 = vadd.f32 1e-16, %v1866_v34  ;;  %3225 = vrsqrt.f32 %v1886_v17 }
 0x52c   : > { %v1878_v51 = vpop.xlane.xlu1 %1877  ;;  %3227 = vrsqrt.f32 %v1884_v40 }
 0x52d   : > { %v1869_v24 = vpop.xlane.xlu0 %1868  ;;  %v1888_v27 = vadd.f32 1e-16, %v1878_v51 }
 0x52e   : > { %v1885_v4 = vadd.f32 1e-16, %v1869_v24 }
 0x531   : > { %v1875_v6 = vpop.xlane.xlu0 %1874 }
 0x532   : > { %v1887_v55 = vadd.f32 1e-16, %v1875_v6  ;;  %v4825_v26 = vpop.eup %3223 }
 0x534   : > { %v4827_v43 = vpop.eup %3225 }
 0x535   : > { %v1881_v23 = vpop.xlane.xlu0 %1880 }
 0x536   : > { %v1889_v61 = vadd.f32 1e-16, %v1881_v23  ;;  %v4829_v15 = vpop.eup %3227 }
 0x53b   : > { %v1820_v42 = vpop.xlane.xlu1 %1819  ;;  %v1823_v44 = vpop.xlane.xlu0 %1822 }
 0x53c   : > { %v1898_v14 = vmul.f32 %v4822_v53, %v1820_v42  ;;  %v1899_v34 = vmul.f32 %v4825_v26, %v1823_v44 }
 0x53e   : > { %v1931_v18 = vadd.f32 %v1914_v7, %v1898_v14 }
 0x53f   : > { %v1826_v19 = vpop.xlane.xlu1 %1825  ;;  %v1829_v35 = vpop.xlane.xlu0 %1828 }
 0x540   : > { %3229 = vtanh.f32 %v1931_v18  ;;  %v1900_v57 = vmul.f32 %v4829_v15, %v1826_v19 }
 0x541   : > { %3231 = vrsqrt.f32 %v1885_v4 }
 0x542   : > { %3233 = vrsqrt.f32 %v1888_v27 }
 0x543   : > { %v1832_v58 = vpop.xlane.xlu1 %1831  ;;  %v1835_v0 = vpop.xlane.xlu0 %1834  ;;  %3235 = vrsqrt.f32 %v1887_v55 }
 0x544   : > { %v1902_v37 = vmul.f32 %v4827_v43, %v1832_v58  ;;  %3237 = vrsqrt.f32 %v1889_v61 }
 0x546   : > { %v1935_v23 = vadd.f32 %v1914_v7, %v1902_v37 }
 0x547   : > { %v1838_v29 = vpop.xlane.xlu1 %1837  ;;  %v1841_v46 = vpop.xlane.xlu0 %1840 }
 0x54a   : > { %v3230_v22 = vpop.eup %3229 }
 0x54b   : > { %1997 = vperm.xlu1 %3124, %v3230_v22   ;;  %v1922_v21 = vpop.permute.xlu1 %1921  ;;  %v1918_v24 = vpop.permute.xlu0 %1917 }
 0x54c   : > { %v1933_v47 = vadd.f32 %v1922_v21, %v1900_v57  ;;  %v1932_v6 = vadd.f32 %v1918_v24, %v1899_v34  ;;  %v3232_v51 = vpop.eup %3231  ;;  %v1956_v34 = vmul.f32 %v4822_v53, %v4581_v5  ;;  %v1957_v5 = vmul.f32 %v4825_v26, %v4682_v33 }
 0x54d   : > { %v1901_v36 = vmul.f32 %v3232_v51, %v1829_v35  ;;  %v3234_v17 = vpop.eup %3233 }
 0x54e   : > { %3239 = vtanh.f32 %v1933_v47  ;;  %v1904_v42 = vmul.f32 %v3234_v17, %v1838_v29  ;;  %v3236_v18 = vpop.eup %3235  ;;  %v1968_v33 = vmul.f32 %v3234_v17, %v4719_v11 }
 0x54f   : > { %v1926_v40 = vpop.permute.xlu1 %1925  ;;  %3241 = vtanh.f32 %v1932_v6  ;;  %v1903_v44 = vmul.f32 %v3236_v18, %v1835_v0  ;;  %v4834_v27 = vpop.eup %3237  ;;  %v5143_v6 = vld [vmem:[#allocation21_spill] sm:$0xff]  ;;  %v1966_v11 = vmul.f32 %v3236_v18, %v4739_v25 }
 0x550   : > { %v1934_v14 = vadd.f32 %v1926_v40, %v1901_v36  ;;  %3243 = vtanh.f32 %v1935_v23  ;;  %v1937_v4 = vadd.f32 %v1922_v21, %v1904_v42  ;;  %v1905_v55 = vmul.f32 %v4834_v27, %v1841_v46 }
 0x551   : > { %v1936_v19 = vadd.f32 %v1918_v24, %v1903_v44  ;;  %v1955_v46 = vmul.f32 %v4822_v53, %v4579_v10  ;;  %v1972_v23 = vmul.f32 %v1956_v34, %v5143_v6  ;;  %v1958_v53 = vmul.f32 %v4825_v26, %v4684_v32  ;;  %v5146_v32 = vld [vmem:[#allocation26_spill] sm:$0xff]  ;;  %v5149_v34 = vld [vmem:[#allocation27_spill] sm:$0xff] }
 0x552   : > { %3245 = vtanh.f32 %v1934_v14  ;;  %v1938_v7 = vadd.f32 %v1926_v40, %v1905_v55  ;;  %v5144_v40 = vld [vmem:[#allocation22_spill] sm:$0xff]  ;;  %v1963_v44 = vmul.f32 %v4827_v43, %v4698_v62  ;;  %v1960_v55 = vmul.f32 %v4829_v15, %v4672_v1 }
 0x553   : > { %3247 = vtanh.f32 %v1937_v4  ;;  %v1971_v47 = vmul.f32 %v1955_v46, %v4557_v41  ;;  %v1964_v4 = vmul.f32 %v4827_v43, %v4700_v12  ;;  %v1974_v26 = vmul.f32 %v1958_v53, %v5146_v32 }
 0x554   : > { %3249 = vtanh.f32 %v1936_v19  ;;  %v1959_v19 = vmul.f32 %v4829_v15, %v4670_v52  ;;  %v1965_v62 = vmul.f32 %v3236_v18, %v4734_v3  ;;  %v1961_v12 = vmul.f32 %v3232_v51, %v4704_v13  ;;  %v5148_v3 = vld [vmem:[#allocation24_spill] sm:$0xff] }
 0x555   : > { %3251 = vtanh.f32 %v1938_v7  ;;  %v5145_v7 = vld [vmem:[#allocation25_spill] sm:$0xff]  ;;  %v1962_v43 = vmul.f32 %v3232_v51, %v4709_v54 }
 0x556   : > { %v1981_v18 = vmul.f32 %v1965_v62, %v5145_v7 }
 0x558   : > { %v3240_v58 = vpop.eup %3239 }
 0x559   : > { %2007 = vperm.xlu1 %3124, %v3240_v58   ;;  %v3242_v35 = vpop.eup %3241  ;;  %v1967_v58 = vmul.f32 %v3234_v17, %v4717_v49  ;;  %v1979_v49 = vmul.f32 %v1963_v44, %v4557_v41  ;;  %v1980_v17 = vmul.f32 %v1964_v4, %v5143_v6  ;;  %v1969_v44 = vmul.f32 %v4834_v27, %v4762_v31 }
 0x55a   : > { %v3244_v61 = vpop.eup %3243  ;;  %2002 = vperm.xlu0 %3123, %v3242_v35   ;;  %v1973_v35 = vmul.f32 %v1957_v5, %v5145_v7 }
 0x55c   : > { %v3246_v29 = vpop.eup %3245 }
 0x55d   : > { %2017 = vperm.xlu1 %3124, %v3244_v61   ;;  %v3248_v0 = vpop.eup %3247 }
 0x55e   : > { %2012 = vperm.xlu0 %3123, %v3246_v29   ;;  %v3250_v37 = vpop.eup %3249  ;;  %v5147_v29 = vld [vmem:[#allocation23_spill] sm:$0xff] }
 0x55f   : > { %v3252_v22 = vpop.eup %3251  ;;  %v1983_v13 = vmul.f32 %v1967_v58, %v5147_v29 }
 0x561   : > { %2027 = vperm.xlu1 %3124, %v3248_v0   ;;  %v1975_v0 = vmul.f32 %v1959_v19, %v5147_v29 }
 0x562   : > { %2022 = vperm.xlu0 %3123, %v3250_v37   ;;  %v1976_v37 = vmul.f32 %v1960_v55, %v5148_v3 }
 0x566   : > { %2032 = vperm.xlu0 %3123, %v3252_v22   ;;  %v1984_v22 = vmul.f32 %v1968_v33, %v5148_v3 }
 0x5ca   : > { %v4841_v57 = vpop.permute.xlu1 %1997 }
 0x5cb   : > { %v2035_v21 = vmul.f32 %v4841_v57, %v4786_v60  ;;  %v2036_v24 = vmul.f32 %v4841_v57, %v4789_v59 }
 0x5cd   : > { %v2051_v36 = vmul.f32 %v2035_v21, %v4565_v45  ;;  %v2052_v42 = vmul.f32 %v2036_v24, %v5144_v40  ;;  %v1977_v21 = vmul.f32 %v1961_v12, %v5149_v34  ;;  %v1978_v24 = vmul.f32 %v1962_v43, %v4633_v28 }
 0x5cf   : > { %v2067_v10 = vadd.f32 %v2051_v36, %v1971_v47  ;;  %v2068_v14 = vadd.f32 %v2052_v42, %v1972_v23  ;;  %v1982_v36 = vmul.f32 %v1966_v11, %v5146_v32  ;;  %v5150_v42 = vld [vmem:[#allocation28_spill] sm:$0xff] }
 0x5d1   : > { %2124 = vst [vmem:[#allocation15] sm:$0xff] %v2067_v10  ;;  %2125 = vst [vmem:[#allocation15 + $0x8] sm:$0xff] %v2068_v14  ;;  %v2086_v10 = vrot.slane %v4841_v57, %v5150_v42 }
 0x5d8   : > { %v4866_v61 = vpop.permute.xlu1 %2007 }
 0x5d9   : > { %v2039_v52 = vmul.f32 %v4866_v61, %v4786_v60  ;;  %v2040_v1 = vmul.f32 %v4866_v61, %v4789_v59  ;;  %v2003_v15 = vpop.permute.xlu0 %2002  ;;  %v2095_v7 = vrot.slane %v4866_v61, %v4074_v20 }
 0x5da   : > { %v2037_v54 = vmul.f32 %v2003_v15, %v4786_v60  ;;  %v2038_v51 = vmul.f32 %v2003_v15, %v4789_v59  ;;  %v2090_v12 = vrot.slane %v2003_v15, %v3996_v8 }
 0x5db   : > { %v2055_v46 = vmul.f32 %v2039_v52, %v4637_v9  ;;  %v2056_v25 = vmul.f32 %v2040_v1, %v4639_v2 }
 0x5dc   : > { %v2018_v41 = vpop.permute.xlu1 %2017  ;;  %v2053_v47 = vmul.f32 %v2037_v54, %v4649_v38  ;;  %v2054_v6 = vmul.f32 %v2038_v51, %v4651_v63 }
 0x5dd   : > { %v2043_v23 = vmul.f32 %v2018_v41, %v4804_v16  ;;  %v2044_v14 = vmul.f32 %v2018_v41, %v4807_v56  ;;  %v2013_v5 = vpop.permute.xlu0 %2012  ;;  %v2071_v53 = vadd.f32 %v2055_v46, %v1975_v0  ;;  %v2072_v32 = vadd.f32 %v2056_v25, %v1976_v37 }
 0x5de   : > { %v2069_v4 = vadd.f32 %v2053_v47, %v1973_v35  ;;  %v2070_v19 = vadd.f32 %v2054_v6, %v1974_v26  ;;  %v2041_v58 = vmul.f32 %v2013_v5, %v4786_v60  ;;  %v2042_v57 = vmul.f32 %v2013_v5, %v4789_v59 }
 0x5df   : > { %v2059_v55 = vmul.f32 %v2043_v23, %v4565_v45  ;;  %v2060_v33 = vmul.f32 %v2044_v14, %v5144_v40  ;;  %2128 = vst [vmem:[#allocation15 + $0x20] sm:$0xff] %v2071_v53  ;;  %v2105_v26 = vrot.slane %v2018_v41, %v5150_v42  ;;  %2129 = vst [vmem:[#allocation15 + $0x28] sm:$0xff] %v2072_v32 }
 0x5e0   : > { %v2028_v62 = vpop.permute.xlu1 %2027  ;;  %2126 = vst [vmem:[#allocation15 + $0x10] sm:$0xff] %v2069_v4  ;;  %2127 = vst [vmem:[#allocation15 + $0x18] sm:$0xff] %v2070_v19  ;;  %v2057_v40 = vmul.f32 %v2041_v58, %v4680_v48  ;;  %v2058_v59 = vmul.f32 %v2042_v57, %v4686_v50  ;;  %v1970_v46 = vmul.f32 %v4834_v27, %v4770_v39 }
 0x5e1   : > { %v2075_v31 = vadd.f32 %v2059_v55, %v1979_v49  ;;  %v2047_v35 = vmul.f32 %v2028_v62, %v4804_v16  ;;  %v2048_v45 = vmul.f32 %v2028_v62, %v4807_v56  ;;  %v2076_v60 = vadd.f32 %v2060_v33, %v1980_v17  ;;  %v2023_v61 = vpop.permute.xlu0 %2022 }
 0x5e2   : > { %v2045_v1 = vmul.f32 %v2023_v61, %v4804_v16  ;;  %v2046_v49 = vmul.f32 %v2023_v61, %v4807_v56  ;;  %v2114_v11 = vrot.slane %v2028_v62, %v4074_v20  ;;  %v2109_v15 = vrot.slane %v2023_v61, %v3996_v8 }
 0x5e3   : > { %2132 = vst [vmem:[#allocation15 + $0x40] sm:$0xff] %v2075_v31  ;;  %v2063_v43 = vmul.f32 %v2047_v35, %v4637_v9  ;;  %v2064_v52 = vmul.f32 %v2048_v45, %v4639_v2  ;;  %2133 = vst [vmem:[#allocation15 + $0x48] sm:$0xff] %v2076_v60  ;;  %v2073_v17 = vadd.f32 %v2057_v40, %v1977_v21 }
 0x5e4   : > { %v2074_v29 = vadd.f32 %v2058_v59, %v1978_v24  ;;  %v2061_v37 = vmul.f32 %v2045_v1, %v4649_v38  ;;  %v2062_v54 = vmul.f32 %v2046_v49, %v4651_v63  ;;  %v2091_v9 = vsel %vm846_vm2, %v2090_v12, %v2086_v10 }
 0x5e5   : > { %v2079_v0 = vadd.f32 %v2063_v43, %v1983_v13  ;;  %v2080_v3 = vadd.f32 %v2064_v52, %v1984_v22  ;;  %v2100_v2 = vrot.slane %v2013_v5, %v4088_v30  ;;  %v2110_v51 = vsel %vm846_vm2, %v2109_v15, %v2105_v26  ;;  %2130 = vst [vmem:[#allocation15 + $0x30] sm:$0xff] %v2073_v17  ;;  %v2033_v8 = vpop.permute.xlu0 %2032 }
 0x5e6   : > { %2131 = vst [vmem:[#allocation15 + $0x38] sm:$0xff] %v2074_v29  ;;  %v2077_v20 = vadd.f32 %v2061_v37, %v1981_v18  ;;  %v2078_v13 = vadd.f32 %v2062_v54, %v1982_v36  ;;  %v2049_v38 = vmul.f32 %v2033_v8, %v4804_v16  ;;  %v2050_v63 = vmul.f32 %v2033_v8, %v4807_v56  ;;  %v2148_v36 = vld [vmem:[%s5062_s5 + $0x18] sm:$0xff] (!%p2851_p4)  ;;  %v2852_v54 = vld [vmem:[%s5063_s6] ss:$0 sm:$0xff] (!%p2851_p4) }
 0x5e7   : > { %2136 = vst [vmem:[#allocation15 + $0x60] sm:$0xff] %v2079_v0  ;;  %2137 = vst [vmem:[#allocation15 + $0x68] sm:$0xff] %v2080_v3  ;;  %v2119_v22 = vrot.slane %v2033_v8, %v4088_v30  ;;  %v2096_v41 = vsel %vm853_vm3, %v2095_v7, %v2091_v9  ;;  %v1985_v25 = vmul.f32 %v1969_v44, %v5149_v34  ;;  %2143 = sbr.rel (%p2851_p4) target bundleno = 1767 (0x6e7), region = 76  ;;  %v3524_v34 = vmov (!%p2851_p4), 0.0|0.0  }
 0x5e8   : > { %2134 = vst [vmem:[#allocation15 + $0x50] sm:$0xff] %v2077_v20  ;;  %2135 = vst [vmem:[#allocation15 + $0x58] sm:$0xff] %v2078_v13  ;;  %v2115_v39 = vsel %vm853_vm3, %v2114_v11, %v2110_v51  ;;  %v2065_v27 = vmul.f32 %v2049_v38, %v4680_v48  ;;  %v2101_v21 = vsel %vm860_vm4, %v2100_v2, %v2096_v41  ;;  %v2145_v48 = vld [vmem:[%s5062_s5] sm:$0xff] (!%p2851_p4)  ;;  %2959 = vmatprep.subr.bf16.mxu1 (!%p2851_p4), %v3524_v34  ;;  %v3526_v5 = vmov (!%p2851_p4), 0.0  }
 0x5e9   : > { %v1986_v18 = vmul.f32 %v1970_v46, %v4633_v28  ;;  %v2066_v16 = vmul.f32 %v2050_v63, %v4686_v50  ;;  %v2120_v56 = vsel %vm860_vm4, %v2119_v22, %v2115_v39  ;;  %v2146_v28 = vld [vmem:[%s5062_s5 + $0x8] sm:$0xff] (!%p2851_p4)  ;;  %v2147_v50 = vld [vmem:[%s5062_s5 + $0x10] sm:$0xff] (!%p2851_p4)  ;;  %2977 = vmatprep.subr.bf16.mxu0 (!%p2851_p4), %v3524_v34  ;;  %v2161_v6 = vand.u32 (!%p2851_p4), 4294901760, %v2145_v48  ;;  %2901 = vmatprep.mubr.msk.f32.mxu1 (!%p2851_p4), %vm3525_vm6, %v3526_v5 }
 0x5ea   : > { %v2081_v24 = vadd.f32 %v2065_v27, %v1985_v25  ;;  %v2121_v30 = vsel %vm881_vm5, %v2120_v56, %v2101_v21  ;;  %v2164_v23 = vand.u32 (!%p2851_p4), 4294901760, %v2146_v28  ;;  %v2167_v42 = vand.u32 (!%p2851_p4), 4294901760, %v2147_v50  ;;  %2934 = vmatprep.mubr.msk.f32.mxu0 (!%p2851_p4), %vm3525_vm6, %v3526_v5 }
 0x5eb   : > { %v2082_v47 = vadd.f32 %v2066_v16, %v1986_v18  ;;  %2123 = vst.msk [vmem:[#allocation13] sm:$0x3] %vm482_vm1, %v2121_v30  ;;  %v2170_v14 = vand.u32 (!%p2851_p4), 4294901760, %v2148_v36  ;;  %v2241_v44 = vsub.f32 (!%p2851_p4), %v2145_v48, %v2161_v6 }
 0x5ec   : > { %2138 = vst [vmem:[#allocation15 + $0x70] sm:$0xff] %v2081_v24  ;;  %v2960_v53 = vpack.c.bf16 (!%p2851_p4), %v2164_v23, %v2161_v6  ;;  %v2248_v4 = vsub.f32 (!%p2851_p4), %v2146_v28, %v2164_v23  ;;  %v2255_v19 = vsub.f32 (!%p2851_p4), %v2147_v50, %v2167_v42 }
 0x5ed   : > { %2139 = vst [vmem:[#allocation15 + $0x78] sm:$0xff] %v2082_v47  ;;  %v2963_v55 = vpack.c.bf16 (!%p2851_p4), %v2170_v14, %v2167_v42  ;;  %v2262_v58 = vsub.f32 (!%p2851_p4), %v2148_v36, %v2170_v14  ;;  %v2242_v57 = vand.u32 (!%p2851_p4), 4294901760, %v2241_v44 }
 0x5ee   : > { %2961 = vmatpush3.bf16.msra.mxu1 %v2960_v53  ;;  %2979 = vmatpush3.bf16.msra.mxu0 %v2960_v53  ;;  %v2249_v32 = vand.u32 4294901760, %v2248_v4  ;;  %v2256_v62 = vand.u32 4294901760, %v2255_v19  ;;  %v2972_v0 = vpack.c.bf16 %v2248_v4, %v2241_v44 }
 0x5ef   : > { %2962 = vmatprep.subr.bf16.mxu1 %v3524_v34  ;;  %2980 = vmatprep.subr.bf16.mxu0 %v3524_v34  ;;  %v2263_v12 = vand.u32 4294901760, %v2262_v58  ;;  %v2243_v35 = vsub.f32 %v2241_v44, %v2242_v57  ;;  %v2975_v3 = vpack.c.bf16 %v2262_v58, %v2255_v19 }
 0x5f0   : > { %v2250_v45 = vsub.f32 %v2248_v4, %v2249_v32  ;;  %v2257_v60 = vsub.f32 %v2255_v19, %v2256_v62  ;;  %v2984_v43 = vpack.c.bf16 %v2249_v32, %v2242_v57 }
 0x5f1   : > { %v2264_v26 = vsub.f32 %v2262_v58, %v2263_v12  ;;  %v2244_v40 = vand.u32 4294901760, %v2243_v35  ;;  %v2987_v17 = vpack.c.bf16 %v2263_v12, %v2256_v62 }
 0x5f2   : > { %v2144_v10 = vld [vmem:[#allocation13] sm:$0x3]  ;;  %2964 = vmatpush3.bf16.msra.mxu1 %v2963_v55  ;;  %2982 = vmatpush3.bf16.msra.mxu0 %v2963_v55  ;;  %v2251_v59 = vand.u32 4294901760, %v2250_v45  ;;  %v2258_v49 = vand.u32 4294901760, %v2257_v60 }
 0x5f3   : > { %v2158_v7 = vsel %vm2156_vm7, %v2144_v10, 0  ;;  %2965 = vmatprep.subr.bf16.mxu1 %v3524_v34  ;;  %2983 = vmatprep.subr.bf16.mxu0 %v3524_v34  ;;  %v2265_v11 = vand.u32 4294901760, %v2264_v26 }
 0x5f4   : > { %v2229_v33 = vand.u32 4294901760, %v2158_v7  ;;  %v2966_v1 = vpack.c.bf16 %v2251_v59, %v2244_v40 }
 0x5f5   : > { %v2969_v29 = vpack.c.bf16 %v2265_v11, %v2258_v49 }
 0x5f6   : > { %v2230_v31 = vsub.f32 %v2158_v7, %v2229_v33 }
 0x5f8   : > { %v2231_v61 = vand.u32 4294901760, %v2230_v31 }
 0x5fa   : > { %v2232_v52 = vsub.f32 %v2230_v31, %v2231_v61  ;;  %2935 = vmatmul.mubr.f32.vlgmr.msra.gmra.mrb[0].mxu0 %v2231_v61 }
 0x5fb   : > { %2985 = vmatpush3.bf16.msra.mxu0 %v2984_v43  ;;  %2945 = vmatprep.mubr.msk.f32.mxu0 %vm3525_vm6, %v3526_v5 }
 0x5fc   : > { %v2233_v15 = vand.u32 4294901760, %v2232_v52  ;;  %2986 = vmatprep.subr.bf16.mxu0 %v3524_v34 }
 0x5fe   : > { %2902 = vmatmul.mubr.f32.vlgmr.msra.gmra.mrb[0].mxu1 %v2233_v15 }
 0x5ff   : > { %2967 = vmatpush3.bf16.msra.mxu1 %v2966_v1  ;;  %2912 = vmatprep.mubr.msk.f32.mxu1 %vm3525_vm6, %v3526_v5 }
 0x600   : > { %2968 = vmatprep.subr.bf16.mxu1 %v3524_v34  ;;  %2988 = vmatpush3.bf16.msra.mxu0 %v2987_v17 }
 0x601   : > { %2989 = vmatprep.subr.bf16.mxu0 %v3524_v34 }
 0x603   : > { %2970 = vmatpush3.bf16.msra.mxu1 %v2969_v29  ;;  %2946 = vmatmul.mubr.f32.vlgmr.msra.gmra.mrb[0].mxu0 %v2229_v33 }
 0x604   : > { %2971 = vmatprep.subr.bf16.mxu1 %v3524_v34  ;;  %2991 = vmatpush3.bf16.msra.mxu0 %v2960_v53 }
 0x605   : > { %2992 = vmatprep.subr.bf16.mxu0 %v3524_v34  ;;  %2956 = vmatprep.mubr.msk.f32.mxu0 %vm3525_vm6, %v3526_v5 }
 0x606   : > { %2913 = vmatmul.mubr.f32.vlgmr.msra.gmra.mrb[0].mxu1 %v2229_v33 }
 0x607   : > { %2973 = vmatpush3.bf16.msra.mxu1 %v2972_v0  ;;  %2923 = vmatprep.mubr.msk.f32.mxu1 %vm3525_vm6, %v3526_v5 }
 0x608   : > { %2974 = vmatprep.subr.bf16.mxu1 %v3524_v34  ;;  %2994 = vmatpush3.bf16.msra.mxu0 %v2963_v55 }
 0x60b   : > { %2976 = vmatpush3.bf16.msra.mxu1 %v2975_v3  ;;  %2957 = vmatmul.mubr.f32.vlgmr.msra.gmra.mrb[0].mxu0 %v2229_v33 }
 0x60e   : > { %2924 = vmatmul.mubr.f32.vlgmr.msra.gmra.mrb[0].mxu1 %v2230_v31 }
 0x6de   : > { %v2641_v37 = vpop.f32.mrb[0].mxu0 }
 0x6df   : > { %v2958_v9 = vpop.f32.mrb[1].mxu0 }
 0x6e1   : > { %v2406_v2 = vpop.f32.mrb[0].mxu1 }
 0x6e2   : > { %v2995_v51 = vadd.f32 %v2852_v54, %v2406_v2  ;;  %v2925_v46 = vpop.f32.mrb[1].mxu1 }
 0x6e4   : > { %v2996_v8 = vadd.f32 %v2995_v51, %v2641_v37 }
 0x6e6   : > { %2646 = vst.msk [vmem:[#allocation12] sm:$0x3] %vm2645_vm8, %v2996_v8 }
 0x6e7 PF: > { %s5151_s21 = sadd.s32 4294967295, %s3512_s20   ;;  %s3527_s22 = smov [#allocation13]  }
 0x6e8   : > { %p4973_p5 = scmp.eq.s32.totalorder %s5151_s21, 1  ;;  %s2669_s23 = sshll.u32 %s3527_s22, 4  ;;  %s2670_s23 = int_to_ptr.vmem [resolvable:$true] %s2669_s23 }
 0x6e9   : > { %s3368_s24 = scalar_lea.vmem %s2670_s23, 32  ;;  %p3375_p0 = scmp.lt.s32.totalorder %s2670_s23, %s2670_s23 }
 0x6ea   : > { %p3369_p9 = scmp.ne.s32.totalorder %s2670_s23, %s3368_s24  ;;  %p3376_p2 = scmp.lt.s32.totalorder %s3368_s24, %s3368_s24 }
 0x6ec   : > { %p3370_p12 = pnand %p3369_p9, %p4973_p5  ;;  %p3377_p6 = por %p3376_p2, %p3375_p0 }
 0x6ee   : > { %p3371_p13 = pneg %p3370_p12 }
 0x6f0   : > { %p3378_p10 = pnand %p3377_p6, %p3371_p13 }
 0x6f2   : > { %3381 = shalt.err (!%p3378_p10)
}
 0x6f3   : > { %s5153_s13 = sld [smem:[#allocation30_spill]] }
 0x6f9   : > { %s3382_s26 = scalar_lea.hbm %s5153_s13, 32 }
 0x6fa   : > { %p3383_p1 = scmp.ne.s32.totalorder %s5153_s13, %s3382_s26  ;;  %p3388_p11 = scmp.lt.u32.totalorder %s3382_s26, %s5153_s13 }
 0x6fc   : > { %p3384_p3 = pnand %p3383_p1, %p4973_p5 }
 0x6fe   : > { %p3385_p8 = pneg %p3384_p3 }
 0x700   : > { %p3390_p7 = pnand %p3388_p11, %p3385_p8 }
 0x702   : > { %3393 = shalt.err (!%p3390_p7)
}
 0x703   : > { %3022 = dma.vmem_to_hbm [thread:$0]  (%p4973_p5), %s2670_s23, 32, %s5153_s13, [#allocation14]  }
 0x704   : > { %s3528_s9 = smov [#allocation12]   ;;  %s3529_s11 = smov [#allocation15]  }
 0x705   : > { %s2656_s25 = sshll.u32 %s3528_s9, 4  ;;  %s2683_s21 = sshll.u32 %s3529_s11, 4  ;;  %s2657_s25 = int_to_ptr.vmem [resolvable:$true] %s2656_s25  ;;  %s2684_s21 = int_to_ptr.vmem [resolvable:$true] %s2683_s21 }
 0x706   : > { %s3394_s22 = scalar_lea.vmem %s2657_s25, 32  ;;  %p3401_p13 = scmp.lt.s32.totalorder %s2657_s25, %s2657_s25 }
 0x707   : > { %p3395_p4 = scmp.ne.s32.totalorder %s2657_s25, %s3394_s22  ;;  %p3402_p0 = scmp.lt.s32.totalorder %s3394_s22, %s3394_s22 }
 0x709   : > { %p3396_p9 = pnand %p3395_p4, %p4973_p5  ;;  %p3403_p2 = por %p3402_p0, %p3401_p13 }
 0x70b   : > { %p3397_p12 = pneg %p3396_p9 }
 0x70d   : > { %p3404_p6 = pnand %p3403_p2, %p3397_p12 }
 0x70f   : > { %3407 = shalt.err (!%p3404_p6)
}
 0x710   : > { %s5154_s30 = sld [smem:[#allocation29_spill]] }
 0x716   : > { %s3408_s23 = scalar_lea.hbm %s5154_s30, 32 }
 0x717   : > { %p3409_p10 = scmp.ne.s32.totalorder %s5154_s30, %s3408_s23  ;;  %p3414_p8 = scmp.lt.u32.totalorder %s3408_s23, %s5154_s30 }
 0x719   : > { %p3410_p1 = pnand %p3409_p10, %p4973_p5 }
 0x71b   : > { %p3411_p3 = pneg %p3410_p1 }
 0x71d   : > { %p3416_p11 = pnand %p3414_p8, %p3411_p3 }
 0x71f   : > { %3419 = shalt.err (!%p3416_p11)
}
 0x720   : > { %3020 = dma.vmem_to_hbm [thread:$0]  (%p4973_p5), %s2657_s25, 32, %s5154_s30, [#allocation6]  }
 0x721   : > { %s3420_s18 = scalar_lea.vmem %s2684_s21, 2048  ;;  %p3427_p12 = scmp.lt.s32.totalorder %s2684_s21, %s2684_s21 }
 0x722   : > { %p3421_p7 = scmp.ne.s32.totalorder %s2684_s21, %s3420_s18  ;;  %p3428_p13 = scmp.lt.s32.totalorder %s3420_s18, %s3420_s18 }
 0x724   : > { %p3422_p4 = pnand %p3421_p7, %p4973_p5  ;;  %p3429_p0 = por %p3428_p13, %p3427_p12 }
 0x726   : > { %p3423_p9 = pneg %p3422_p4 }
 0x728   : > { %p3430_p2 = pnand %p3429_p0, %p3423_p9 }
 0x72a   : > { %3433 = shalt.err (!%p3430_p2)
}
 0x72b   : > { %s5155_s22 = sld [smem:[#allocation31_spill]] }
 0x731   : > { %s3434_s24 = scalar_lea.hbm %s5155_s22, 2048 }
 0x732   : > { %p3435_p6 = scmp.ne.s32.totalorder %s5155_s22, %s3434_s24  ;;  %p3440_p3 = scmp.lt.u32.totalorder %s3434_s24, %s5155_s22 }
 0x734   : > { %p3436_p10 = pnand %p3435_p6, %p4973_p5 }
 0x736   : > { %p3437_p1 = pneg %p3436_p10 }
 0x738   : > { %p3442_p8 = pnand %p3440_p3, %p3437_p1 }
 0x73a   : > { %3445 = shalt.err (!%p3442_p8)
}
 0x73b   : > { %s3530_s27 = smov 256   ;;  %s3531_s17 = smov 16  }
 0x73c   : > { %3024 = dma.vmem_to_hbm [thread:$0]  (%p4973_p5), %s2684_s21, 2048, %s5155_s22, [#allocation14], %s3530_s27, %s3530_s27, %s3531_s17  }
 0x73d   : > { %3483 = dma.done.wait (%p4973_p5), [#allocation6], 32  }
 0x73e   : > { %3485 = vsyncadd (%p4973_p5), [#allocation6], 4294967264 }
 0x73f   : > { %3487 = dma.done.wait (%p4973_p5), [#allocation14], 2080  }
 0x740   : > { %3489 = vsyncadd (%p4973_p5), [#allocation14], 4294965216 }
 0x741 PF: > { %s29_s20 = sadd.s32 1, %s3512_s20   ;;  %s5156_s17 = smov %s3496_s7 }
 0x742   : > { %p26_p11 = scmp.ge.s32.totalorder %s29_s20, 4   ;;  %s5157_s7 = smov %s3500_s8 }
 0x743   : > { %s5158_s8 = smov %s3747_s12  ;;  %s5159_s18 = smov %s3508_s19 }
 0x744   : > { %s5160_s19 = smov %s5162_s10  ;;  %28 = sbr.rel (!%p26_p11) target bundleno = 12 (0xc), region = 134 }
 0x74b   :  { %2707 = vsyncpa [#allocation5], 1 }
 0x74c   :  { %2709 = vsyncpa [#allocation5 + $0x1], 1 }
 0x74d   :  { %2710 = vsyncpa [#allocation8], 1 }
 0x74e   :  { %2711 = vsyncpa [#allocation11], 1 }
 0x74f   :  { %2712 = vsyncpa [#allocation6], 1 }
 0x750   :  { %2714 = vsyncpa [#allocation6 + $0x1], 1 }
 0x751   :  { %2715 = vsyncpa [#allocation14], 1 }
 0x752   :  { %2716 = vsyncmov [#allocation3] }
 0x755   :  { %s2717_s16 = vpop.sfrf %2716 }
 0x756   :  { %p2861_p5 = scmp.ne.s32.totalorder %s2717_s16, 0 }
 0x758   :  { %2721 = shalt.err (%p2861_p5)  }

// kernel: tpu_custom_call.1
= control target key start
LH: loop header
LB: loop body
LE: loop exit
PB: predicated region body
PF: predicated region fallthrough
CT: control target
= control target key end

     0   :  { %s5057_s0 = inlined_call_operand.hbm [shape: f32[8,2,128], index: 0, kind: input, shape index: {}]   ;;  %s5058_s1 = inlined_call_operand.hbm [shape: f32[32,256], index: 1, kind: input, shape index: {}]   ;;  %s5059_s2 = inlined_call_operand.hbm [shape: f32[32,256], index: 2, kind: input, shape index: {}]   ;;  %s5060_s3 = inlined_call_operand.hbm [shape: f32[32,256], index: 3, kind: input, shape index: {}]   ;;  %s5061_s4 = inlined_call_operand.vmem [shape: f32[1,32], index: 4, kind: input, shape index: {}]   ;;  %s5062_s5 = inlined_call_operand.vmem [shape: f32[32,8], index: 5, kind: input, shape index: {}]   ;;  %s5063_s6 = inlined_call_operand.vmem [shape: f32[1,8], index: 6, kind: input, shape index: {}]   ;;  %s5064_s7 = inlined_call_operand.vmem [shape: f32[2,32], index: 7, kind: input, shape index: {}]   ;;  %s5065_s8 = inlined_call_operand.vmem [shape: f32[1,32,256], index: 8, kind: input, shape index: {}]   ;;  %s5066_s9 = inlined_call_operand.hbm [shape: f32[2,8], index: 9, kind: output, shape index: {0}]   ;;  %s5067_s10 = inlined_call_operand.hbm [shape: f32[2,32], index: 10, kind: output, shape index: {1}]   ;;  %s5068_s11 = inlined_call_operand.hbm [shape: f32[2,32,256], index: 11, kind: output, shape index: {2}]  }
   0x1   :  { %5108 = sst [smem:[#allocation29_spill]] %s5066_s9 }
   0x2   :  { %5109 = sst [smem:[#allocation30_spill]] %s5067_s10 }
   0x3   :  { %5110 = sst [smem:[#allocation31_spill]] %s5068_s11 }
   0x4   :  { %17 = vsyncpa [#allocation5], 0 }
   0x5   :  { %19 = vsyncpa [#allocation5 + $0x1], 0 }
   0x6   :  { %20 = vsyncpa [#allocation8], 0 }
   0x7   :  { %21 = vsyncpa [#allocation11], 0 }
   0x8   :  { %22 = vsyncpa [#allocation6], 0 }
   0x9   :  { %23 = vsyncpa [#allocation14], 0  ;;  %s3592_s17 = smov 0   ;;  %s3594_s7 = smov 0  }
   0xa   :  { %s3596_s8 = smov 0   ;;  %s3598_s18 = smov 0  }
   0xb   :  { %s3600_s19 = smov 0   ;;  %s3602_s20 = smov 0  }
   0xc LB: > { %s5071_s21 = sadd.s32 4294967295, %s3512_s20   ;;  %p63_p0 = scmp.ne.s32.totalorder %s3496_s7, %s3492_s17  ;;  %s3512_s20 = sphi %s3602_s20, %s29_s20   ;;  %s3508_s19 = sphi %s3600_s19, %s5160_s19   ;;  %s3504_s18 = sphi %s3598_s18, %s5159_s18   ;;  %s3500_s8 = sphi %s3596_s8, %s5158_s8   ;;  %s3496_s7 = sphi %s3594_s7, %s5157_s7   ;;  %s3492_s17 = sphi %s3592_s17, %s5156_s17  }
   0xd   : > { %p3624_p1 = scmp.eq.s32.totalorder %s5071_s21, 0  ;;  %p2825_p2 = scmp.ge.s32.totalorder %s3512_s20, 1 }
   0xe   : > { %p304_p3 = scmp.lt.s32.totalorder %s3512_s20, 3  ;;  %s3514_s25 = smov [#allocation7]  }
   0xf   : > { %s5111_s22 = scalar_select %p3624_p1, 1, 0 }
  0x10   : > { %p3632_p4 = por %p3624_p1, %p63_p0  ;;  %p3636_p5 = pnand %p2825_p2, %p304_p3 }
  0x11   : > { %s316_s26 = sshll.u32 %s3514_s25, 4  ;;  %s3515_s28 = smov [#allocation9]   ;;  %s3640_s26 = int_to_ptr.vmem [resolvable:$true] %s316_s26 }
  0x12   : > { %s5112_s23 = scalar_select %p3632_p4, 1, 0 }
  0x13   : > { %s5113_s24 = scalar_select %p3636_p5, 1, 0 }
  0x14   : > { %p3031_p6 = pneg %p3636_p5  ;;  %s329_s29 = sshll.u32 %s3515_s28, 4  ;;  %s3650_s29 = int_to_ptr.vmem [resolvable:$true] %s329_s29 }
  0x15   : > { %s3516_s30 = smov [#allocation10]   ;;  %s3254_s15 = scalar_lea.hbm %s5058_s1, 1024 }
  0x16   : > { %p3646_p7 = pnand %p3031_p6, %p3624_p1  ;;  %s3652_s12 = sshll.u32 %s3516_s30, 4  ;;  %s343_s12 = int_to_ptr.vmem [resolvable:$true] %s3652_s12 }
  0x17   : > { %p3255_p8 = scmp.ne.s32.totalorder %s5058_s1, %s3254_s15  ;;  %p3261_p12 = scmp.lt.u32.totalorder %s3254_s15, %s5058_s1 }
  0x18   : > { %p3662_p9 = pneg %p3646_p7 }
  0x1a   : > { %p3257_p10 = pnand %p3662_p9, %p3255_p8 }
  0x1c   : > { %p3258_p11 = pneg %p3257_p10 }
  0x1e   : > { %p3263_p13 = pnand %p3261_p12, %p3258_p11 }
  0x20   : > { %3266 = shalt.err (!%p3263_p13)
}
  0x21   : > { %s3267_s13 = scalar_lea.vmem %s3640_s26, 1024  ;;  %p3275_p6 = scmp.lt.s32.totalorder %s3640_s26, %s3640_s26 }
  0x22   : > { %p3268_p0 = scmp.ne.s32.totalorder %s3640_s26, %s3267_s13  ;;  %p3276_p1 = scmp.lt.s32.totalorder %s3267_s13, %s3267_s13 }
  0x24   : > { %p3270_p2 = pnand %p3268_p0, %p3662_p9  ;;  %p3277_p8 = por %p3276_p1, %p3275_p6 }
  0x26   : > { %p3271_p3 = pneg %p3270_p2 }
  0x28   : > { %p3278_p10 = pnand %p3277_p8, %p3271_p3 }
  0x2a   : > { %3281 = shalt.err (!%p3278_p10)
}
  0x2b   : > { %s3517_s14 = smov 256   ;;  %s3518_s15 = smov 16  }
  0x2c   : > { %3034 = dma.hbm_to_vmem [thread:$0]  (!%p3646_p7), %s5058_s1, 1024, %s3640_s26, [#allocation8], %s3517_s14, %s3517_s14, %s3518_s15  }
  0x2d   : > { %s3282_s13 = scalar_lea.hbm %s5059_s2, 1024 }
  0x2e   : > { %p3283_p1 = scmp.ne.s32.totalorder %s5059_s2, %s3282_s13  ;;  %p3289_p13 = scmp.lt.u32.totalorder %s3282_s13, %s5059_s2 }
  0x30   : > { %p3285_p11 = pnand %p3283_p1, %p3662_p9 }
  0x32   : > { %p3286_p12 = pneg %p3285_p11 }
  0x34   : > { %p3291_p0 = pnand %p3289_p13, %p3286_p12 }
  0x36   : > { %3294 = shalt.err (!%p3291_p0)
}
  0x37   : > { %s3295_s26 = scalar_lea.vmem %s3650_s29, 1024  ;;  %p3303_p8 = scmp.lt.s32.totalorder %s3650_s29, %s3650_s29 }
  0x38   : > { %p3296_p2 = scmp.ne.s32.totalorder %s3650_s29, %s3295_s26  ;;  %p3304_p10 = scmp.lt.s32.totalorder %s3295_s26, %s3295_s26 }
  0x3a   : > { %p3298_p3 = pnand %p3296_p2, %p3662_p9  ;;  %p3305_p1 = por %p3304_p10, %p3303_p8 }
  0x3c   : > { %p3299_p6 = pneg %p3298_p3 }
  0x3e   : > { %p3306_p11 = pnand %p3305_p1, %p3299_p6 }
  0x40   : > { %3309 = shalt.err (!%p3306_p11)
}
  0x41   : > { %3037 = dma.hbm_to_vmem [thread:$0]  (!%p3646_p7), %s5059_s2, 1024, %s3650_s29, [#allocation8], %s3517_s14, %s3517_s14, %s3518_s15  }
  0x42   : > { %s3310_s16 = scalar_lea.hbm %s5060_s3, 1024 }
  0x43   : > { %p3311_p12 = scmp.ne.s32.totalorder %s5060_s3, %s3310_s16  ;;  %p3317_p2 = scmp.lt.u32.totalorder %s3310_s16, %s5060_s3 }
  0x45   : > { %p3313_p13 = pnand %p3311_p12, %p3662_p9 }
  0x47   : > { %p3314_p0 = pneg %p3313_p13 }
  0x49   : > { %p3319_p3 = pnand %p3317_p2, %p3314_p0 }
  0x4b   : > { %3322 = shalt.err (!%p3319_p3)
}
  0x4c   : > { %s3323_s26 = scalar_lea.vmem %s343_s12, 1024  ;;  %p3331_p1 = scmp.lt.s32.totalorder %s343_s12, %s343_s12 }
  0x4d   : > { %p3324_p6 = scmp.ne.s32.totalorder %s343_s12, %s3323_s26  ;;  %p3332_p11 = scmp.lt.s32.totalorder %s3323_s26, %s3323_s26 }
  0x4f   : > { %p3326_p8 = pnand %p3324_p6, %p3662_p9  ;;  %p3333_p4 = por %p3332_p11, %p3331_p1 }
  0x51   : > { %p3327_p10 = pneg %p3326_p8 }
  0x53   : > { %p3334_p5 = pnand %p3333_p4, %p3327_p10 }
  0x55   : > { %3337 = shalt.err (!%p3334_p5)
}
  0x56   : > { %3040 = dma.hbm_to_vmem [thread:$0]  (!%p3646_p7), %s5060_s3, 1024, %s343_s12, [#allocation11], %s3517_s14, %s3517_s14, %s3518_s15  }
  0x57   : > { %s50_s25 = sadd.s32 1, %s3500_s8  ;;  %s38_s10 = sadd.s32 1, %s3508_s19 }
  0x58   : > { %p57_p4 = scmp.ne.s32.totalorder %s3500_s8, %s3496_s7  ;;  %p39_p5 = scmp.ge.s32.totalorder %s38_s10, 2 }
  0x59   : > { %p58_p9 = scmp.eq.s32.totalorder %s3512_s20, 0  ;;  %p3048_p12 = scmp.lt.s32.totalorder %s3512_s20, 2 }
  0x5a   : > { %s372_s27 = sand.u32 1, %s3500_s8   ;;  %s5162_s10 = smov (%p39_p5, %s38_s10), 0 }
  0x5b   : > { %p59_p13 = por %p58_p9, %p57_p4  ;;  %s45_s11 = ssub.s32 %s3508_s19, %s5162_s10 }
  0x5c   : > { %s2831_s21 = sshll.u32 %s372_s27, 3  ;;  %p48_p0 = scmp.eq.s32.totalorder %s45_s11, 0 }
  0x5d   : > { %s2862_s16 = sshll.u32 %s3508_s19, 7  ;;  %s376_s17 = scalar_lea.vmem [#allocation4], %s2831_s21 }
  0x5e   : > { %s384_s28 = sshll.u32 %s376_s17, 4  ;;  %s3752_s30 = scalar_lea.hbm %s5057_s0, %s2862_s16  ;;  %s3754_s28 = int_to_ptr.vmem [resolvable:$true] %s384_s28 }
  0x5f   : > { %s3747_s12 = scalar_select %p48_p0, %s3500_s8, %s50_s25  }
  0x60   : > { %p3758_p7 = pnand %p3048_p12, %p59_p13  ;;  %s3762_s26 = scalar_lea.sflag [#allocation5], %s372_s27 }
  0x61   : > { %s3338_s29 = scalar_lea.hbm %s3752_s30, 128  ;;  %s3343_s11 = scalar_lea.hbm %s5057_s0, 256 }
  0x62   : > { %p3339_p2 = scmp.ne.s32.totalorder %s3752_s30, %s3338_s29  ;;  %p3340_p3 = pneg %p3758_p7 }
  0x63   : > { %p3344_p10 = scmp.lt.u32.totalorder %s3752_s30, %s5057_s0  ;;  %p3345_p1 = scmp.lt.u32.totalorder %s3343_s11, %s3338_s29 }
  0x64   : > { %p3341_p6 = pnand %p3340_p3, %p3339_p2  ;;  %p3347_p4 = scmp.lt.u32.totalorder %s3338_s29, %s3752_s30 }
  0x65   : > { %p3346_p11 = por %p3345_p1, %p3344_p10 }
  0x66   : > { %p3342_p8 = pneg %p3341_p6 }
  0x67   : > { %p3348_p5 = por %p3347_p4, %p3346_p11 }
  0x69   : > { %p3349_p9 = pnand %p3348_p5, %p3342_p8 }
  0x6b   : > { %3352 = shalt.err (!%p3349_p9)
}
  0x6c   : > { %s3353_s27 = scalar_lea.vmem %s3754_s28, 128  ;;  %s3519_s17 = smov [#allocation4]  }
  0x6d   : > { %p3354_p12 = scmp.ne.s32.totalorder %s3754_s28, %s3353_s27  ;;  %s3358_s14 = sshll.u32 %s3519_s17, 4  ;;  %s3359_s14 = int_to_ptr.vmem [resolvable:$false] %s3358_s14 }
  0x6e   : > { %s3360_s15 = scalar_lea.vmem %s3359_s14, 256  ;;  %p3361_p2 = scmp.lt.s32.totalorder %s3754_s28, %s3359_s14 }
  0x6f   : > { %p3356_p13 = pnand %p3354_p12, %p3340_p3  ;;  %p3362_p6 = scmp.lt.s32.totalorder %s3360_s15, %s3353_s27 }
  0x71   : > { %p3357_p0 = pneg %p3356_p13  ;;  %p3363_p10 = por %p3362_p6, %p3361_p2 }
  0x73   : > { %p3364_p1 = pnand %p3363_p10, %p3357_p0 }
  0x75   : > { %3367 = shalt.err (!%p3364_p1)
}
  0x76   : > { %s3520_s29 = smov 32   ;;  %s3521_s9 = smov 2  }
  0x77   : > { %3044 = dma.hbm_to_vmem [thread:$0]  (!%p3758_p7), %s3752_s30, 128, %s3754_s28, %s3762_s26, %s3520_s29, %s3520_s29, %s3521_s9  }
  0x78   : > { %p5117_p3 = scmp.ne.s32.totalorder %s5113_s24, 0 }
  0x7a   : > { %396 = sbr.rel (%p5117_p3) target bundleno = 1857 (0x741), region = 52 }
  0x81   : > { %s398_s25 = sand.u32 1, %s3496_s7   ;;  %p5118_p8 = scmp.ne.s32.totalorder %s5112_s23, 0 }
  0x82   : > { %s2835_s11 = sshll.u32 %s398_s25, 3  ;;  %s399_s21 = scalar_lea.sflag [#allocation5], %s398_s25 }
  0x83   : > { %s3793_s16 = scalar_lea.vmem [#allocation4], %s2835_s11 }
  0x84   : > { %3471 = dma.done.wait (%p5118_p8), %s399_s21, 128  }
  0x85   : > { %3473 = vsyncadd (%p5118_p8), %s399_s21, 4294967168  ;;  %p5119_p11 = scmp.ne.s32.totalorder %s5111_s22, 0 }
  0x87   : > { %3475 = dma.done.wait (%p5119_p11), [#allocation8], 2048  }
  0x88   : > { %3477 = vsyncadd (%p5119_p11), [#allocation8], 4294965248 }
  0x89   : > { %3479 = dma.done.wait (%p5119_p11), [#allocation11], 1024  }
  0x8a   : > { %3481 = vsyncadd (%p5119_p11), [#allocation11], 4294966272  ;;  %p2839_p7 = scmp.ne.s32.totalorder %s3504_s18, 0 }
  0x8b   : > { %vm461_vm0 = vcmask (!%p2839_p7), 254976   ;;  %v3522_v0 = vmov (!%p2839_p7), 0.0  }
  0x8c   : > { %459 = sbr.rel (%p2839_p7) target bundleno = 149 (0x95), region = 72  ;;  %460 = vst [vmem:[#allocation2] sm:$0xf] (!%p2839_p7), %v3522_v0  ;;  %463 = vst [vmem:[#allocation15] sm:$0xff] (!%p2839_p7), %v3522_v0 }
  0x8d   : > { %464 = vst [vmem:[#allocation15 + $0x8] sm:$0xff] (!%p2839_p7), %v3522_v0  ;;  %465 = vst [vmem:[#allocation15 + $0x10] sm:$0xff] (!%p2839_p7), %v3522_v0 }
  0x8e   : > { %466 = vst [vmem:[#allocation15 + $0x18] sm:$0xff] (!%p2839_p7), %v3522_v0  ;;  %467 = vst [vmem:[#allocation15 + $0x20] sm:$0xff] (!%p2839_p7), %v3522_v0 }
  0x8f   : > { %468 = vst [vmem:[#allocation15 + $0x28] sm:$0xff] (!%p2839_p7), %v3522_v0  ;;  %469 = vst [vmem:[#allocation15 + $0x30] sm:$0xff] (!%p2839_p7), %v3522_v0 }
  0x90   : > { %470 = vst [vmem:[#allocation15 + $0x38] sm:$0xff] (!%p2839_p7), %v3522_v0  ;;  %471 = vst [vmem:[#allocation15 + $0x40] sm:$0xff] (!%p2839_p7), %v3522_v0 }
  0x91   : > { %472 = vst [vmem:[#allocation15 + $0x48] sm:$0xff] (!%p2839_p7), %v3522_v0  ;;  %473 = vst [vmem:[#allocation15 + $0x50] sm:$0xff] (!%p2839_p7), %v3522_v0 }
  0x92   : > { %474 = vst [vmem:[#allocation15 + $0x58] sm:$0xff] (!%p2839_p7), %v3522_v0  ;;  %475 = vst [vmem:[#allocation15 + $0x60] sm:$0xff] (!%p2839_p7), %v3522_v0 }
  0x93   : > { %476 = vst [vmem:[#allocation15 + $0x68] sm:$0xff] %v3522_v0  ;;  %477 = vst [vmem:[#allocation15 + $0x70] sm:$0xff] %v3522_v0 }
  0x94   : > { %478 = vst [vmem:[#allocation15 + $0x78] sm:$0xff] %v3522_v0  ;;  %462 = vst.msk [vmem:[#allocation13] sm:$0x3] %vm461_vm0, %v3522_v0 }
  0x95 PF: > { %v3813_v3 = vld [vmem:[#allocation7 + $0x20] sm:$0xff]  ;;  %v3815_v4 = vld [vmem:[#allocation7 + $0x28] sm:$0xff]  ;;  %v534_v8 = vlaneseq  ;;  %v3847_v17 = vld [vmem:[#allocation7 + $0x30] sm:$0xff]  ;;  %vm482_vm1 = vcmask 254976   ;;  %vm846_vm2 = vcmask 130112   ;;  %vm853_vm3 = vcmask 195712  }
  0x96   : > { %v3821_v6 = vld [vmem:[#allocation15] sm:$0xff]  ;;  %v3823_v7 = vld [vmem:[#allocation15 + $0x8] sm:$0xff]  ;;  %v3849_v18 = vld [vmem:[#allocation7 + $0x38] sm:$0xff]  ;;  %vm860_vm4 = vcmask 261312   ;;  %vm881_vm5 = vcmask 1041409   ;;  %p2851_p4 = scmp.ne.s32.totalorder %s3504_s18, 1 }
  0x97   : > { %v3809_v1 = vld [vmem:[#allocation15 + $0x20] sm:$0xff]  ;;  %v3861_v22 = vld [vmem:[#allocation15 + $0x10] sm:$0xff]  ;;  %v3863_v23 = vld [vmem:[#allocation15 + $0x18] sm:$0xff]  ;;  %v3880_v31 = vshrl.u32 %v534_v8, 7  ;;  %vm3525_vm6 = vmmov (!%p2851_p4), 0   ;;  %vm2156_vm7 = vcmask (!%p2851_p4), 261120  }
  0x98   : > { %v3811_v2 = vld [vmem:[#allocation15 + $0x28] sm:$0xff]  ;;  %v3819_v5 = vadd.f32 %v3813_v3, %v3809_v1  ;;  %v3829_v10 = vld [vmem:[#allocation7] sm:$0xff]  ;;  %v3833_v12 = vld [vmem:[#allocation15 + $0x30] sm:$0xff]  ;;  %vm2645_vm8 = vcmask (!%p2851_p4), 58368  }
  0x99   : > { %v3827_v9 = vadd.f32 %v3815_v4, %v3811_v2  ;;  %v3831_v11 = vld [vmem:[#allocation7 + $0x8] sm:$0xff]  ;;  %v3839_v14 = vadd.f32 %v3829_v10, %v3821_v6  ;;  %v3845_v16 = vld [vmem:[#allocation15 + $0x38] sm:$0xff]  ;;  %v3855_v20 = vadd.f32 %v3847_v17, %v3833_v12  ;;  %v3865_v24 = vld [vmem:[#allocation7 + $0x10] sm:$0xff]  ;;  %v3919_v0 = vsub.s32 0, %v3880_v31 }
  0x9a   : > { %v598_v13 = vmul.f32 %v3819_v5, %v3819_v5  ;;  %v3843_v15 = vadd.f32 %v3831_v11, %v3823_v7  ;;  %v3859_v21 = vadd.f32 %v3849_v18, %v3845_v16  ;;  %v3871_v27 = vld [vmem:[#allocation7 + $0x18] sm:$0xff]  ;;  %v511_v28 = vadd.f32 %v3865_v24, %v3861_v22  ;;  %v3888_v36 = vld [vmem:[#allocation15 + $0x40] sm:$0xff]  ;;  %v3890_v37 = vld [vmem:[#allocation15 + $0x48] sm:$0xff] }
  0x9b   : > { %v599_v19 = vmul.f32 %v3827_v9, %v3827_v9  ;;  %v594_v25 = vmul.f32 %v3839_v14, %v3839_v14  ;;  %v3875_v29 = vld [vmem:[#allocation15 + $0x50] sm:$0xff]  ;;  %v3877_v30 = vld [vmem:[#allocation15 + $0x58] sm:$0xff]  ;;  %v600_v33 = vmul.f32 %v3855_v20, %v3855_v20  ;;  %v512_v35 = vadd.f32 %v3871_v27, %v3863_v23  ;;  %v3900_v44 = vld [vmem:[#allocation15 + $0x60] sm:$0xff] }
  0x9c   : > { %v595_v26 = vmul.f32 %v3843_v15, %v3843_v15  ;;  %v601_v34 = vmul.f32 %v3859_v21, %v3859_v21  ;;  %v3892_v38 = vld [vmem:[#allocation15 + $0x70] sm:$0xff]  ;;  %v596_v40 = vmul.f32 %v511_v28, %v511_v28  ;;  %v519_v41 = vadd.f32 %v3865_v24, %v3875_v29  ;;  %v3898_v43 = vld [vmem:[#allocation15 + $0x78] sm:$0xff]  ;;  %v3906_v49 = vld [vmem:[#allocation15 + $0x68] sm:$0xff] }
  0x9d   : > { %v616_v32 = vadd.f32 %v599_v19, %v598_v13  ;;  %v520_v42 = vadd.f32 %v3871_v27, %v3877_v30  ;;  %v597_v46 = vmul.f32 %v512_v35, %v512_v35  ;;  %v517_v47 = vadd.f32 %v3829_v10, %v3888_v36  ;;  %v479_v50 = vld [vmem:[%s3793_s16] sm:$0x3]  ;;  %v481_v51 = vld [vmem:[#allocation13] sm:$0x3] }
  0x9e   : > { %v610_v39 = vadd.f32 %v595_v26, %v594_v25  ;;  %v619_v45 = vadd.f32 %v601_v34, %v600_v33  ;;  %v518_v48 = vadd.f32 %v3831_v11, %v3890_v37  ;;  %v604_v52 = vmul.f32 %v519_v41, %v519_v41  ;;  %480 = vst [vmem:[#allocation2] sm:$0x3] %v479_v50 }
  0x9f   : > { %617 = vadd.xlane.f32.xlu1 %v616_v32  ;;  %v605_v53 = vmul.f32 %v520_v42, %v520_v42  ;;  %v523_v54 = vadd.f32 %v3847_v17, %v3892_v38  ;;  %v524_v55 = vadd.f32 %v3849_v18, %v3898_v43  ;;  %483 = vst.msk [vmem:[#allocation2 + $0x2] sm:$0x3] %vm482_vm1, %v481_v51  ;;  %v3922_v26 = vsub.s32 1, %v3880_v31  ;;  %v2842_v32 = vld [vmem:[%s3793_s16 + $0x2] sm:$0x3] }
  0xa0   : > { %611 = vadd.xlane.f32.xlu0 %v610_v39  ;;  %v613_v56 = vadd.f32 %v597_v46, %v596_v40  ;;  %v602_v57 = vmul.f32 %v517_v47, %v517_v47  ;;  %v603_v58 = vmul.f32 %v518_v48, %v518_v48  ;;  %v521_v59 = vadd.f32 %v3813_v3, %v3900_v44 }
  0xa1   : > { %v522_v60 = vadd.f32 %v3815_v4, %v3906_v49  ;;  %v625_v61 = vadd.f32 %v605_v53, %v604_v52  ;;  %v608_v62 = vmul.f32 %v523_v54, %v523_v54  ;;  %v609_v63 = vmul.f32 %v524_v55, %v524_v55 }
  0xa2   : > { %v622_v13 = vadd.f32 %v603_v58, %v602_v57  ;;  %v606_v19 = vmul.f32 %v521_v59, %v521_v59 }
  0xa3   : > { %620 = vadd.xlane.f32.xlu1 %v619_v45  ;;  %v607_v25 = vmul.f32 %v522_v60, %v522_v60  ;;  %v631_v33 = vadd.f32 %v609_v63, %v608_v62 }
  0xa4   : > { %614 = vadd.xlane.f32.xlu0 %v613_v56 }
  0xa5   : > { %v628_v39 = vadd.f32 %v607_v25, %v606_v19 }
  0xa6   : > { %v2840_v34 = vld.sshfl [vmem:[#allocation2] sm:$0x33 pattern:$0x75316420] }
  0xa7   : > { %626 = vadd.xlane.f32.xlu1 %v625_v61  ;;  %v3926_v40 = vrot.slane %v2840_v34, %v3919_v0  ;;  %v3929_v45 = vrot.slane %v2840_v34, %v3922_v26  ;;  %903 = vst [vmem:[#allocation2] sm:$0x3] %v2842_v32  ;;  %v533_v46 = vcombine.high %v2840_v34, %v2840_v34 }
  0xa8   : > { %623 = vadd.xlane.f32.xlu0 %v622_v13 }
  0xa9   : > { %v556_v50 = vmul.f32 %v3926_v40, %v511_v28  ;;  %v557_v51 = vmul.f32 %v3929_v45, %v512_v35  ;;  %v554_v52 = vmul.f32 %v3926_v40, %v3839_v14  ;;  %v555_v53 = vmul.f32 %v3929_v45, %v3843_v15 }
  0xaa   : > { %v560_v56 = vmul.f32 %v3926_v40, %v3855_v20  ;;  %v561_v57 = vmul.f32 %v3929_v45, %v3859_v21  ;;  %v558_v58 = vmul.f32 %v3926_v40, %v3819_v5  ;;  %v559_v28 = vmul.f32 %v3929_v45, %v3827_v9 }
  0xab   : > { %632 = vadd.xlane.f32.xlu1 %v631_v33  ;;  %v573_v35 = vadd.f32 %v557_v51, %v556_v50  ;;  %v570_v61 = vadd.f32 %v555_v53, %v554_v52  ;;  %v3946_v14 = vrot.slane %v533_v46, %v3919_v0  ;;  %v3949_v15 = vrot.slane %v533_v46, %v3922_v26 }
  0xac   : > { %629 = vadd.xlane.f32.xlu0 %v628_v39  ;;  %v579_v20 = vadd.f32 %v561_v57, %v560_v56  ;;  %v576_v5 = vadd.f32 %v559_v28, %v558_v58 }
  0xad   : > { %v564_v62 = vmul.f32 %v3946_v14, %v519_v41  ;;  %v565_v21 = vmul.f32 %v3949_v15, %v520_v42  ;;  %v562_v63 = vmul.f32 %v3946_v14, %v517_v47  ;;  %v563_v9 = vmul.f32 %v3949_v15, %v518_v48  ;;  %v3962_v47 = vld [vmem:[%s5061_s4] ss:$0 sm:$0xff] }
  0xae   : > { %v568_v19 = vmul.f32 %v3946_v14, %v523_v54  ;;  %v569_v25 = vmul.f32 %v3949_v15, %v524_v55  ;;  %v566_v33 = vmul.f32 %v3946_v14, %v521_v59  ;;  %v567_v41 = vmul.f32 %v3949_v15, %v522_v60 }
  0xaf   : > { %574 = vadd.xlane.f32.xlu1 %v573_v35  ;;  %v585_v13 = vadd.f32 %v565_v21, %v564_v62  ;;  %v582_v32 = vadd.f32 %v563_v9, %v562_v63  ;;  %v3523_v48 = vmov 0  }
  0xb0   : > { %571 = vadd.xlane.f32.xlu0 %v570_v61  ;;  %v591_v42 = vadd.f32 %v569_v25, %v568_v19  ;;  %v588_v34 = vadd.f32 %v567_v41, %v566_v33  ;;  %3124 = vset.pattern.permute.xlu1 %v3523_v48 }
  0xb1   : > { %3123 = vset.pattern.permute.xlu0 %v3523_v48 }
  0xb3   : > { %580 = vadd.xlane.f32.xlu1 %v579_v20 }
  0xb4   : > { %577 = vadd.xlane.f32.xlu0 %v576_v5 }
  0xb7   : > { %586 = vadd.xlane.f32.xlu1 %v585_v13 }
  0xb8   : > { %583 = vadd.xlane.f32.xlu0 %v582_v32 }
  0xbb   : > { %592 = vadd.xlane.f32.xlu1 %v591_v42 }
  0xbc   : > { %589 = vadd.xlane.f32.xlu0 %v588_v34 }
  0xcc   : > { %669 = vbcast.lane.b32.xlu1 %v3962_v47, 264 }
  0xd0   : > { %673 = vbcast.lane.b32.xlu1 %v3962_v47, 272 }
  0xd2   : > { %665 = vbcast.lane.b32.xlu0 %v3962_v47, 256 }
  0xd4   : > { %677 = vbcast.lane.b32.xlu1 %v3962_v47, 280 }
 0x12c   : > { %v618_v54 = vpop.xlane.xlu1 %617 }
 0x12d   : > { %v612_v55 = vpop.xlane.xlu0 %611  ;;  %v636_v28 = vadd.f32 1e-16, %v618_v54 }
 0x12e   : > { %v634_v53 = vadd.f32 1e-16, %v612_v55 }
 0x130   : > { %v621_v59 = vpop.xlane.xlu1 %620 }
 0x131   : > { %v615_v60 = vpop.xlane.xlu0 %614  ;;  %v637_v20 = vadd.f32 1e-16, %v621_v59 }
 0x132   : > { %v635_v52 = vadd.f32 1e-16, %v615_v60 }
 0x134   : > { %v627_v39 = vpop.xlane.xlu1 %626  ;;  %3125 = vrsqrt.f32 %v635_v52 }
 0x135   : > { %v624_v46 = vpop.xlane.xlu0 %623  ;;  %3127 = vrsqrt.f32 %v634_v53  ;;  %v639_v5 = vadd.f32 1e-16, %v627_v39 }
 0x136   : > { %v638_v58 = vadd.f32 1e-16, %v624_v46 }
 0x138   : > { %v633_v50 = vpop.xlane.xlu1 %632  ;;  %3129 = vrsqrt.f32 %v638_v58 }
 0x139   : > { %v630_v51 = vpop.xlane.xlu0 %629  ;;  %3131 = vrsqrt.f32 %v636_v28  ;;  %v641_v32 = vadd.f32 1e-16, %v633_v50 }
 0x13a   : > { %v640_v62 = vadd.f32 1e-16, %v630_v51  ;;  %3133 = vrsqrt.f32 %v637_v20 }
 0x13c   : > { %v575_v56 = vpop.xlane.xlu1 %574  ;;  %3135 = vrsqrt.f32 %v640_v62 }
 0x13d   : > { %v572_v57 = vpop.xlane.xlu0 %571  ;;  %3137 = vrsqrt.f32 %v639_v5 }
 0x13e   : > { %v3968_v9 = vpop.eup %3125  ;;  %3139 = vrsqrt.f32 %v641_v32 }
 0x13f   : > { %v3970_v19 = vpop.eup %3127  ;;  %v651_v33 = vmul.f32 %v3968_v9, %v575_v56 }
 0x140   : > { %v581_v35 = vpop.xlane.xlu1 %580  ;;  %v650_v41 = vmul.f32 %v3970_v19, %v572_v57 }
 0x141   : > { %v578_v61 = vpop.xlane.xlu0 %577 }
 0x142   : > { %v3974_v34 = vpop.eup %3129 }
 0x143   : > { %v3132_v55 = vpop.eup %3131 }
 0x144   : > { %v587_v21 = vpop.xlane.xlu1 %586  ;;  %v652_v60 = vmul.f32 %v3132_v55, %v578_v61  ;;  %v3134_v51 = vpop.eup %3133 }
 0x145   : > { %v584_v63 = vpop.xlane.xlu0 %583  ;;  %v653_v57 = vmul.f32 %v3134_v51, %v581_v35 }
 0x146   : > { %v654_v39 = vmul.f32 %v3974_v34, %v584_v63  ;;  %v3977_v52 = vpop.eup %3135 }
 0x147   : > { %v3138_v56 = vpop.eup %3137 }
 0x148   : > { %v593_v13 = vpop.xlane.xlu1 %592  ;;  %v655_v58 = vmul.f32 %v3138_v56, %v587_v21  ;;  %v3140_v63 = vpop.eup %3139 }
 0x149   : > { %v590_v25 = vpop.xlane.xlu0 %589 }
 0x14a   : > { %v656_v20 = vmul.f32 %v3977_v52, %v590_v25 }
 0x14c   : > { %v670_v42 = vpop.permute.xlu1 %669 }
 0x14d   : > { %v684_v48 = vadd.f32 %v670_v42, %v651_v33  ;;  %v666_v54 = vpop.permute.xlu0 %665  ;;  %v688_v5 = vadd.f32 %v670_v42, %v655_v58  ;;  %v657_v33 = vmul.f32 %v3140_v63, %v593_v13  ;;  %v836_v13 = vand.u32 127, %v534_v8 }
 0x14e   : > { %v683_v59 = vadd.f32 %v666_v54, %v650_v41  ;;  %v687_v53 = vadd.f32 %v666_v54, %v654_v39  ;;  %v711_v39 = vmul.f32 %v3132_v55, %v3809_v1  ;;  %v708_v58 = vmul.f32 %v3970_v19, %v3823_v7  ;;  %v3998_v1 = vld [vmem:[#allocation9 + $0x8] sm:$0xff] }
 0x14f   : > { %3141 = vtanh.f32 %v684_v48  ;;  %v710_v7 = vmul.f32 %v3968_v9, %v3863_v23  ;;  %v716_v23 = vmul.f32 %v3974_v34, %v3890_v37 }
 0x150   : > { %v674_v46 = vpop.permute.xlu1 %673  ;;  %3143 = vtanh.f32 %v683_v59 }
 0x151   : > { %v685_v50 = vadd.f32 %v674_v46, %v652_v60  ;;  %v689_v61 = vadd.f32 %v674_v46, %v656_v20  ;;  %v841_v60 = vadd.s32 4294967288, %v836_v13  ;;  %v3983_v46 = vld [vmem:[#allocation9 + $0x20] sm:$0xff]  ;;  %v713_v20 = vmul.f32 %v3134_v51, %v3833_v12 }
 0x152   : > { %5120 = vst [vmem:[#allocation21_spill] sm:$0xff] %v3983_v46  ;;  %v717_v12 = vmul.f32 %v3138_v56, %v3875_v29 }
 0x153   : > { %3145 = vtanh.f32 %v685_v50  ;;  %v707_v50 = vmul.f32 %v3970_v19, %v3821_v6  ;;  %v3996_v8 = vsub.s32 %v841_v60, %v3880_v31  ;;  %v4003_v6 = vld [vmem:[#allocation9 + $0x30] sm:$0xff]  ;;  %v4010_v19 = vld [vmem:[#allocation9 + $0x38] sm:$0xff] }
 0x154   : > { %v678_v28 = vpop.permute.xlu1 %677  ;;  %3147 = vtanh.f32 %v687_v53  ;;  %v712_v53 = vmul.f32 %v3132_v55, %v3811_v2  ;;  %5122 = vst [vmem:[#allocation23_spill] sm:$0xff] %v4003_v6  ;;  %v714_v2 = vmul.f32 %v3134_v51, %v3845_v16  ;;  %v709_v55 = vmul.f32 %v3968_v9, %v3861_v22  ;;  %5123 = vst [vmem:[#allocation24_spill] sm:$0xff] %v4010_v19 }
 0x155   : > { %v686_v62 = vadd.f32 %v678_v28, %v653_v57  ;;  %v690_v48 = vadd.f32 %v678_v28, %v657_v33  ;;  %v3988_v57 = vld [vmem:[#allocation9] sm:$0xff]  ;;  %v3992_v28 = vld [vmem:[#allocation9 + $0x28] sm:$0xff]  ;;  %v715_v22 = vmul.f32 %v3974_v34, %v3888_v36  ;;  %v724_v9 = vmul.f32 %v708_v58, %v3998_v1 }
 0x156   : > { %5121 = vst [vmem:[#allocation22_spill] sm:$0xff] %v3992_v28  ;;  %v723_v33 = vmul.f32 %v707_v50, %v3988_v57  ;;  %v4020_v16 = vmul.f32 %v712_v53, %v3992_v28  ;;  %v4028_v29 = vmul.f32 %v713_v20, %v4003_v6  ;;  %v722_v51 = vmul.f32 %v3140_v63, %v3898_v43  ;;  %v4047_v43 = vld [vmem:[#allocation10 + $0x10] sm:$0xff]  ;;  %v4069_v50 = vld [vmem:[#allocation10] sm:$0xff]  ;;  %v4071_v53 = vld [vmem:[#allocation10 + $0x8] sm:$0xff] }
 0x157   : > { %3149 = vtanh.f32 %v686_v62  ;;  %v4001_v62 = vmul.f32 %v711_v39, %v3983_v46  ;;  %v720_v36 = vmul.f32 %v3977_v52, %v3906_v49  ;;  %5126 = vst [vmem:[#allocation27_spill] sm:$0xff] %v4047_v43  ;;  %v4055_v49 = vmul.f32 %v715_v22, %v3988_v57 }
 0x158   : > { %3151 = vtanh.f32 %v688_v5  ;;  %v718_v5 = vmul.f32 %v3138_v56, %v3877_v30  ;;  %v721_v30 = vmul.f32 %v3140_v63, %v3892_v38  ;;  %v848_v56 = vadd.s32 4294967280, %v836_v13  ;;  %v4049_v63 = vld [vmem:[#allocation10 + $0x18] sm:$0xff] }
 0x159   : > { %v3142_v32 = vpop.eup %3141  ;;  %3153 = vtanh.f32 %v689_v61  ;;  %v4014_v61 = vld [vmem:[#allocation9 + $0x10] sm:$0xff]  ;;  %v4066_v60 = vmul.f32 %v722_v51, %v4010_v19 }
 0x15a   : > { %754 = vperm.xlu1 %3124, %v3142_v32   ;;  %v3144_v41 = vpop.eup %3143  ;;  %3155 = vtanh.f32 %v690_v48  ;;  %5124 = vst [vmem:[#allocation25_spill] sm:$0xff] %v4014_v61  ;;  %v4016_v32 = vld [vmem:[#allocation9 + $0x18] sm:$0xff]  ;;  %v719_v48 = vmul.f32 %v3977_v52, %v3900_v44  ;;  %v725_v37 = vmul.f32 %v709_v55, %v4014_v61  ;;  %v4052_v44 = vsub.s32 %v836_v13, %v3880_v31 }
 0x15b   : > { %749 = vperm.xlu0 %3123, %v3144_v41   ;;  %5125 = vst [vmem:[#allocation26_spill] sm:$0xff] %v4016_v32  ;;  %v4033_v41 = vmul.f32 %v714_v2, %v4010_v19  ;;  %v726_v34 = vmul.f32 %v710_v7, %v4016_v32  ;;  %v4045_v38 = vmul.f32 %v718_v5, %v4016_v32 }
 0x15c   : > { %5127 = vst [vmem:[#allocation28_spill] sm:$0xff] %v4052_v44  ;;  %v4058_v52 = vmul.f32 %v716_v23, %v3998_v1  ;;  %v4074_v20 = vsub.s32 %v848_v56, %v3880_v31  ;;  %v4080_v2 = vmul.f32 %v720_v36, %v3992_v28 }
 0x15d   : > { %v3146_v35 = vpop.eup %3145 }
 0x15e   : > { %759 = vperm.xlu1 %3124, %v3146_v35   ;;  %v3148_v21 = vpop.eup %3147  ;;  %v4042_v35 = vmul.f32 %v717_v12, %v4014_v61 }
 0x161   : > { %v3150_v54 = vpop.eup %3149 }
 0x162   : > { %769 = vperm.xlu1 %3124, %v3148_v21   ;;  %764 = vperm.xlu0 %3123, %v3150_v54   ;;  %v3152_v25 = vpop.eup %3151  ;;  %v855_v54 = vadd.s32 4294967272, %v836_v13  ;;  %v4077_v13 = vmul.f32 %v719_v48, %v3983_v46 }
 0x163   : > { %v3154_v42 = vpop.eup %3153 }
 0x164   : > { %v3156_v59 = vpop.eup %3155 }
 0x166   : > { %779 = vperm.xlu1 %3124, %v3154_v42   ;;  %774 = vperm.xlu0 %3123, %v3152_v25  }
 0x16a   : > { %784 = vperm.xlu0 %3123, %v3156_v59   ;;  %1087 = vbcast.lane.b32.xlu1 %v3962_v47, 256  ;;  %v4063_v59 = vmul.f32 %v721_v30, %v4003_v6  ;;  %v4088_v30 = vsub.s32 %v855_v54, %v3880_v31  ;;  %v4115_v6 = vld [vmem:[#allocation10 + $0x30] sm:$0xff] }
 0x1d9   : > { %v755_v21 = vpop.permute.xlu1 %754 }
 0x1da   : > { %v789_v25 = vmul.f32 %v755_v21, %v3926_v40  ;;  %v790_v42 = vmul.f32 %v755_v21, %v3929_v45  ;;  %v845_v39 = vrot.slane %v755_v21, %v3996_v8  ;;  %v750_v58 = vpop.permute.xlu0 %749  ;;  %v4096_v21 = vld [vmem:[#allocation10 + $0x20] sm:$0xff] }
 0x1db   : > { %v787_v12 = vmul.f32 %v750_v58, %v3926_v40  ;;  %v788_v5 = vmul.f32 %v750_v58, %v3929_v45  ;;  %v840_v22 = vrot.slane %v750_v58, %v4052_v44 }
 0x1dc   : > { %v805_v55 = vmul.f32 %v789_v25, %v4047_v43  ;;  %v806_v7 = vmul.f32 %v790_v42, %v4049_v63  ;;  %v4098_v25 = vld [vmem:[#allocation10 + $0x28] sm:$0xff] }
 0x1dd   : > { %v760_v23 = vpop.permute.xlu1 %759  ;;  %v803_v48 = vmul.f32 %v787_v12, %v4069_v50  ;;  %v804_v36 = vmul.f32 %v788_v5, %v4071_v53 }
 0x1de   : > { %v4090_v51 = vadd.f32 %v805_v55, %v725_v37  ;;  %v4092_v56 = vadd.f32 %v806_v7, %v726_v34  ;;  %v791_v42 = vmul.f32 %v760_v23, %v3926_v40  ;;  %v792_v58 = vmul.f32 %v760_v23, %v3929_v45 }
 0x1df   : > { %v852_v19 = vrot.slane %v760_v23, %v4074_v20  ;;  %v4103_v31 = vadd.f32 %v803_v48, %v723_v33  ;;  %v4105_v37 = vadd.f32 %v804_v36, %v724_v9  ;;  %v847_v34 = vsel %vm846_vm2, %v845_v39, %v840_v22  ;;  %v4124_v48 = vld [vmem:[#allocation10 + $0x38] sm:$0xff] }
 0x1e0   : > { %v4110_v54 = vadd.f32 %v4090_v51, %v3865_v24  ;;  %v807_v55 = vmul.f32 %v791_v42, %v4096_v21  ;;  %v808_v7 = vmul.f32 %v792_v58, %v4098_v25  ;;  %v4119_v33 = vadd.f32 %v4092_v56, %v3871_v27 }
 0x1e1   : > { %v854_v12 = vsel %vm853_vm3, %v852_v19, %v847_v34  ;;  %v770_v5 = vpop.permute.xlu1 %769  ;;  %v765_v23 = vpop.permute.xlu0 %764 }
 0x1e2   : > { %v795_v9 = vmul.f32 %v770_v5, %v3946_v14  ;;  %v796_v39 = vmul.f32 %v770_v5, %v3949_v15  ;;  %v865_v22 = vrot.slane %v770_v5, %v4052_v44  ;;  %v793_v36 = vmul.f32 %v765_v23, %v3926_v40 }
 0x1e3   : > { %v4128_v19 = vadd.f32 %v807_v55, %v4001_v62  ;;  %v4131_v42 = vadd.f32 %v808_v7, %v4020_v16  ;;  %v794_v58 = vmul.f32 %v765_v23, %v3929_v45  ;;  %v859_v34 = vrot.slane %v765_v23, %v4088_v30 }
 0x1e4   : > { %v811_v32 = vmul.f32 %v795_v9, %v4069_v50  ;;  %v812_v61 = vmul.f32 %v796_v39, %v4071_v53  ;;  %v809_v5 = vmul.f32 %v793_v36, %v4115_v6  ;;  %v1018_v40 = vmul.f32 %v4110_v54, %v4110_v54 }
 0x1e5   : > { %v810_v62 = vmul.f32 %v794_v58, %v4124_v48  ;;  %v861_v55 = vsel %vm860_vm4, %v859_v34, %v854_v12  ;;  %v780_v16 = vpop.permute.xlu1 %779  ;;  %v775_v7 = vpop.permute.xlu0 %774  ;;  %v1019_v45 = vmul.f32 %v4119_v33, %v4119_v33  ;;  %v4146_v23 = vadd.f32 %v4103_v31, %v3829_v10 }
 0x1e6   : > { %v4149_v9 = vadd.f32 %v811_v32, %v4055_v49  ;;  %v4152_v39 = vadd.f32 %v812_v61, %v4058_v52  ;;  %v4155_v36 = vadd.f32 %v809_v5, %v4028_v29  ;;  %v799_v12 = vmul.f32 %v780_v16, %v3946_v14 }
 0x1e7   : > { %v4159_v58 = vadd.f32 %v810_v62, %v4033_v41  ;;  %v800_v34 = vmul.f32 %v780_v16, %v3949_v15  ;;  %v874_v44 = vrot.slane %v780_v16, %v4074_v20  ;;  %v797_v28 = vmul.f32 %v775_v7, %v3946_v14 }
 0x1e8   : > { %v815_v32 = vmul.f32 %v799_v12, %v4096_v21  ;;  %v798_v49 = vmul.f32 %v775_v7, %v3949_v15  ;;  %v869_v61 = vrot.slane %v775_v7, %v3996_v8  ;;  %v1035_v52 = vadd.f32 %v1019_v45, %v1018_v40 }
 0x1e9   : > { %v816_v29 = vmul.f32 %v800_v34, %v4098_v25  ;;  %v813_v5 = vmul.f32 %v797_v28, %v4047_v43  ;;  %v785_v46 = vpop.permute.xlu0 %784  ;;  %v4171_v41 = vadd.f32 %v4105_v37, %v3831_v11  ;;  %v1016_v62 = vmul.f32 %v4146_v23, %v4146_v23 }
 0x1ea   : > { %v4176_v16 = vadd.f32 %v815_v32, %v4077_v13  ;;  %v814_v12 = vmul.f32 %v798_v49, %v4049_v63  ;;  %v870_v7 = vsel %vm846_vm2, %v869_v61, %v865_v22  ;;  %v801_v40 = vmul.f32 %v785_v46, %v3946_v14  ;;  %1036 = vadd.xlane.f32.xlu0 %v1035_v52 }
 0x1eb   : > { %v4182_v28 = vadd.f32 %v816_v29, %v4080_v2  ;;  %v4185_v45 = vadd.f32 %v813_v5, %v4042_v35  ;;  %v875_v34 = vsel %vm853_vm3, %v874_v44, %v870_v7  ;;  %v802_v43 = vmul.f32 %v785_v46, %v3949_v15 }
 0x1ec   : > { %v4190_v13 = vadd.f32 %v814_v12, %v4045_v38  ;;  %v817_v32 = vmul.f32 %v801_v40, %v4115_v6  ;;  %v879_v22 = vrot.slane %v785_v46, %v4088_v30  ;;  %v1017_v14 = vmul.f32 %v4171_v41, %v4171_v41 }
 0x1ed   : > { %v818_v2 = vmul.f32 %v802_v43, %v4124_v48  ;;  %v935_v35 = vadd.f32 %v4128_v19, %v3813_v3  ;;  %v936_v44 = vadd.f32 %v4131_v42, %v3815_v4  ;;  %v4203_v15 = vadd.f32 %v4149_v9, %v3829_v10 }
 0x1ee   : > { %v4206_v38 = vadd.f32 %v817_v32, %v4063_v59  ;;  %v880_v46 = vsel %vm860_vm4, %v879_v22, %v875_v34  ;;  %v1032_v49 = vadd.f32 %v1017_v14, %v1016_v62  ;;  %v940_v61 = vadd.f32 %v4152_v39, %v3831_v11 }
 0x1ef   : > { %v4212_v43 = vadd.f32 %v818_v2, %v4066_v60  ;;  %v882_v52 = vsel %vm881_vm5, %v880_v46, %v861_v55  ;;  %v1020_v29 = vmul.f32 %v935_v35, %v935_v35  ;;  %v1021_v5 = vmul.f32 %v936_v44, %v936_v44 }
 0x1f0   : > { %884 = vst.msk [vmem:[#allocation13] sm:$0x3] %vm482_vm1, %v882_v52  ;;  %1033 = vadd.xlane.f32.xlu1 %v1032_v49  ;;  %v1024_v10 = vmul.f32 %v4203_v15, %v4203_v15  ;;  %v1025_v59 = vmul.f32 %v940_v61, %v940_v61  ;;  %v937_v62 = vadd.f32 %v4155_v36, %v3847_v17 }
 0x1f1   : > { %v938_v11 = vadd.f32 %v4159_v58, %v3849_v18  ;;  %v1038_v12 = vadd.f32 %v1021_v5, %v1020_v29  ;;  %v943_v60 = vadd.f32 %v4176_v16, %v3813_v3  ;;  %v944_v55 = vadd.f32 %v4182_v28, %v3815_v4 }
 0x1f2   : > { %v941_v7 = vadd.f32 %v4185_v45, %v3865_v24  ;;  %v1044_v40 = vadd.f32 %v1025_v59, %v1024_v10  ;;  %v1022_v34 = vmul.f32 %v937_v62, %v937_v62  ;;  %v942_v22 = vadd.f32 %v4190_v13, %v3871_v27 }
 0x1f3   : > { %v1023_v32 = vmul.f32 %v938_v11, %v938_v11  ;;  %1039 = vadd.xlane.f32.xlu0 %v1038_v12  ;;  %v1028_v14 = vmul.f32 %v943_v60, %v943_v60  ;;  %v1029_v2 = vmul.f32 %v944_v55, %v944_v55  ;;  %v945_v49 = vadd.f32 %v4206_v38, %v3847_v17 }
 0x1f4   : > { %v1026_v46 = vmul.f32 %v941_v7, %v941_v7  ;;  %1045 = vadd.xlane.f32.xlu1 %v1044_v40  ;;  %v1027_v52 = vmul.f32 %v942_v22, %v942_v22  ;;  %v946_v4 = vadd.f32 %v4212_v43, %v3849_v18 }
 0x1f5   : > { %v1041_v3 = vadd.f32 %v1023_v32, %v1022_v34  ;;  %v1050_v24 = vadd.f32 %v1029_v2, %v1028_v14  ;;  %v1030_v10 = vmul.f32 %v945_v49, %v945_v49 }
 0x1f6   : > { %v1047_v5 = vadd.f32 %v1027_v52, %v1026_v46  ;;  %v1031_v59 = vmul.f32 %v946_v4, %v946_v4 }
 0x1f7   : > { %v904_v29 = vld [vmem:[#allocation13] sm:$0x3]  ;;  %1042 = vadd.xlane.f32.xlu0 %v1041_v3 }
 0x1f8   : > { %905 = vst.msk [vmem:[#allocation2 + $0x2] sm:$0x3] %vm482_vm1, %v904_v29  ;;  %1051 = vadd.xlane.f32.xlu1 %v1050_v24  ;;  %v1053_v27 = vadd.f32 %v1031_v59, %v1030_v10 }
 0x1fb   : > { %1048 = vadd.xlane.f32.xlu0 %v1047_v5 }
 0x1ff   : > { %1054 = vadd.xlane.f32.xlu0 %v1053_v27  ;;  %v2843_v12 = vld.sshfl [vmem:[#allocation2] sm:$0x33 pattern:$0x75316420] }
 0x200   : > { %v4236_v17 = vrot.slane %v2843_v12, %v3919_v0  ;;  %v4239_v40 = vrot.slane %v2843_v12, %v3922_v26  ;;  %v955_v18 = vcombine.high %v2843_v12, %v2843_v12 }
 0x202   : > { %v978_v34 = vmul.f32 %v4236_v17, %v4110_v54  ;;  %v979_v32 = vmul.f32 %v4239_v40, %v4119_v33  ;;  %v976_v14 = vmul.f32 %v4236_v17, %v4146_v23  ;;  %v977_v2 = vmul.f32 %v4239_v40, %v4171_v41 }
 0x203   : > { %v982_v46 = vmul.f32 %v4236_v17, %v937_v62  ;;  %v983_v3 = vmul.f32 %v4239_v40, %v938_v11  ;;  %v980_v52 = vmul.f32 %v4236_v17, %v935_v35  ;;  %v981_v24 = vmul.f32 %v4239_v40, %v936_v44 }
 0x204   : > { %v995_v29 = vadd.f32 %v979_v32, %v978_v34  ;;  %v992_v5 = vadd.f32 %v977_v2, %v976_v14  ;;  %v4254_v54 = vrot.slane %v955_v18, %v3919_v0  ;;  %v4257_v33 = vrot.slane %v955_v18, %v3922_v26 }
 0x205   : > { %v1001_v23 = vadd.f32 %v983_v3, %v982_v46  ;;  %v998_v41 = vadd.f32 %v981_v24, %v980_v52 }
 0x206   : > { %996 = vadd.xlane.f32.xlu0 %v995_v29  ;;  %993 = vadd.xlane.f32.xlu1 %v992_v5  ;;  %v986_v62 = vmul.f32 %v4254_v54, %v941_v7  ;;  %v987_v11 = vmul.f32 %v4257_v33, %v942_v22  ;;  %v984_v35 = vmul.f32 %v4254_v54, %v4203_v15 }
 0x207   : > { %v985_v44 = vmul.f32 %v4257_v33, %v940_v61  ;;  %v990_v10 = vmul.f32 %v4254_v54, %v945_v49  ;;  %v991_v59 = vmul.f32 %v4257_v33, %v946_v4  ;;  %v988_v18 = vmul.f32 %v4254_v54, %v943_v60  ;;  %v1088_v61 = vpop.permute.xlu1 %1087 }
 0x208   : > { %v1007_v27 = vadd.f32 %v987_v11, %v986_v62  ;;  %v989_v34 = vmul.f32 %v4257_v33, %v944_v55 }
 0x209   : > { %v1004_v12 = vadd.f32 %v985_v44, %v984_v35  ;;  %v1013_v7 = vadd.f32 %v991_v59, %v990_v10 }
 0x20a   : > { %1002 = vadd.xlane.f32.xlu0 %v1001_v23  ;;  %999 = vadd.xlane.f32.xlu1 %v998_v41  ;;  %v1010_v22 = vadd.f32 %v989_v34, %v988_v18 }
 0x20e   : > { %1008 = vadd.xlane.f32.xlu0 %v1007_v27  ;;  %1005 = vadd.xlane.f32.xlu1 %v1004_v12 }
 0x212   : > { %1014 = vadd.xlane.f32.xlu0 %v1013_v7  ;;  %1011 = vadd.xlane.f32.xlu1 %v1010_v22 }
 0x223   : > { %1095 = vbcast.lane.b32.xlu1 %v3962_v47, 272 }
 0x227   : > { %1099 = vbcast.lane.b32.xlu1 %v3962_v47, 280 }
 0x228   : > { %1091 = vbcast.lane.b32.xlu0 %v3962_v47, 264 }
 0x277   : > { %v1037_v15 = vpop.xlane.xlu0 %1036 }
 0x278   : > { %v1057_v3 = vadd.f32 1e-16, %v1037_v15 }
 0x27d   : > { %v1034_v4 = vpop.xlane.xlu1 %1033 }
 0x27e   : > { %v1056_v60 = vadd.f32 1e-16, %v1034_v4 }
 0x280   : > { %v1040_v49 = vpop.xlane.xlu0 %1039  ;;  %3157 = vrsqrt.f32 %v1056_v60 }
 0x281   : > { %v1046_v55 = vpop.xlane.xlu1 %1045  ;;  %v1058_v29 = vadd.f32 1e-16, %v1040_v49  ;;  %3159 = vrsqrt.f32 %v1057_v3 }
 0x282   : > { %v1060_v52 = vadd.f32 1e-16, %v1046_v55 }
 0x284   : > { %v1043_v32 = vpop.xlane.xlu0 %1042  ;;  %3161 = vrsqrt.f32 %v1060_v52 }
 0x285   : > { %v1052_v2 = vpop.xlane.xlu1 %1051  ;;  %3163 = vrsqrt.f32 %v1058_v29  ;;  %v1059_v11 = vadd.f32 1e-16, %v1043_v32 }
 0x286   : > { %v1062_v10 = vadd.f32 1e-16, %v1052_v2 }
 0x288   : > { %v1049_v14 = vpop.xlane.xlu0 %1048 }
 0x289   : > { %v1061_v59 = vadd.f32 1e-16, %v1049_v14 }
 0x28a   : > { %v4271_v24 = vpop.eup %3157 }
 0x28b   : > { %v4274_v18 = vpop.eup %3159 }
 0x28c   : > { %v1055_v46 = vpop.xlane.xlu0 %1054 }
 0x28d   : > { %v1063_v34 = vadd.f32 1e-16, %v1055_v46 }
 0x28e   : > { %v4276_v15 = vpop.eup %3161 }
 0x28f   : > { %v4278_v49 = vpop.eup %3163 }
 0x293   : > { %v994_v5 = vpop.xlane.xlu1 %993  ;;  %v997_v23 = vpop.xlane.xlu0 %996 }
 0x294   : > { %v1072_v41 = vmul.f32 %v4271_v24, %v994_v5  ;;  %v1073_v60 = vmul.f32 %v4274_v18, %v997_v23 }
 0x296   : > { %v1105_v62 = vadd.f32 %v1088_v61, %v1072_v41 }
 0x297   : > { %v1000_v35 = vpop.xlane.xlu1 %999  ;;  %v1003_v44 = vpop.xlane.xlu0 %1002 }
 0x298   : > { %3165 = vtanh.f32 %v1105_v62  ;;  %v1074_v55 = vmul.f32 %v4278_v49, %v1000_v35 }
 0x299   : > { %3167 = vrsqrt.f32 %v1059_v11 }
 0x29a   : > { %3169 = vrsqrt.f32 %v1062_v10 }
 0x29b   : > { %v1006_v27 = vpop.xlane.xlu1 %1005  ;;  %v1009_v12 = vpop.xlane.xlu0 %1008  ;;  %3171 = vrsqrt.f32 %v1061_v59 }
 0x29c   : > { %v1076_v4 = vmul.f32 %v4276_v15, %v1006_v27  ;;  %3173 = vrsqrt.f32 %v1063_v34 }
 0x29e   : > { %v1109_v29 = vadd.f32 %v1088_v61, %v1076_v4 }
 0x29f   : > { %v1012_v7 = vpop.xlane.xlu1 %1011  ;;  %v1015_v22 = vpop.xlane.xlu0 %1014 }
 0x2a2   : > { %v3166_v32 = vpop.eup %3165 }
 0x2a3   : > { %1171 = vperm.xlu1 %3124, %v3166_v32   ;;  %v1096_v14 = vpop.permute.xlu1 %1095  ;;  %v1092_v2 = vpop.permute.xlu0 %1091 }
 0x2a4   : > { %v1107_v3 = vadd.f32 %v1096_v14, %v1074_v55  ;;  %v1106_v52 = vadd.f32 %v1092_v2, %v1073_v60  ;;  %v3168_v46 = vpop.eup %3167 }
 0x2a5   : > { %v1075_v5 = vmul.f32 %v3168_v46, %v1003_v44  ;;  %v3170_v41 = vpop.eup %3169 }
 0x2a6   : > { %3175 = vtanh.f32 %v1107_v3  ;;  %v1078_v11 = vmul.f32 %v3170_v41, %v1012_v7  ;;  %v3172_v59 = vpop.eup %3171  ;;  %v1130_v3 = vmul.f32 %v4271_v24, %v4105_v37 }
 0x2a7   : > { %v1100_v62 = vpop.permute.xlu1 %1099  ;;  %3177 = vtanh.f32 %v1106_v52  ;;  %v1077_v23 = vmul.f32 %v3172_v59, %v1009_v12  ;;  %v4283_v34 = vpop.eup %3173 }
 0x2a8   : > { %v1108_v10 = vadd.f32 %v1100_v62, %v1075_v5  ;;  %3179 = vtanh.f32 %v1109_v29  ;;  %v1111_v27 = vadd.f32 %v1096_v14, %v1078_v11  ;;  %v1079_v32 = vmul.f32 %v4283_v34, %v1015_v22  ;;  %v2845_v14 = vld [vmem:[%s3793_s16 + $0x4] sm:$0x3] }
 0x2a9   : > { %v1110_v35 = vadd.f32 %v1092_v2, %v1077_v23  ;;  %1316 = vst [vmem:[#allocation2] sm:$0x3] %v2845_v14  ;;  %v1129_v2 = vmul.f32 %v4271_v24, %v4103_v31  ;;  %v1146_v11 = vmul.f32 %v1130_v3, %v3998_v1  ;;  %v4298_v23 = vld [vmem:[#allocation7] sm:$0xff]  ;;  %v5129_v3 = vld [vmem:[#allocation22_spill] sm:$0xff] }
 0x2aa   : > { %3181 = vtanh.f32 %v1108_v10  ;;  %v1112_v61 = vadd.f32 %v1100_v62, %v1079_v32  ;;  %v1131_v32 = vmul.f32 %v4274_v18, %v4090_v51  ;;  %v1138_v51 = vmul.f32 %v4276_v15, %v4152_v39  ;;  %v5128_v14 = vld [vmem:[#allocation21_spill] sm:$0xff]  ;;  %v5131_v39 = vld [vmem:[#allocation26_spill] sm:$0xff] }
 0x2ab   : > { %3183 = vtanh.f32 %v1111_v27  ;;  %v1145_v62 = vmul.f32 %v1129_v2, %v3988_v57  ;;  %v4300_v27 = vld [vmem:[#allocation7 + $0x8] sm:$0xff] }
 0x2ac   : > { %3185 = vtanh.f32 %v1110_v35 }
 0x2ad   : > { %3187 = vtanh.f32 %v1112_v61  ;;  %v1133_v61 = vmul.f32 %v4278_v49, %v4128_v19 }
 0x2af   : > { %v1149_v2 = vmul.f32 %v1133_v61, %v5128_v14 }
 0x2b0   : > { %v3176_v60 = vpop.eup %3175 }
 0x2b1   : > { %1181 = vperm.xlu1 %3124, %v3176_v60   ;;  %v3178_v44 = vpop.eup %3177  ;;  %v1132_v60 = vmul.f32 %v4274_v18, %v4092_v56  ;;  %v1135_v56 = vmul.f32 %v3168_v46, %v4155_v36  ;;  %v1136_v18 = vmul.f32 %v3168_v46, %v4159_v58  ;;  %v5132_v46 = vld [vmem:[#allocation23_spill] sm:$0xff] }
 0x2b2   : > { %v3180_v7 = vpop.eup %3179  ;;  %1176 = vperm.xlu0 %3123, %v3178_v44   ;;  %v1134_v44 = vmul.f32 %v4278_v49, %v4131_v42  ;;  %v1142_v42 = vmul.f32 %v3170_v41, %v4182_v28  ;;  %v1139_v49 = vmul.f32 %v3172_v59, %v4185_v45  ;;  %v1143_v45 = vmul.f32 %v4283_v34, %v4206_v38 }
 0x2b3   : > { %v1151_v28 = vmul.f32 %v1135_v56, %v5132_v46  ;;  %v4361_v56 = vmul.f32 %v4283_v34, %v4212_v43 }
 0x2b4   : > { %v3182_v4 = vpop.eup %3181 }
 0x2b5   : > { %1191 = vperm.xlu1 %3124, %v3180_v7   ;;  %v3184_v12 = vpop.eup %3183 }
 0x2b6   : > { %1186 = vperm.xlu0 %3123, %v3182_v4   ;;  %v3186_v55 = vpop.eup %3185 }
 0x2b7   : > { %v3188_v22 = vpop.eup %3187 }
 0x2b9   : > { %1201 = vperm.xlu1 %3124, %v3184_v12   ;;  %v1137_v12 = vmul.f32 %v4276_v15, %v4149_v9  ;;  %v1150_v9 = vmul.f32 %v1134_v44, %v5129_v3  ;;  %v1148_v15 = vmul.f32 %v1132_v60, %v5131_v39 }
 0x2ba   : > { %1196 = vperm.xlu0 %3123, %v3186_v55   ;;  %v1141_v55 = vmul.f32 %v3170_v41, %v4176_v16  ;;  %v1154_v16 = vmul.f32 %v1138_v51, %v3998_v1 }
 0x2bb   : > { %v1153_v58 = vmul.f32 %v1137_v12, %v3988_v57  ;;  %v1158_v57 = vmul.f32 %v1142_v42, %v5129_v3  ;;  %v5135_v42 = vld [vmem:[#allocation27_spill] sm:$0xff] }
 0x2bd   : > { %1500 = vbcast.lane.b32.xlu1 %v3962_v47, 256 }
 0x2be   : > { %1206 = vperm.xlu0 %3123, %v3188_v22   ;;  %v1140_v22 = vmul.f32 %v3172_v59, %v4190_v13  ;;  %v5133_v59 = vld [vmem:[#allocation24_spill] sm:$0xff] }
 0x322   : > { %v1172_v52 = vpop.permute.xlu1 %1171 }
 0x323   : > { %v1209_v29 = vmul.f32 %v1172_v52, %v4236_v17  ;;  %v1210_v5 = vmul.f32 %v1172_v52, %v4239_v40 }
 0x325   : > { %v1225_v47 = vmul.f32 %v1209_v29, %v4069_v50  ;;  %v1226_v10 = vmul.f32 %v1210_v5, %v4071_v53  ;;  %v5130_v29 = vld [vmem:[#allocation25_spill] sm:$0xff] }
 0x326   : > { %v1147_v5 = vmul.f32 %v1131_v32, %v5130_v29  ;;  %v1155_v1 = vmul.f32 %v1139_v49, %v5130_v29  ;;  %v1156_v32 = vmul.f32 %v1140_v22, %v5131_v39 }
 0x327   : > { %v4302_v31 = vadd.f32 %v1225_v47, %v1145_v62  ;;  %v4304_v37 = vadd.f32 %v1226_v10, %v1146_v11  ;;  %v1152_v62 = vmul.f32 %v1136_v18, %v5133_v59  ;;  %v1157_v11 = vmul.f32 %v1141_v55, %v5128_v14 }
 0x328   : > { %v4364_v18 = vmul.f32 %v1143_v45, %v5132_v46 }
 0x329   : > { %v4308_v24 = vadd.f32 %v4298_v23, %v4302_v31  ;;  %v4312_v35 = vadd.f32 %v4300_v27, %v4304_v37 }
 0x32b   : > { %v1429_v7 = vmul.f32 %v4308_v24, %v4308_v24  ;;  %v1430_v4 = vmul.f32 %v4312_v35, %v4312_v35 }
 0x32d   : > { %v1445_v19 = vadd.f32 %v1430_v4, %v1429_v7  ;;  %v5134_v7 = vld [vmem:[#allocation28_spill] sm:$0xff] }
 0x32e   : > { %v1260_v4 = vrot.slane %v1172_v52, %v5134_v7 }
 0x32f   : > { %1446 = vadd.xlane.f32.xlu1 %v1445_v19 }
 0x330   : > { %v1182_v36 = vpop.permute.xlu1 %1181 }
 0x331   : > { %v1213_v13 = vmul.f32 %v1182_v36, %v4236_v17  ;;  %v1214_v41 = vmul.f32 %v1182_v36, %v4239_v40  ;;  %v1269_v47 = vrot.slane %v1182_v36, %v4074_v20  ;;  %v1177_v10 = vpop.permute.xlu0 %1176 }
 0x332   : > { %v1211_v61 = vmul.f32 %v1177_v10, %v4236_v17  ;;  %v1212_v44 = vmul.f32 %v1177_v10, %v4239_v40  ;;  %v1264_v12 = vrot.slane %v1177_v10, %v3996_v8 }
 0x333   : > { %v1229_v60 = vmul.f32 %v1213_v13, %v4096_v21  ;;  %v1230_v38 = vmul.f32 %v1214_v41, %v4098_v25 }
 0x334   : > { %v1192_v51 = vpop.permute.xlu1 %1191  ;;  %v1227_v49 = vmul.f32 %v1211_v61, %v5135_v42  ;;  %v1228_v22 = vmul.f32 %v1212_v44, %v4049_v63  ;;  %v1265_v52 = vsel %vm846_vm2, %v1264_v12, %v1260_v4  ;;  %v4398_v61 = vld [vmem:[#allocation7 + $0x18] sm:$0xff] }
 0x335   : > { %v4366_v19 = vadd.f32 %v1229_v60, %v1149_v2  ;;  %v4368_v55 = vadd.f32 %v1230_v38, %v1150_v9  ;;  %v1217_v14 = vmul.f32 %v1192_v51, %v4254_v54  ;;  %v1218_v3 = vmul.f32 %v1192_v51, %v4257_v33  ;;  %v1187_v34 = vpop.permute.xlu0 %1186 }
 0x336   : > { %v1279_v43 = vrot.slane %v1192_v51, %v5134_v7  ;;  %v4376_v29 = vadd.f32 %v1227_v49, %v1147_v5  ;;  %v4378_v39 = vadd.f32 %v1228_v22, %v1148_v15  ;;  %v1270_v2 = vsel %vm853_vm3, %v1269_v47, %v1265_v52  ;;  %v4390_v47 = vld [vmem:[#allocation7 + $0x10] sm:$0xff] }
 0x337   : > { %v1215_v9 = vmul.f32 %v1187_v34, %v4236_v17  ;;  %v1233_v36 = vmul.f32 %v1217_v14, %v4069_v50  ;;  %v1234_v46 = vmul.f32 %v1218_v3, %v4071_v53  ;;  %v1216_v45 = vmul.f32 %v1187_v34, %v4239_v40 }
 0x338   : > { %v1274_v13 = vrot.slane %v1187_v34, %v4088_v30  ;;  %v1202_v41 = vpop.permute.xlu1 %1201  ;;  %v4411_v22 = vadd.f32 %v4390_v47, %v4376_v29 }
 0x339   : > { %v1231_v10 = vmul.f32 %v1215_v9, %v4115_v6  ;;  %v1221_v5 = vmul.f32 %v1202_v41, %v4254_v54  ;;  %v1222_v15 = vmul.f32 %v1202_v41, %v4257_v33  ;;  %v1288_v60 = vrot.slane %v1202_v41, %v4074_v20  ;;  %v1197_v38 = vpop.permute.xlu0 %1196 }
 0x33a   : > { %v4392_v17 = vadd.f32 %v1233_v36, %v1153_v58  ;;  %v4394_v50 = vadd.f32 %v1234_v46, %v1154_v16  ;;  %v1232_v53 = vmul.f32 %v1216_v45, %v4124_v48  ;;  %v1275_v40 = vsel %vm860_vm4, %v1274_v13, %v1270_v2  ;;  %v4437_v36 = vld [vmem:[#allocation7 + $0x28] sm:$0xff] }
 0x33b   : > { %v4400_v44 = vadd.f32 %v1231_v10, %v1151_v28  ;;  %v1237_v4 = vmul.f32 %v1221_v5, %v4096_v21  ;;  %v1238_v12 = vmul.f32 %v1222_v15, %v4098_v25  ;;  %v1219_v51 = vmul.f32 %v1197_v38, %v4254_v54 }
 0x33c   : > { %v4405_v49 = vadd.f32 %v1232_v53, %v1152_v62  ;;  %v1220_v58 = vmul.f32 %v1197_v38, %v4257_v33  ;;  %v1283_v16 = vrot.slane %v1197_v38, %v3996_v8  ;;  %v4420_v25 = vadd.f32 %v4398_v61, %v4378_v39 }
 0x33d   : > { %v4413_v52 = vadd.f32 %v1237_v4, %v1157_v11  ;;  %v4415_v28 = vadd.f32 %v1238_v12, %v1158_v57  ;;  %v1235_v21 = vmul.f32 %v1219_v51, %v5135_v42  ;;  %v1207_v3 = vpop.permute.xlu0 %1206  ;;  %v1431_v34 = vmul.f32 %v4411_v22, %v4411_v22  ;;  %v4430_v57 = vld [vmem:[#allocation7 + $0x20] sm:$0xff] }
 0x33e   : > { %v1236_v62 = vmul.f32 %v1220_v58, %v4049_v63  ;;  %v1284_v14 = vsel %vm846_vm2, %v1283_v16, %v1279_v43  ;;  %v4428_v11 = vadd.f32 %v4298_v23, %v4392_v17  ;;  %v1223_v9 = vmul.f32 %v1207_v3, %v4254_v54 }
 0x33f   : > { %v4432_v2 = vadd.f32 %v1235_v21, %v1155_v1  ;;  %v1289_v42 = vsel %vm853_vm3, %v1288_v60, %v1284_v14  ;;  %v1224_v63 = vmul.f32 %v1207_v3, %v4257_v33  ;;  %v1293_v46 = vrot.slane %v1207_v3, %v4088_v30  ;;  %v4459_v60 = vld [vmem:[#allocation7 + $0x30] sm:$0xff] }
 0x340   : > { %v4439_v43 = vadd.f32 %v1236_v62, %v1156_v32  ;;  %v1432_v45 = vmul.f32 %v4420_v25, %v4420_v25  ;;  %v4446_v13 = vadd.f32 %v4300_v27, %v4394_v50  ;;  %v1239_v1 = vmul.f32 %v1223_v9, %v4115_v6  ;;  %v4461_v6 = vld [vmem:[#allocation7 + $0x38] sm:$0xff] }
 0x341   : > { %v1240_v41 = vmul.f32 %v1224_v63, %v4124_v48  ;;  %v1437_v54 = vmul.f32 %v4428_v11, %v4428_v11  ;;  %v1348_v33 = vadd.f32 %v4430_v57, %v4366_v19  ;;  %v1294_v32 = vsel %vm860_vm4, %v1293_v46, %v1289_v42 }
 0x342   : > { %v1448_v10 = vadd.f32 %v1432_v45, %v1431_v34  ;;  %v1438_v5 = vmul.f32 %v4446_v13, %v4446_v13  ;;  %v1349_v15 = vadd.f32 %v4437_v36, %v4368_v55  ;;  %v1160_v48 = vmul.f32 %v4361_v56, %v5133_v59 }
 0x343   : > { %v4466_v53 = vadd.f32 %v1239_v1, %v4364_v18  ;;  %v1295_v38 = vsel %vm881_vm5, %v1294_v32, %v1275_v40  ;;  %v1433_v4 = vmul.f32 %v1348_v33, %v1348_v33  ;;  %v1356_v58 = vadd.f32 %v4430_v57, %v4413_v52 }
 0x344   : > { %1297 = vst.msk [vmem:[#allocation13] sm:$0x3] %vm482_vm1, %v1295_v38  ;;  %1449 = vadd.xlane.f32.xlu0 %v1448_v10  ;;  %v1457_v12 = vadd.f32 %v1438_v5, %v1437_v54  ;;  %v1434_v51 = vmul.f32 %v1349_v15, %v1349_v15  ;;  %v1357_v16 = vadd.f32 %v4437_v36, %v4415_v28 }
 0x345   : > { %v4474_v21 = vadd.f32 %v1240_v41, %v1160_v48  ;;  %v1350_v59 = vadd.f32 %v4459_v60, %v4400_v44  ;;  %v1351_v56 = vadd.f32 %v4461_v6, %v4405_v49  ;;  %v1354_v18 = vadd.f32 %v4390_v47, %v4432_v2  ;;  %v2848_v48 = vld [vmem:[%s3793_s16 + $0x6] sm:$0x3] }
 0x346   : > { %1458 = vadd.xlane.f32.xlu1 %v1457_v12  ;;  %v1451_v40 = vadd.f32 %v1434_v51, %v1433_v4  ;;  %v1441_v62 = vmul.f32 %v1356_v58, %v1356_v58  ;;  %v1442_v14 = vmul.f32 %v1357_v16, %v1357_v16  ;;  %v1355_v3 = vadd.f32 %v4398_v61, %v4439_v43 }
 0x347   : > { %v1435_v34 = vmul.f32 %v1350_v59, %v1350_v59  ;;  %v1436_v42 = vmul.f32 %v1351_v56, %v1351_v56  ;;  %v1358_v63 = vadd.f32 %v4459_v60, %v4466_v53  ;;  %v1439_v45 = vmul.f32 %v1354_v18, %v1354_v18 }
 0x348   : > { %1452 = vadd.xlane.f32.xlu0 %v1451_v40  ;;  %v1463_v9 = vadd.f32 %v1442_v14, %v1441_v62  ;;  %v1440_v1 = vmul.f32 %v1355_v3, %v1355_v3  ;;  %v1359_v41 = vadd.f32 %v4461_v6, %v4474_v21 }
 0x349   : > { %v1454_v46 = vadd.f32 %v1436_v42, %v1435_v34  ;;  %v1443_v10 = vmul.f32 %v1358_v63, %v1358_v63 }
 0x34a   : > { %1464 = vadd.xlane.f32.xlu1 %v1463_v9  ;;  %v1460_v32 = vadd.f32 %v1440_v1, %v1439_v45  ;;  %v1444_v5 = vmul.f32 %v1359_v41, %v1359_v41 }
 0x34b   : > { %v1317_v54 = vld [vmem:[#allocation13] sm:$0x3] }
 0x34c   : > { %1318 = vst.msk [vmem:[#allocation2 + $0x2] sm:$0x3] %vm482_vm1, %v1317_v54  ;;  %1455 = vadd.xlane.f32.xlu0 %v1454_v46  ;;  %v1466_v38 = vadd.f32 %v1444_v5, %v1443_v10 }
 0x350   : > { %1461 = vadd.xlane.f32.xlu0 %v1460_v32 }
 0x353   : > { %v2846_v4 = vld.sshfl [vmem:[#allocation2] sm:$0x33 pattern:$0x75316420] }
 0x354   : > { %1467 = vadd.xlane.f32.xlu0 %v1466_v38  ;;  %v4491_v12 = vrot.slane %v2846_v4, %v3919_v0  ;;  %v4494_v51 = vrot.slane %v2846_v4, %v3922_v26  ;;  %1729 = vst [vmem:[#allocation2] sm:$0x3] %v2848_v48  ;;  %v1368_v40 = vcombine.high %v2846_v4, %v2846_v4 }
 0x356   : > { %v1389_v62 = vmul.f32 %v4491_v12, %v4308_v24  ;;  %v1390_v14 = vmul.f32 %v4494_v51, %v4312_v35  ;;  %v1391_v34 = vmul.f32 %v4491_v12, %v4411_v22  ;;  %v1392_v42 = vmul.f32 %v4494_v51, %v4420_v25 }
 0x357   : > { %v1393_v9 = vmul.f32 %v4491_v12, %v1348_v33  ;;  %v1394_v46 = vmul.f32 %v4494_v51, %v1349_v15  ;;  %v1395_v45 = vmul.f32 %v4491_v12, %v1350_v59  ;;  %v1396_v1 = vmul.f32 %v4494_v51, %v1351_v56 }
 0x358   : > { %v1405_v54 = vadd.f32 %v1390_v14, %v1389_v62  ;;  %v1408_v32 = vadd.f32 %v1392_v42, %v1391_v34  ;;  %v4509_v24 = vrot.slane %v1368_v40, %v3919_v0  ;;  %v4512_v35 = vrot.slane %v1368_v40, %v3922_v26 }
 0x359   : > { %v1411_v22 = vadd.f32 %v1394_v46, %v1393_v9  ;;  %v1414_v25 = vadd.f32 %v1396_v1, %v1395_v45 }
 0x35a   : > { %1406 = vadd.xlane.f32.xlu1 %v1405_v54  ;;  %1409 = vadd.xlane.f32.xlu0 %v1408_v32  ;;  %v1397_v33 = vmul.f32 %v4509_v24, %v4428_v11  ;;  %v1398_v15 = vmul.f32 %v4512_v35, %v4446_v13  ;;  %v1399_v59 = vmul.f32 %v4509_v24, %v1354_v18  ;;  %v3253_v18 = vld [vmem:[%s5061_s4] ss:$0 sm:$0xff] }
 0x35b   : > { %v1400_v56 = vmul.f32 %v4512_v35, %v1355_v3  ;;  %v1401_v10 = vmul.f32 %v4509_v24, %v1356_v58  ;;  %v1402_v5 = vmul.f32 %v4512_v35, %v1357_v16  ;;  %v1403_v4 = vmul.f32 %v4509_v24, %v1358_v63  ;;  %v1501_v16 = vpop.permute.xlu1 %1500 }
 0x35c   : > { %v1417_v48 = vadd.f32 %v1398_v15, %v1397_v33  ;;  %v1404_v40 = vmul.f32 %v4512_v35, %v1359_v41 }
 0x35d   : > { %v1420_v38 = vadd.f32 %v1400_v56, %v1399_v59  ;;  %v1423_v11 = vadd.f32 %v1402_v5, %v1401_v10 }
 0x35e   : > { %1412 = vadd.xlane.f32.xlu1 %v1411_v22  ;;  %1415 = vadd.xlane.f32.xlu0 %v1414_v25  ;;  %v1426_v13 = vadd.f32 %v1404_v40, %v1403_v4 }
 0x362   : > { %1418 = vadd.xlane.f32.xlu1 %v1417_v48  ;;  %1421 = vadd.xlane.f32.xlu0 %v1420_v38 }
 0x366   : > { %1424 = vadd.xlane.f32.xlu1 %v1423_v11  ;;  %1427 = vadd.xlane.f32.xlu0 %v1426_v13 }
 0x377   : > { %1508 = vbcast.lane.b32.xlu1 %v3253_v18, 272 }
 0x37b   : > { %1512 = vbcast.lane.b32.xlu1 %v3253_v18, 280 }
 0x37c   : > { %1504 = vbcast.lane.b32.xlu0 %v3253_v18, 264 }
 0x3bc   : > { %v1447_v62 = vpop.xlane.xlu1 %1446 }
 0x3bd   : > { %v1469_v63 = vadd.f32 1e-16, %v1447_v62 }
 0x3bf   : > { %3189 = vrsqrt.f32 %v1469_v63 }
 0x3c9   : > { %v4527_v1 = vpop.eup %3189 }
 0x3d1   : > { %v1450_v58 = vpop.xlane.xlu0 %1449 }
 0x3d2   : > { %v1470_v46 = vadd.f32 1e-16, %v1450_v58 }
 0x3d3   : > { %v1459_v41 = vpop.xlane.xlu1 %1458 }
 0x3d4   : > { %v1473_v45 = vadd.f32 1e-16, %v1459_v41  ;;  %3191 = vrsqrt.f32 %v1470_v46 }
 0x3d5   : > { %v1453_v3 = vpop.xlane.xlu0 %1452 }
 0x3d6   : > { %v1471_v54 = vadd.f32 1e-16, %v1453_v3  ;;  %3193 = vrsqrt.f32 %v1473_v45 }
 0x3d7   : > { %v1465_v42 = vpop.xlane.xlu1 %1464 }
 0x3d8   : > { %3195 = vrsqrt.f32 %v1471_v54  ;;  %v1475_v10 = vadd.f32 1e-16, %v1465_v42 }
 0x3d9   : > { %v1456_v14 = vpop.xlane.xlu0 %1455 }
 0x3da   : > { %v1472_v15 = vadd.f32 1e-16, %v1456_v14 }
 0x3dd   : > { %v1462_v34 = vpop.xlane.xlu0 %1461 }
 0x3de   : > { %v1474_v5 = vadd.f32 1e-16, %v1462_v34  ;;  %v4530_v4 = vpop.eup %3191 }
 0x3e0   : > { %v4532_v18 = vpop.eup %3193 }
 0x3e1   : > { %v1468_v9 = vpop.xlane.xlu0 %1467 }
 0x3e2   : > { %v1476_v40 = vadd.f32 1e-16, %v1468_v9  ;;  %v4534_v58 = vpop.eup %3195 }
 0x3e7   : > { %v1407_v32 = vpop.xlane.xlu1 %1406  ;;  %v1410_v22 = vpop.xlane.xlu0 %1409 }
 0x3e8   : > { %v1485_v25 = vmul.f32 %v4527_v1, %v1407_v32  ;;  %v1486_v63 = vmul.f32 %v4530_v4, %v1410_v22 }
 0x3ea   : > { %v1518_v33 = vadd.f32 %v1501_v16, %v1485_v25 }
 0x3eb   : > { %v1413_v59 = vpop.xlane.xlu1 %1412  ;;  %v1416_v56 = vpop.xlane.xlu0 %1415 }
 0x3ec   : > { %3197 = vtanh.f32 %v1518_v33  ;;  %v1487_v14 = vmul.f32 %v4534_v58, %v1413_v59 }
 0x3ed   : > { %3199 = vrsqrt.f32 %v1472_v15 }
 0x3ee   : > { %3201 = vrsqrt.f32 %v1475_v10 }
 0x3ef   : > { %v1419_v48 = vpop.xlane.xlu1 %1418  ;;  %v1422_v38 = vpop.xlane.xlu0 %1421  ;;  %3203 = vrsqrt.f32 %v1474_v5 }
 0x3f0   : > { %v1489_v3 = vmul.f32 %v4532_v18, %v1419_v48  ;;  %3205 = vrsqrt.f32 %v1476_v40 }
 0x3f2   : > { %v1522_v45 = vadd.f32 %v1501_v16, %v1489_v3 }
 0x3f3   : > { %v1425_v11 = vpop.xlane.xlu1 %1424  ;;  %v1428_v13 = vpop.xlane.xlu0 %1427 }
 0x3f6   : > { %v3198_v62 = vpop.eup %3197 }
 0x3f7   : > { %1584 = vperm.xlu1 %3124, %v3198_v62   ;;  %v1509_v41 = vpop.permute.xlu1 %1508  ;;  %v1505_v34 = vpop.permute.xlu0 %1504 }
 0x3f8   : > { %v1520_v42 = vadd.f32 %v1509_v41, %v1487_v14  ;;  %v1519_v46 = vadd.f32 %v1505_v34, %v1486_v63  ;;  %v4539_v9 = vpop.eup %3199  ;;  %v4554_v14 = vld [vmem:[%s5061_s4] ss:$0 sm:$0xff] }
 0x3f9   : > { %v1488_v54 = vmul.f32 %v4539_v9, %v1416_v56  ;;  %v4542_v32 = vpop.eup %3201 }
 0x3fa   : > { %3207 = vtanh.f32 %v1520_v42  ;;  %v1491_v33 = vmul.f32 %v4542_v32, %v1425_v11  ;;  %v4545_v15 = vpop.eup %3203  ;;  %v1543_v42 = vmul.f32 %v4527_v1, %v4304_v37 }
 0x3fb   : > { %v1513_v25 = vpop.permute.xlu1 %1512  ;;  %3209 = vtanh.f32 %v1519_v46  ;;  %v1490_v59 = vmul.f32 %v4545_v15, %v1422_v38  ;;  %v4548_v48 = vpop.eup %3205  ;;  %v4563_v46 = vld [vmem:[#allocation9 + $0x8] sm:$0xff] }
 0x3fc   : > { %v1521_v22 = vadd.f32 %v1513_v25, %v1488_v54  ;;  %3211 = vtanh.f32 %v1522_v45  ;;  %v1524_v10 = vadd.f32 %v1509_v41, %v1491_v33  ;;  %v1492_v16 = vmul.f32 %v4548_v48, %v1428_v13  ;;  %v4557_v41 = vld [vmem:[#allocation9] sm:$0xff]  ;;  %5136 = vst [vmem:[#allocation21_spill] sm:$0xff] %v4563_v46  ;;  %v4567_v54 = vld [vmem:[#allocation10 + $0x8] sm:$0xff] }
 0x3fd   : > { %v1523_v5 = vadd.f32 %v1505_v34, %v1490_v59  ;;  %v1542_v34 = vmul.f32 %v4527_v1, %v4302_v31  ;;  %v4565_v45 = vld [vmem:[#allocation10] sm:$0xff]  ;;  %5137 = vst [vmem:[#allocation22_spill] sm:$0xff] %v4567_v54  ;;  %v1559_v31 = vmul.f32 %v1543_v42, %v4563_v46 }
 0x3fe   : > { %3213 = vtanh.f32 %v1521_v22  ;;  %v1525_v40 = vadd.f32 %v1513_v25, %v1492_v16 }
 0x3ff   : > { %3215 = vtanh.f32 %v1524_v10  ;;  %v1558_v59 = vmul.f32 %v1542_v34, %v4557_v41  ;;  %v4607_v34 = vld [vmem:[#allocation9 + $0x10] sm:$0xff] }
 0x400   : > { %3217 = vtanh.f32 %v1523_v5  ;;  %5138 = vst [vmem:[#allocation25_spill] sm:$0xff] %v4607_v34 }
 0x401   : > { %3219 = vtanh.f32 %v1525_v40  ;;  %v1544_v40 = vmul.f32 %v4530_v4, %v4376_v29  ;;  %v1547_v29 = vmul.f32 %v4534_v58, %v4368_v55  ;;  %v1549_v55 = vmul.f32 %v4539_v9, %v4405_v49 }
 0x404   : > { %v3208_v56 = vpop.eup %3207 }
 0x405   : > { %1594 = vperm.xlu1 %3124, %v3208_v56   ;;  %v3210_v11 = vpop.eup %3209 }
 0x406   : > { %v3212_v3 = vpop.eup %3211  ;;  %1589 = vperm.xlu0 %3123, %v3210_v11   ;;  %v1545_v11 = vmul.f32 %v4530_v4, %v4378_v39  ;;  %v4609_v39 = vld [vmem:[#allocation9 + $0x18] sm:$0xff]  ;;  %v4615_v4 = vld [vmem:[#allocation9 + $0x28] sm:$0xff] }
 0x407   : > { %5139 = vst [vmem:[#allocation26_spill] sm:$0xff] %v4609_v39  ;;  %5141 = vst [vmem:[#allocation24_spill] sm:$0xff] %v4615_v4  ;;  %v1563_v49 = vmul.f32 %v1547_v29, %v4615_v4 }
 0x408   : > { %v3214_v62 = vpop.eup %3213 }
 0x409   : > { %1604 = vperm.xlu1 %3124, %v3212_v3   ;;  %v3216_v38 = vpop.eup %3215  ;;  %v1550_v3 = vmul.f32 %v4532_v18, %v4392_v17  ;;  %v1554_v17 = vmul.f32 %v4542_v32, %v4413_v52  ;;  %v1553_v52 = vmul.f32 %v4545_v15, %v4439_v43 }
 0x40a   : > { %1599 = vperm.xlu0 %3123, %v3214_v62   ;;  %v3218_v63 = vpop.eup %3217  ;;  %v1551_v62 = vmul.f32 %v4532_v18, %v4394_v50  ;;  %v4613_v50 = vld [vmem:[#allocation9 + $0x20] sm:$0xff]  ;;  %v1548_v18 = vmul.f32 %v4539_v9, %v4400_v44 }
 0x40b   : > { %v3220_v13 = vpop.eup %3219  ;;  %5140 = vst [vmem:[#allocation23_spill] sm:$0xff] %v4613_v50  ;;  %v1566_v44 = vmul.f32 %v1550_v3, %v4557_v41  ;;  %v4637_v9 = vld [vmem:[#allocation10 + $0x20] sm:$0xff] }
 0x40d   : > { %1614 = vperm.xlu1 %3124, %v3216_v38  }
 0x40e   : > { %1609 = vperm.xlu0 %3123, %v3218_v63  }
 0x411   : > { %1913 = vbcast.lane.b32.xlu1 %v4554_v14, 256 }
 0x412   : > { %1619 = vperm.xlu0 %3123, %v3220_v13   ;;  %v1546_v13 = vmul.f32 %v4534_v58, %v4366_v19  ;;  %v1555_v19 = vmul.f32 %v4542_v32, %v4415_v28  ;;  %v1552_v58 = vmul.f32 %v4545_v15, %v4432_v2  ;;  %v4633_v28 = vld [vmem:[#allocation9 + $0x38] sm:$0xff]  ;;  %v4639_v2 = vld [vmem:[#allocation10 + $0x28] sm:$0xff]  ;;  %v1570_v15 = vmul.f32 %v1554_v17, %v4613_v50 }
 0x413   : > { %v1565_v29 = vmul.f32 %v1549_v55, %v4633_v28  ;;  %v4665_v55 = vmul.f32 %v4548_v48, %v4474_v21 }
 0x414   : > { %v1562_v32 = vmul.f32 %v1546_v13, %v4613_v50  ;;  %v1571_v3 = vmul.f32 %v1555_v19, %v4615_v4  ;;  %v1568_v17 = vmul.f32 %v1552_v58, %v4607_v34 }
 0x476   : > { %v4569_v25 = vpop.permute.xlu1 %1584 }
 0x477   : > { %v1622_v33 = vmul.f32 %v4569_v25, %v4491_v12  ;;  %v1623_v22 = vmul.f32 %v4569_v25, %v4494_v51 }
 0x479   : > { %v1638_v37 = vmul.f32 %v1622_v33, %v4565_v45  ;;  %v1639_v1 = vmul.f32 %v1623_v22, %v4567_v54  ;;  %v4621_v33 = vld [vmem:[#allocation9 + $0x30] sm:$0xff]  ;;  %v1560_v22 = vmul.f32 %v1544_v40, %v4607_v34 }
 0x47a   : > { %5142 = vst [vmem:[#allocation27_spill] sm:$0xff] %v4621_v33 }
 0x47b   : > { %v4579_v10 = vadd.f32 %v1638_v37, %v1558_v59  ;;  %v4581_v5 = vadd.f32 %v1639_v1, %v1559_v31  ;;  %v1561_v59 = vmul.f32 %v1545_v11, %v4609_v39  ;;  %v1567_v31 = vmul.f32 %v1551_v62, %v4563_v46 }
 0x47c   : > { %v1556_v37 = vmul.f32 %v4548_v48, %v4466_v53  ;;  %v1564_v11 = vmul.f32 %v1548_v18, %v4621_v33  ;;  %v1569_v53 = vmul.f32 %v1553_v52, %v4609_v39  ;;  %v4680_v48 = vld [vmem:[#allocation10 + $0x30] sm:$0xff] }
 0x47d   : > { %v4585_v16 = vadd.f32 %v4579_v10, %v4298_v23  ;;  %v4589_v56 = vadd.f32 %v4581_v5, %v4300_v27 }
 0x47e   : > { %v4668_v58 = vmul.f32 %v1556_v37, %v4621_v33 }
 0x47f   : > { %v1842_v38 = vmul.f32 %v4585_v16, %v4585_v16  ;;  %v1843_v63 = vmul.f32 %v4589_v56, %v4589_v56 }
 0x481   : > { %v1858_v42 = vadd.f32 %v1843_v63, %v1842_v38  ;;  %v4649_v38 = vld [vmem:[#allocation10 + $0x10] sm:$0xff]  ;;  %v4651_v63 = vld [vmem:[#allocation10 + $0x18] sm:$0xff] }
 0x483   : > { %1859 = vadd.xlane.f32.xlu1 %v1858_v42 }
 0x484   : > { %v1595_v43 = vpop.permute.xlu1 %1594 }
 0x485   : > { %v1626_v1 = vmul.f32 %v1595_v43, %v4491_v12  ;;  %v1627_v40 = vmul.f32 %v1595_v43, %v4494_v51  ;;  %v1682_v62 = vrot.slane %v1595_v43, %v4074_v20  ;;  %v1590_v13 = vpop.permute.xlu0 %1589  ;;  %v1673_v43 = vrot.slane %v4569_v25, %v5134_v7 }
 0x486   : > { %v1624_v18 = vmul.f32 %v1590_v13, %v4491_v12  ;;  %v1625_v19 = vmul.f32 %v1590_v13, %v4494_v51  ;;  %v1677_v4 = vrot.slane %v1590_v13, %v3996_v8 }
 0x487   : > { %v1642_v42 = vmul.f32 %v1626_v1, %v4637_v9  ;;  %v1643_v50 = vmul.f32 %v1627_v40, %v4639_v2 }
 0x488   : > { %v1605_v46 = vpop.permute.xlu1 %1604  ;;  %v1640_v40 = vmul.f32 %v1624_v18, %v4649_v38  ;;  %v1641_v39 = vmul.f32 %v1625_v19, %v4651_v63  ;;  %v1678_v25 = vsel %vm846_vm2, %v1677_v4, %v1673_v43 }
 0x489   : > { %v4670_v52 = vadd.f32 %v1642_v42, %v1562_v32  ;;  %v4672_v1 = vadd.f32 %v1643_v50, %v1563_v49  ;;  %v1630_v13 = vmul.f32 %v1605_v46, %v4509_v24  ;;  %v1631_v34 = vmul.f32 %v1605_v46, %v4512_v35  ;;  %v1600_v37 = vpop.permute.xlu0 %1599  ;;  %v4686_v50 = vld [vmem:[#allocation10 + $0x38] sm:$0xff] }
 0x48a   : > { %v1692_v21 = vrot.slane %v1605_v46, %v5134_v7  ;;  %v4682_v33 = vadd.f32 %v1640_v40, %v1560_v22  ;;  %v4684_v32 = vadd.f32 %v1641_v39, %v1561_v59  ;;  %v1683_v49 = vsel %vm853_vm3, %v1682_v62, %v1678_v25 }
 0x48b   : > { %v1628_v42 = vmul.f32 %v1600_v37, %v4491_v12  ;;  %v1646_v4 = vmul.f32 %v1630_v13, %v4565_v45  ;;  %v1647_v18 = vmul.f32 %v1631_v34, %v4567_v54  ;;  %v1629_v19 = vmul.f32 %v1600_v37, %v4494_v51 }
 0x48c   : > { %v1687_v46 = vrot.slane %v1600_v37, %v4088_v30  ;;  %v1615_v43 = vpop.permute.xlu1 %1614 }
 0x48d   : > { %v1644_v22 = vmul.f32 %v1628_v42, %v4680_v48  ;;  %v1634_v39 = vmul.f32 %v1615_v43, %v4509_v24  ;;  %v1635_v59 = vmul.f32 %v1615_v43, %v4512_v35  ;;  %v1701_v40 = vrot.slane %v1615_v43, %v4074_v20  ;;  %v1610_v51 = vpop.permute.xlu0 %1609 }
 0x48e   : > { %v4698_v62 = vadd.f32 %v1646_v4, %v1566_v44  ;;  %v4700_v12 = vadd.f32 %v1647_v18, %v1567_v31  ;;  %v1645_v25 = vmul.f32 %v1629_v19, %v4686_v50  ;;  %v1688_v34 = vsel %vm860_vm4, %v1687_v46, %v1683_v49 }
 0x48f   : > { %v4704_v13 = vadd.f32 %v1644_v22, %v1564_v11  ;;  %v1650_v37 = vmul.f32 %v1634_v39, %v4637_v9  ;;  %v1651_v42 = vmul.f32 %v1635_v59, %v4639_v2  ;;  %v1632_v7 = vmul.f32 %v1610_v51, %v4509_v24 }
 0x490   : > { %v4709_v54 = vadd.f32 %v1645_v25, %v1565_v29  ;;  %v1633_v44 = vmul.f32 %v1610_v51, %v4512_v35  ;;  %v1696_v31 = vrot.slane %v1610_v51, %v3996_v8  ;;  %v4715_v4 = vadd.f32 %v4682_v33, %v4390_v47 }
 0x491   : > { %v4717_v49 = vadd.f32 %v1650_v37, %v1570_v15  ;;  %v4719_v11 = vadd.f32 %v1651_v42, %v1571_v3  ;;  %v1648_v18 = vmul.f32 %v1632_v7, %v4649_v38  ;;  %v4724_v19 = vadd.f32 %v4684_v32, %v4398_v61  ;;  %v1620_v43 = vpop.permute.xlu0 %1619 }
 0x492   : > { %v1649_v29 = vmul.f32 %v1633_v44, %v4651_v63  ;;  %v1697_v46 = vsel %vm846_vm2, %v1696_v31, %v1692_v21  ;;  %v1844_v22 = vmul.f32 %v4715_v4, %v4715_v4  ;;  %v4732_v15 = vadd.f32 %v4698_v62, %v4298_v23 }
 0x493   : > { %v4734_v3 = vadd.f32 %v1648_v18, %v1568_v17  ;;  %v1702_v7 = vsel %vm853_vm3, %v1701_v40, %v1697_v46  ;;  %v1636_v39 = vmul.f32 %v1620_v43, %v4509_v24  ;;  %v1637_v59 = vmul.f32 %v1620_v43, %v4512_v35 }
 0x494   : > { %v4739_v25 = vadd.f32 %v1649_v29, %v1569_v53  ;;  %v1706_v21 = vrot.slane %v1620_v43, %v4088_v30  ;;  %v1845_v51 = vmul.f32 %v4724_v19, %v4724_v19  ;;  %v4746_v37 = vadd.f32 %v4700_v12, %v4300_v27 }
 0x495   : > { %v1652_v23 = vmul.f32 %v1636_v39, %v4680_v48  ;;  %v1653_v17 = vmul.f32 %v1637_v59, %v4686_v50  ;;  %v1850_v24 = vmul.f32 %v4732_v15, %v4732_v15  ;;  %v1761_v35 = vadd.f32 %v4670_v52, %v4430_v57 }
 0x496   : > { %v1707_v53 = vsel %vm860_vm4, %v1706_v21, %v1702_v7  ;;  %v1861_v40 = vadd.f32 %v1845_v51, %v1844_v22  ;;  %v1851_v42 = vmul.f32 %v4746_v37, %v4746_v37  ;;  %v1762_v27 = vadd.f32 %v4672_v1, %v4437_v36 }
 0x497   : > { %v1573_v44 = vmul.f32 %v4665_v55, %v4633_v28  ;;  %v4762_v31 = vadd.f32 %v1652_v23, %v4668_v58  ;;  %v1708_v18 = vsel %vm881_vm5, %v1707_v53, %v1688_v34  ;;  %v1846_v29 = vmul.f32 %v1761_v35, %v1761_v35 }
 0x498   : > { %1710 = vst.msk [vmem:[#allocation13] sm:$0x3] %vm482_vm1, %v1708_v18  ;;  %1862 = vadd.xlane.f32.xlu0 %v1861_v40  ;;  %v1870_v46 = vadd.f32 %v1851_v42, %v1850_v24  ;;  %v1847_v43 = vmul.f32 %v1762_v27, %v1762_v27  ;;  %v1769_v22 = vadd.f32 %v4717_v49, %v4430_v57 }
 0x499   : > { %v1770_v7 = vadd.f32 %v4719_v11, %v4437_v36  ;;  %v4770_v39 = vadd.f32 %v1653_v17, %v1573_v44  ;;  %v1763_v55 = vadd.f32 %v4704_v13, %v4459_v60  ;;  %v1764_v58 = vadd.f32 %v4709_v54, %v4461_v6 }
 0x49a   : > { %v1767_v34 = vadd.f32 %v4734_v3, %v4390_v47  ;;  %1871 = vadd.xlane.f32.xlu1 %v1870_v46  ;;  %v1864_v59 = vadd.f32 %v1847_v43, %v1846_v29  ;;  %v1854_v21 = vmul.f32 %v1769_v22, %v1769_v22  ;;  %v1768_v57 = vadd.f32 %v4739_v25, %v4398_v61 }
 0x49b   : > { %v1855_v51 = vmul.f32 %v1770_v7, %v1770_v7  ;;  %v1848_v23 = vmul.f32 %v1763_v55, %v1763_v55  ;;  %v1849_v36 = vmul.f32 %v1764_v58, %v1764_v58  ;;  %v1771_v24 = vadd.f32 %v4762_v31, %v4459_v60 }
 0x49c   : > { %1865 = vadd.xlane.f32.xlu0 %v1864_v59  ;;  %v1852_v40 = vmul.f32 %v1767_v34, %v1767_v34  ;;  %v1853_v42 = vmul.f32 %v1768_v57, %v1768_v57  ;;  %v1772_v47 = vadd.f32 %v4770_v39, %v4461_v6 }
 0x49d   : > { %v1876_v17 = vadd.f32 %v1855_v51, %v1854_v21  ;;  %v1867_v53 = vadd.f32 %v1849_v36, %v1848_v23  ;;  %v1856_v61 = vmul.f32 %v1771_v24, %v1771_v24 }
 0x49e   : > { %v1873_v18 = vadd.f32 %v1853_v42, %v1852_v40  ;;  %v1857_v29 = vmul.f32 %v1772_v47, %v1772_v47 }
 0x49f   : > { %1877 = vadd.xlane.f32.xlu1 %v1876_v17  ;;  %v1730_v44 = vld [vmem:[#allocation13] sm:$0x3] }
 0x4a0   : > { %1731 = vst.msk [vmem:[#allocation2 + $0x2] sm:$0x3] %vm482_vm1, %v1730_v44  ;;  %1868 = vadd.xlane.f32.xlu0 %v1867_v53  ;;  %v1879_v46 = vadd.f32 %v1857_v29, %v1856_v61 }
 0x4a4   : > { %1874 = vadd.xlane.f32.xlu0 %v1873_v18 }
 0x4a7   : > { %v2849_v43 = vld.sshfl [vmem:[#allocation2] sm:$0x33 pattern:$0x75316420] }
 0x4a8   : > { %1880 = vadd.xlane.f32.xlu0 %v1879_v46  ;;  %v4786_v60 = vrot.slane %v2849_v43, %v3919_v0  ;;  %v4789_v59 = vrot.slane %v2849_v43, %v3922_v26  ;;  %v1781_v21 = vcombine.high %v2849_v43, %v2849_v43 }
 0x4aa   : > { %v1802_v6 = vmul.f32 %v4786_v60, %v4585_v16  ;;  %v1803_v51 = vmul.f32 %v4789_v59, %v4589_v56  ;;  %v1804_v23 = vmul.f32 %v4786_v60, %v4715_v4  ;;  %v1805_v36 = vmul.f32 %v4789_v59, %v4724_v19 }
 0x4ab   : > { %v1806_v17 = vmul.f32 %v4786_v60, %v1761_v35  ;;  %v1807_v53 = vmul.f32 %v4789_v59, %v1762_v27  ;;  %v1808_v40 = vmul.f32 %v4786_v60, %v1763_v55  ;;  %v1809_v42 = vmul.f32 %v4789_v59, %v1764_v58 }
 0x4ac   : > { %v1818_v44 = vadd.f32 %v1803_v51, %v1802_v6  ;;  %v1821_v18 = vadd.f32 %v1805_v36, %v1804_v23  ;;  %v4804_v16 = vrot.slane %v1781_v21, %v3919_v0  ;;  %v4807_v56 = vrot.slane %v1781_v21, %v3922_v26 }
 0x4ad   : > { %v1824_v4 = vadd.f32 %v1807_v53, %v1806_v17  ;;  %v1827_v19 = vadd.f32 %v1809_v42, %v1808_v40 }
 0x4ae   : > { %1819 = vadd.xlane.f32.xlu1 %v1818_v44  ;;  %1822 = vadd.xlane.f32.xlu0 %v1821_v18  ;;  %v1810_v35 = vmul.f32 %v4804_v16, %v4732_v15  ;;  %v1811_v27 = vmul.f32 %v4807_v56, %v4746_v37  ;;  %v1812_v55 = vmul.f32 %v4804_v16, %v1767_v34 }
 0x4af   : > { %v1813_v58 = vmul.f32 %v4807_v56, %v1768_v57  ;;  %v1814_v0 = vmul.f32 %v4804_v16, %v1769_v22  ;;  %v1815_v26 = vmul.f32 %v4807_v56, %v1770_v7  ;;  %v1816_v46 = vmul.f32 %v4804_v16, %v1771_v24  ;;  %v1914_v7 = vpop.permute.xlu1 %1913 }
 0x4b0   : > { %v1830_v61 = vadd.f32 %v1811_v27, %v1810_v35  ;;  %v1817_v43 = vmul.f32 %v4807_v56, %v1772_v47 }
 0x4b1   : > { %v1833_v29 = vadd.f32 %v1813_v58, %v1812_v55  ;;  %v1836_v15 = vadd.f32 %v1815_v26, %v1814_v0 }
 0x4b2   : > { %1825 = vadd.xlane.f32.xlu1 %v1824_v4  ;;  %1828 = vadd.xlane.f32.xlu0 %v1827_v19  ;;  %v1839_v37 = vadd.f32 %v1817_v43, %v1816_v46 }
 0x4b6   : > { %1831 = vadd.xlane.f32.xlu1 %v1830_v61  ;;  %1834 = vadd.xlane.f32.xlu0 %v1833_v29 }
 0x4ba   : > { %1837 = vadd.xlane.f32.xlu1 %v1836_v15  ;;  %1840 = vadd.xlane.f32.xlu0 %v1839_v37 }
 0x4cb   : > { %1921 = vbcast.lane.b32.xlu1 %v4554_v14, 272 }
 0x4cf   : > { %1925 = vbcast.lane.b32.xlu1 %v4554_v14, 280 }
 0x4d0   : > { %1917 = vbcast.lane.b32.xlu0 %v4554_v14, 264 }
 0x510   : > { %v1860_v57 = vpop.xlane.xlu1 %1859 }
 0x511   : > { %v1882_v21 = vadd.f32 1e-16, %v1860_v57 }
 0x513   : > { %3221 = vrsqrt.f32 %v1882_v21 }
 0x51d   : > { %v4822_v53 = vpop.eup %3221 }
 0x525   : > { %v1863_v22 = vpop.xlane.xlu0 %1862 }
 0x526   : > { %v1883_v36 = vadd.f32 1e-16, %v1863_v22 }
 0x527   : > { %v1872_v47 = vpop.xlane.xlu1 %1871 }
 0x528   : > { %v1886_v17 = vadd.f32 1e-16, %v1872_v47  ;;  %3223 = vrsqrt.f32 %v1883_v36 }
 0x529   : > { %v1866_v34 = vpop.xlane.xlu0 %1865 }
 0x52a   : > { %v1884_v40 = vadd.f32 1e-16, %v1866_v34  ;;  %3225 = vrsqrt.f32 %v1886_v17 }
 0x52c   : > { %v1878_v51 = vpop.xlane.xlu1 %1877  ;;  %3227 = vrsqrt.f32 %v1884_v40 }
 0x52d   : > { %v1869_v24 = vpop.xlane.xlu0 %1868  ;;  %v1888_v27 = vadd.f32 1e-16, %v1878_v51 }
 0x52e   : > { %v1885_v4 = vadd.f32 1e-16, %v1869_v24 }
 0x531   : > { %v1875_v6 = vpop.xlane.xlu0 %1874 }
 0x532   : > { %v1887_v55 = vadd.f32 1e-16, %v1875_v6  ;;  %v4825_v26 = vpop.eup %3223 }
 0x534   : > { %v4827_v43 = vpop.eup %3225 }
 0x535   : > { %v1881_v23 = vpop.xlane.xlu0 %1880 }
 0x536   : > { %v1889_v61 = vadd.f32 1e-16, %v1881_v23  ;;  %v4829_v15 = vpop.eup %3227 }
 0x53b   : > { %v1820_v42 = vpop.xlane.xlu1 %1819  ;;  %v1823_v44 = vpop.xlane.xlu0 %1822 }
 0x53c   : > { %v1898_v14 = vmul.f32 %v4822_v53, %v1820_v42  ;;  %v1899_v34 = vmul.f32 %v4825_v26, %v1823_v44 }
 0x53e   : > { %v1931_v18 = vadd.f32 %v1914_v7, %v1898_v14 }
 0x53f   : > { %v1826_v19 = vpop.xlane.xlu1 %1825  ;;  %v1829_v35 = vpop.xlane.xlu0 %1828 }
 0x540   : > { %3229 = vtanh.f32 %v1931_v18  ;;  %v1900_v57 = vmul.f32 %v4829_v15, %v1826_v19 }
 0x541   : > { %3231 = vrsqrt.f32 %v1885_v4 }
 0x542   : > { %3233 = vrsqrt.f32 %v1888_v27 }
 0x543   : > { %v1832_v58 = vpop.xlane.xlu1 %1831  ;;  %v1835_v0 = vpop.xlane.xlu0 %1834  ;;  %3235 = vrsqrt.f32 %v1887_v55 }
 0x544   : > { %v1902_v37 = vmul.f32 %v4827_v43, %v1832_v58  ;;  %3237 = vrsqrt.f32 %v1889_v61 }
 0x546   : > { %v1935_v23 = vadd.f32 %v1914_v7, %v1902_v37 }
 0x547   : > { %v1838_v29 = vpop.xlane.xlu1 %1837  ;;  %v1841_v46 = vpop.xlane.xlu0 %1840 }
 0x54a   : > { %v3230_v22 = vpop.eup %3229 }
 0x54b   : > { %1997 = vperm.xlu1 %3124, %v3230_v22   ;;  %v1922_v21 = vpop.permute.xlu1 %1921  ;;  %v1918_v24 = vpop.permute.xlu0 %1917 }
 0x54c   : > { %v1933_v47 = vadd.f32 %v1922_v21, %v1900_v57  ;;  %v1932_v6 = vadd.f32 %v1918_v24, %v1899_v34  ;;  %v3232_v51 = vpop.eup %3231  ;;  %v1956_v34 = vmul.f32 %v4822_v53, %v4581_v5  ;;  %v1957_v5 = vmul.f32 %v4825_v26, %v4682_v33 }
 0x54d   : > { %v1901_v36 = vmul.f32 %v3232_v51, %v1829_v35  ;;  %v3234_v17 = vpop.eup %3233 }
 0x54e   : > { %3239 = vtanh.f32 %v1933_v47  ;;  %v1904_v42 = vmul.f32 %v3234_v17, %v1838_v29  ;;  %v3236_v18 = vpop.eup %3235  ;;  %v1968_v33 = vmul.f32 %v3234_v17, %v4719_v11 }
 0x54f   : > { %v1926_v40 = vpop.permute.xlu1 %1925  ;;  %3241 = vtanh.f32 %v1932_v6  ;;  %v1903_v44 = vmul.f32 %v3236_v18, %v1835_v0  ;;  %v4834_v27 = vpop.eup %3237  ;;  %v5143_v6 = vld [vmem:[#allocation21_spill] sm:$0xff]  ;;  %v1966_v11 = vmul.f32 %v3236_v18, %v4739_v25 }
 0x550   : > { %v1934_v14 = vadd.f32 %v1926_v40, %v1901_v36  ;;  %3243 = vtanh.f32 %v1935_v23  ;;  %v1937_v4 = vadd.f32 %v1922_v21, %v1904_v42  ;;  %v1905_v55 = vmul.f32 %v4834_v27, %v1841_v46 }
 0x551   : > { %v1936_v19 = vadd.f32 %v1918_v24, %v1903_v44  ;;  %v1955_v46 = vmul.f32 %v4822_v53, %v4579_v10  ;;  %v1972_v23 = vmul.f32 %v1956_v34, %v5143_v6  ;;  %v1958_v53 = vmul.f32 %v4825_v26, %v4684_v32  ;;  %v5146_v32 = vld [vmem:[#allocation26_spill] sm:$0xff]  ;;  %v5149_v34 = vld [vmem:[#allocation27_spill] sm:$0xff] }
 0x552   : > { %3245 = vtanh.f32 %v1934_v14  ;;  %v1938_v7 = vadd.f32 %v1926_v40, %v1905_v55  ;;  %v5144_v40 = vld [vmem:[#allocation22_spill] sm:$0xff]  ;;  %v1963_v44 = vmul.f32 %v4827_v43, %v4698_v62  ;;  %v1960_v55 = vmul.f32 %v4829_v15, %v4672_v1 }
 0x553   : > { %3247 = vtanh.f32 %v1937_v4  ;;  %v1971_v47 = vmul.f32 %v1955_v46, %v4557_v41  ;;  %v1964_v4 = vmul.f32 %v4827_v43, %v4700_v12  ;;  %v1974_v26 = vmul.f32 %v1958_v53, %v5146_v32 }
 0x554   : > { %3249 = vtanh.f32 %v1936_v19  ;;  %v1959_v19 = vmul.f32 %v4829_v15, %v4670_v52  ;;  %v1965_v62 = vmul.f32 %v3236_v18, %v4734_v3  ;;  %v1961_v12 = vmul.f32 %v3232_v51, %v4704_v13  ;;  %v5148_v3 = vld [vmem:[#allocation24_spill] sm:$0xff] }
 0x555   : > { %3251 = vtanh.f32 %v1938_v7  ;;  %v5145_v7 = vld [vmem:[#allocation25_spill] sm:$0xff]  ;;  %v1962_v43 = vmul.f32 %v3232_v51, %v4709_v54 }
 0x556   : > { %v1981_v18 = vmul.f32 %v1965_v62, %v5145_v7 }
 0x558   : > { %v3240_v58 = vpop.eup %3239 }
 0x559   : > { %2007 = vperm.xlu1 %3124, %v3240_v58   ;;  %v3242_v35 = vpop.eup %3241  ;;  %v1967_v58 = vmul.f32 %v3234_v17, %v4717_v49  ;;  %v1979_v49 = vmul.f32 %v1963_v44, %v4557_v41  ;;  %v1980_v17 = vmul.f32 %v1964_v4, %v5143_v6  ;;  %v1969_v44 = vmul.f32 %v4834_v27, %v4762_v31 }
 0x55a   : > { %v3244_v61 = vpop.eup %3243  ;;  %2002 = vperm.xlu0 %3123, %v3242_v35   ;;  %v1973_v35 = vmul.f32 %v1957_v5, %v5145_v7 }
 0x55c   : > { %v3246_v29 = vpop.eup %3245 }
 0x55d   : > { %2017 = vperm.xlu1 %3124, %v3244_v61   ;;  %v3248_v0 = vpop.eup %3247 }
 0x55e   : > { %2012 = vperm.xlu0 %3123, %v3246_v29   ;;  %v3250_v37 = vpop.eup %3249  ;;  %v5147_v29 = vld [vmem:[#allocation23_spill] sm:$0xff] }
 0x55f   : > { %v3252_v22 = vpop.eup %3251  ;;  %v1983_v13 = vmul.f32 %v1967_v58, %v5147_v29 }
 0x561   : > { %2027 = vperm.xlu1 %3124, %v3248_v0   ;;  %v1975_v0 = vmul.f32 %v1959_v19, %v5147_v29 }
 0x562   : > { %2022 = vperm.xlu0 %3123, %v3250_v37   ;;  %v1976_v37 = vmul.f32 %v1960_v55, %v5148_v3 }
 0x566   : > { %2032 = vperm.xlu0 %3123, %v3252_v22   ;;  %v1984_v22 = vmul.f32 %v1968_v33, %v5148_v3 }
 0x5ca   : > { %v4841_v57 = vpop.permute.xlu1 %1997 }
 0x5cb   : > { %v2035_v21 = vmul.f32 %v4841_v57, %v4786_v60  ;;  %v2036_v24 = vmul.f32 %v4841_v57, %v4789_v59 }
 0x5cd   : > { %v2051_v36 = vmul.f32 %v2035_v21, %v4565_v45  ;;  %v2052_v42 = vmul.f32 %v2036_v24, %v5144_v40  ;;  %v1977_v21 = vmul.f32 %v1961_v12, %v5149_v34  ;;  %v1978_v24 = vmul.f32 %v1962_v43, %v4633_v28 }
 0x5cf   : > { %v2067_v10 = vadd.f32 %v2051_v36, %v1971_v47  ;;  %v2068_v14 = vadd.f32 %v2052_v42, %v1972_v23  ;;  %v1982_v36 = vmul.f32 %v1966_v11, %v5146_v32  ;;  %v5150_v42 = vld [vmem:[#allocation28_spill] sm:$0xff] }
 0x5d1   : > { %2124 = vst [vmem:[#allocation15] sm:$0xff] %v2067_v10  ;;  %2125 = vst [vmem:[#allocation15 + $0x8] sm:$0xff] %v2068_v14  ;;  %v2086_v10 = vrot.slane %v4841_v57, %v5150_v42 }
 0x5d8   : > { %v4866_v61 = vpop.permute.xlu1 %2007 }
 0x5d9   : > { %v2039_v52 = vmul.f32 %v4866_v61, %v4786_v60  ;;  %v2040_v1 = vmul.f32 %v4866_v61, %v4789_v59  ;;  %v2003_v15 = vpop.permute.xlu0 %2002  ;;  %v2095_v7 = vrot.slane %v4866_v61, %v4074_v20 }
 0x5da   : > { %v2037_v54 = vmul.f32 %v2003_v15, %v4786_v60  ;;  %v2038_v51 = vmul.f32 %v2003_v15, %v4789_v59  ;;  %v2090_v12 = vrot.slane %v2003_v15, %v3996_v8 }
 0x5db   : > { %v2055_v46 = vmul.f32 %v2039_v52, %v4637_v9  ;;  %v2056_v25 = vmul.f32 %v2040_v1, %v4639_v2 }
 0x5dc   : > { %v2018_v41 = vpop.permute.xlu1 %2017  ;;  %v2053_v47 = vmul.f32 %v2037_v54, %v4649_v38  ;;  %v2054_v6 = vmul.f32 %v2038_v51, %v4651_v63 }
 0x5dd   : > { %v2043_v23 = vmul.f32 %v2018_v41, %v4804_v16  ;;  %v2044_v14 = vmul.f32 %v2018_v41, %v4807_v56  ;;  %v2013_v5 = vpop.permute.xlu0 %2012  ;;  %v2071_v53 = vadd.f32 %v2055_v46, %v1975_v0  ;;  %v2072_v32 = vadd.f32 %v2056_v25, %v1976_v37 }
 0x5de   : > { %v2069_v4 = vadd.f32 %v2053_v47, %v1973_v35  ;;  %v2070_v19 = vadd.f32 %v2054_v6, %v1974_v26  ;;  %v2041_v58 = vmul.f32 %v2013_v5, %v4786_v60  ;;  %v2042_v57 = vmul.f32 %v2013_v5, %v4789_v59 }
 0x5df   : > { %v2059_v55 = vmul.f32 %v2043_v23, %v4565_v45  ;;  %v2060_v33 = vmul.f32 %v2044_v14, %v5144_v40  ;;  %2128 = vst [vmem:[#allocation15 + $0x20] sm:$0xff] %v2071_v53  ;;  %v2105_v26 = vrot.slane %v2018_v41, %v5150_v42  ;;  %2129 = vst [vmem:[#allocation15 + $0x28] sm:$0xff] %v2072_v32 }
 0x5e0   : > { %v2028_v62 = vpop.permute.xlu1 %2027  ;;  %2126 = vst [vmem:[#allocation15 + $0x10] sm:$0xff] %v2069_v4  ;;  %2127 = vst [vmem:[#allocation15 + $0x18] sm:$0xff] %v2070_v19  ;;  %v2057_v40 = vmul.f32 %v2041_v58, %v4680_v48  ;;  %v2058_v59 = vmul.f32 %v2042_v57, %v4686_v50  ;;  %v1970_v46 = vmul.f32 %v4834_v27, %v4770_v39 }
 0x5e1   : > { %v2075_v31 = vadd.f32 %v2059_v55, %v1979_v49  ;;  %v2047_v35 = vmul.f32 %v2028_v62, %v4804_v16  ;;  %v2048_v45 = vmul.f32 %v2028_v62, %v4807_v56  ;;  %v2076_v60 = vadd.f32 %v2060_v33, %v1980_v17  ;;  %v2023_v61 = vpop.permute.xlu0 %2022 }
 0x5e2   : > { %v2045_v1 = vmul.f32 %v2023_v61, %v4804_v16  ;;  %v2046_v49 = vmul.f32 %v2023_v61, %v4807_v56  ;;  %v2114_v11 = vrot.slane %v2028_v62, %v4074_v20  ;;  %v2109_v15 = vrot.slane %v2023_v61, %v3996_v8 }
 0x5e3   : > { %2132 = vst [vmem:[#allocation15 + $0x40] sm:$0xff] %v2075_v31  ;;  %v2063_v43 = vmul.f32 %v2047_v35, %v4637_v9  ;;  %v2064_v52 = vmul.f32 %v2048_v45, %v4639_v2  ;;  %2133 = vst [vmem:[#allocation15 + $0x48] sm:$0xff] %v2076_v60  ;;  %v2073_v17 = vadd.f32 %v2057_v40, %v1977_v21 }
 0x5e4   : > { %v2074_v29 = vadd.f32 %v2058_v59, %v1978_v24  ;;  %v2061_v37 = vmul.f32 %v2045_v1, %v4649_v38  ;;  %v2062_v54 = vmul.f32 %v2046_v49, %v4651_v63  ;;  %v2091_v9 = vsel %vm846_vm2, %v2090_v12, %v2086_v10 }
 0x5e5   : > { %v2079_v0 = vadd.f32 %v2063_v43, %v1983_v13  ;;  %v2080_v3 = vadd.f32 %v2064_v52, %v1984_v22  ;;  %v2100_v2 = vrot.slane %v2013_v5, %v4088_v30  ;;  %v2110_v51 = vsel %vm846_vm2, %v2109_v15, %v2105_v26  ;;  %2130 = vst [vmem:[#allocation15 + $0x30] sm:$0xff] %v2073_v17  ;;  %v2033_v8 = vpop.permute.xlu0 %2032 }
 0x5e6   : > { %2131 = vst [vmem:[#allocation15 + $0x38] sm:$0xff] %v2074_v29  ;;  %v2077_v20 = vadd.f32 %v2061_v37, %v1981_v18  ;;  %v2078_v13 = vadd.f32 %v2062_v54, %v1982_v36  ;;  %v2049_v38 = vmul.f32 %v2033_v8, %v4804_v16  ;;  %v2050_v63 = vmul.f32 %v2033_v8, %v4807_v56  ;;  %v2148_v36 = vld [vmem:[%s5062_s5 + $0x18] sm:$0xff] (!%p2851_p4)  ;;  %v2852_v54 = vld [vmem:[%s5063_s6] ss:$0 sm:$0xff] (!%p2851_p4) }
 0x5e7   : > { %2136 = vst [vmem:[#allocation15 + $0x60] sm:$0xff] %v2079_v0  ;;  %2137 = vst [vmem:[#allocation15 + $0x68] sm:$0xff] %v2080_v3  ;;  %v2119_v22 = vrot.slane %v2033_v8, %v4088_v30  ;;  %v2096_v41 = vsel %vm853_vm3, %v2095_v7, %v2091_v9  ;;  %v1985_v25 = vmul.f32 %v1969_v44, %v5149_v34  ;;  %2143 = sbr.rel (%p2851_p4) target bundleno = 1767 (0x6e7), region = 76  ;;  %v3524_v34 = vmov (!%p2851_p4), 0.0|0.0  }
 0x5e8   : > { %2134 = vst [vmem:[#allocation15 + $0x50] sm:$0xff] %v2077_v20  ;;  %2135 = vst [vmem:[#allocation15 + $0x58] sm:$0xff] %v2078_v13  ;;  %v2115_v39 = vsel %vm853_vm3, %v2114_v11, %v2110_v51  ;;  %v2065_v27 = vmul.f32 %v2049_v38, %v4680_v48  ;;  %v2101_v21 = vsel %vm860_vm4, %v2100_v2, %v2096_v41  ;;  %v2145_v48 = vld [vmem:[%s5062_s5] sm:$0xff] (!%p2851_p4)  ;;  %2959 = vmatprep.subr.bf16.mxu1 (!%p2851_p4), %v3524_v34  ;;  %v3526_v5 = vmov (!%p2851_p4), 0.0  }
 0x5e9   : > { %v1986_v18 = vmul.f32 %v1970_v46, %v4633_v28  ;;  %v2066_v16 = vmul.f32 %v2050_v63, %v4686_v50  ;;  %v2120_v56 = vsel %vm860_vm4, %v2119_v22, %v2115_v39  ;;  %v2146_v28 = vld [vmem:[%s5062_s5 + $0x8] sm:$0xff] (!%p2851_p4)  ;;  %v2147_v50 = vld [vmem:[%s5062_s5 + $0x10] sm:$0xff] (!%p2851_p4)  ;;  %2977 = vmatprep.subr.bf16.mxu0 (!%p2851_p4), %v3524_v34  ;;  %v2161_v6 = vand.u32 (!%p2851_p4), 4294901760, %v2145_v48  ;;  %2901 = vmatprep.mubr.msk.f32.mxu1 (!%p2851_p4), %vm3525_vm6, %v3526_v5 }
 0x5ea   : > { %v2081_v24 = vadd.f32 %v2065_v27, %v1985_v25  ;;  %v2121_v30 = vsel %vm881_vm5, %v2120_v56, %v2101_v21  ;;  %v2164_v23 = vand.u32 (!%p2851_p4), 4294901760, %v2146_v28  ;;  %v2167_v42 = vand.u32 (!%p2851_p4), 4294901760, %v2147_v50  ;;  %2934 = vmatprep.mubr.msk.f32.mxu0 (!%p2851_p4), %vm3525_vm6, %v3526_v5 }
 0x5eb   : > { %v2082_v47 = vadd.f32 %v2066_v16, %v1986_v18  ;;  %2123 = vst.msk [vmem:[#allocation13] sm:$0x3] %vm482_vm1, %v2121_v30  ;;  %v2170_v14 = vand.u32 (!%p2851_p4), 4294901760, %v2148_v36  ;;  %v2241_v44 = vsub.f32 (!%p2851_p4), %v2145_v48, %v2161_v6 }
 0x5ec   : > { %2138 = vst [vmem:[#allocation15 + $0x70] sm:$0xff] %v2081_v24  ;;  %v2960_v53 = vpack.c.bf16 (!%p2851_p4), %v2164_v23, %v2161_v6  ;;  %v2248_v4 = vsub.f32 (!%p2851_p4), %v2146_v28, %v2164_v23  ;;  %v2255_v19 = vsub.f32 (!%p2851_p4), %v2147_v50, %v2167_v42 }
 0x5ed   : > { %2139 = vst [vmem:[#allocation15 + $0x78] sm:$0xff] %v2082_v47  ;;  %v2963_v55 = vpack.c.bf16 (!%p2851_p4), %v2170_v14, %v2167_v42  ;;  %v2262_v58 = vsub.f32 (!%p2851_p4), %v2148_v36, %v2170_v14  ;;  %v2242_v57 = vand.u32 (!%p2851_p4), 4294901760, %v2241_v44 }
 0x5ee   : > { %2961 = vmatpush3.bf16.msra.mxu1 %v2960_v53  ;;  %2979 = vmatpush3.bf16.msra.mxu0 %v2960_v53  ;;  %v2249_v32 = vand.u32 4294901760, %v2248_v4  ;;  %v2256_v62 = vand.u32 4294901760, %v2255_v19  ;;  %v2972_v0 = vpack.c.bf16 %v2248_v4, %v2241_v44 }
 0x5ef   : > { %2962 = vmatprep.subr.bf16.mxu1 %v3524_v34  ;;  %2980 = vmatprep.subr.bf16.mxu0 %v3524_v34  ;;  %v2263_v12 = vand.u32 4294901760, %v2262_v58  ;;  %v2243_v35 = vsub.f32 %v2241_v44, %v2242_v57  ;;  %v2975_v3 = vpack.c.bf16 %v2262_v58, %v2255_v19 }
 0x5f0   : > { %v2250_v45 = vsub.f32 %v2248_v4, %v2249_v32  ;;  %v2257_v60 = vsub.f32 %v2255_v19, %v2256_v62  ;;  %v2984_v43 = vpack.c.bf16 %v2249_v32, %v2242_v57 }
 0x5f1   : > { %v2264_v26 = vsub.f32 %v2262_v58, %v2263_v12  ;;  %v2244_v40 = vand.u32 4294901760, %v2243_v35  ;;  %v2987_v17 = vpack.c.bf16 %v2263_v12, %v2256_v62 }
 0x5f2   : > { %v2144_v10 = vld [vmem:[#allocation13] sm:$0x3]  ;;  %2964 = vmatpush3.bf16.msra.mxu1 %v2963_v55  ;;  %2982 = vmatpush3.bf16.msra.mxu0 %v2963_v55  ;;  %v2251_v59 = vand.u32 4294901760, %v2250_v45  ;;  %v2258_v49 = vand.u32 4294901760, %v2257_v60 }
 0x5f3   : > { %v2158_v7 = vsel %vm2156_vm7, %v2144_v10, 0  ;;  %2965 = vmatprep.subr.bf16.mxu1 %v3524_v34  ;;  %2983 = vmatprep.subr.bf16.mxu0 %v3524_v34  ;;  %v2265_v11 = vand.u32 4294901760, %v2264_v26 }
 0x5f4   : > { %v2229_v33 = vand.u32 4294901760, %v2158_v7  ;;  %v2966_v1 = vpack.c.bf16 %v2251_v59, %v2244_v40 }
 0x5f5   : > { %v2969_v29 = vpack.c.bf16 %v2265_v11, %v2258_v49 }
 0x5f6   : > { %v2230_v31 = vsub.f32 %v2158_v7, %v2229_v33 }
 0x5f8   : > { %v2231_v61 = vand.u32 4294901760, %v2230_v31 }
 0x5fa   : > { %v2232_v52 = vsub.f32 %v2230_v31, %v2231_v61  ;;  %2935 = vmatmul.mubr.f32.vlgmr.msra.gmra.mrb[0].mxu0 %v2231_v61 }
 0x5fb   : > { %2985 = vmatpush3.bf16.msra.mxu0 %v2984_v43  ;;  %2945 = vmatprep.mubr.msk.f32.mxu0 %vm3525_vm6, %v3526_v5 }
 0x5fc   : > { %v2233_v15 = vand.u32 4294901760, %v2232_v52  ;;  %2986 = vmatprep.subr.bf16.mxu0 %v3524_v34 }
 0x5fe   : > { %2902 = vmatmul.mubr.f32.vlgmr.msra.gmra.mrb[0].mxu1 %v2233_v15 }
 0x5ff   : > { %2967 = vmatpush3.bf16.msra.mxu1 %v2966_v1  ;;  %2912 = vmatprep.mubr.msk.f32.mxu1 %vm3525_vm6, %v3526_v5 }
 0x600   : > { %2968 = vmatprep.subr.bf16.mxu1 %v3524_v34  ;;  %2988 = vmatpush3.bf16.msra.mxu0 %v2987_v17 }
 0x601   : > { %2989 = vmatprep.subr.bf16.mxu0 %v3524_v34 }
 0x603   : > { %2970 = vmatpush3.bf16.msra.mxu1 %v2969_v29  ;;  %2946 = vmatmul.mubr.f32.vlgmr.msra.gmra.mrb[0].mxu0 %v2229_v33 }
 0x604   : > { %2971 = vmatprep.subr.bf16.mxu1 %v3524_v34  ;;  %2991 = vmatpush3.bf16.msra.mxu0 %v2960_v53 }
 0x605   : > { %2992 = vmatprep.subr.bf16.mxu0 %v3524_v34  ;;  %2956 = vmatprep.mubr.msk.f32.mxu0 %vm3525_vm6, %v3526_v5 }
 0x606   : > { %2913 = vmatmul.mubr.f32.vlgmr.msra.gmra.mrb[0].mxu1 %v2229_v33 }
 0x607   : > { %2973 = vmatpush3.bf16.msra.mxu1 %v2972_v0  ;;  %2923 = vmatprep.mubr.msk.f32.mxu1 %vm3525_vm6, %v3526_v5 }
 0x608   : > { %2974 = vmatprep.subr.bf16.mxu1 %v3524_v34  ;;  %2994 = vmatpush3.bf16.msra.mxu0 %v2963_v55 }
 0x60b   : > { %2976 = vmatpush3.bf16.msra.mxu1 %v2975_v3  ;;  %2957 = vmatmul.mubr.f32.vlgmr.msra.gmra.mrb[0].mxu0 %v2229_v33 }
 0x60e   : > { %2924 = vmatmul.mubr.f32.vlgmr.msra.gmra.mrb[0].mxu1 %v2230_v31 }
 0x6de   : > { %v2641_v37 = vpop.f32.mrb[0].mxu0 }
 0x6df   : > { %v2958_v9 = vpop.f32.mrb[1].mxu0 }
 0x6e1   : > { %v2406_v2 = vpop.f32.mrb[0].mxu1 }
 0x6e2   : > { %v2995_v51 = vadd.f32 %v2852_v54, %v2406_v2  ;;  %v2925_v46 = vpop.f32.mrb[1].mxu1 }
 0x6e4   : > { %v2996_v8 = vadd.f32 %v2995_v51, %v2641_v37 }
 0x6e6   : > { %2646 = vst.msk [vmem:[#allocation12] sm:$0x3] %vm2645_vm8, %v2996_v8 }
 0x6e7 PF: > { %s5151_s21 = sadd.s32 4294967295, %s3512_s20   ;;  %s3527_s22 = smov [#allocation13]  }
 0x6e8   : > { %p4973_p5 = scmp.eq.s32.totalorder %s5151_s21, 1  ;;  %s2669_s23 = sshll.u32 %s3527_s22, 4  ;;  %s2670_s23 = int_to_ptr.vmem [resolvable:$true] %s2669_s23 }
 0x6e9   : > { %s3368_s24 = scalar_lea.vmem %s2670_s23, 32  ;;  %p3375_p0 = scmp.lt.s32.totalorder %s2670_s23, %s2670_s23 }
 0x6ea   : > { %p3369_p9 = scmp.ne.s32.totalorder %s2670_s23, %s3368_s24  ;;  %p3376_p2 = scmp.lt.s32.totalorder %s3368_s24, %s3368_s24 }
 0x6ec   : > { %p3370_p12 = pnand %p3369_p9, %p4973_p5  ;;  %p3377_p6 = por %p3376_p2, %p3375_p0 }
 0x6ee   : > { %p3371_p13 = pneg %p3370_p12 }
 0x6f0   : > { %p3378_p10 = pnand %p3377_p6, %p3371_p13 }
 0x6f2   : > { %3381 = shalt.err (!%p3378_p10)
}
 0x6f3   : > { %s5153_s13 = sld [smem:[#allocation30_spill]] }
 0x6f9   : > { %s3382_s26 = scalar_lea.hbm %s5153_s13, 32 }
 0x6fa   : > { %p3383_p1 = scmp.ne.s32.totalorder %s5153_s13, %s3382_s26  ;;  %p3388_p11 = scmp.lt.u32.totalorder %s3382_s26, %s5153_s13 }
 0x6fc   : > { %p3384_p3 = pnand %p3383_p1, %p4973_p5 }
 0x6fe   : > { %p3385_p8 = pneg %p3384_p3 }
 0x700   : > { %p3390_p7 = pnand %p3388_p11, %p3385_p8 }
 0x702   : > { %3393 = shalt.err (!%p3390_p7)
}
 0x703   : > { %3022 = dma.vmem_to_hbm [thread:$0]  (%p4973_p5), %s2670_s23, 32, %s5153_s13, [#allocation14]  }
 0x704   : > { %s3528_s9 = smov [#allocation12]   ;;  %s3529_s11 = smov [#allocation15]  }
 0x705   : > { %s2656_s25 = sshll.u32 %s3528_s9, 4  ;;  %s2683_s21 = sshll.u32 %s3529_s11, 4  ;;  %s2657_s25 = int_to_ptr.vmem [resolvable:$true] %s2656_s25  ;;  %s2684_s21 = int_to_ptr.vmem [resolvable:$true] %s2683_s21 }
 0x706   : > { %s3394_s22 = scalar_lea.vmem %s2657_s25, 32  ;;  %p3401_p13 = scmp.lt.s32.totalorder %s2657_s25, %s2657_s25 }
 0x707   : > { %p3395_p4 = scmp.ne.s32.totalorder %s2657_s25, %s3394_s22  ;;  %p3402_p0 = scmp.lt.s32.totalorder %s3394_s22, %s3394_s22 }
 0x709   : > { %p3396_p9 = pnand %p3395_p4, %p4973_p5  ;;  %p3403_p2 = por %p3402_p0, %p3401_p13 }
 0x70b   : > { %p3397_p12 = pneg %p3396_p9 }
 0x70d   : > { %p3404_p6 = pnand %p3403_p2, %p3397_p12 }
 0x70f   : > { %3407 = shalt.err (!%p3404_p6)
}
 0x710   : > { %s5154_s30 = sld [smem:[#allocation29_spill]] }
 0x716   : > { %s3408_s23 = scalar_lea.hbm %s5154_s30, 32 }
 0x717   : > { %p3409_p10 = scmp.ne.s32.totalorder %s5154_s30, %s3408_s23  ;;  %p3414_p8 = scmp.lt.u32.totalorder %s3408_s23, %s5154_s30 }
 0x719   : > { %p3410_p1 = pnand %p3409_p10, %p4973_p5 }
 0x71b   : > { %p3411_p3 = pneg %p3410_p1 }
 0x71d   : > { %p3416_p11 = pnand %p3414_p8, %p3411_p3 }
 0x71f   : > { %3419 = shalt.err (!%p3416_p11)
}
 0x720   : > { %3020 = dma.vmem_to_hbm [thread:$0]  (%p4973_p5), %s2657_s25, 32, %s5154_s30, [#allocation6]  }
 0x721   : > { %s3420_s18 = scalar_lea.vmem %s2684_s21, 2048  ;;  %p3427_p12 = scmp.lt.s32.totalorder %s2684_s21, %s2684_s21 }
 0x722   : > { %p3421_p7 = scmp.ne.s32.totalorder %s2684_s21, %s3420_s18  ;;  %p3428_p13 = scmp.lt.s32.totalorder %s3420_s18, %s3420_s18 }
 0x724   : > { %p3422_p4 = pnand %p3421_p7, %p4973_p5  ;;  %p3429_p0 = por %p3428_p13, %p3427_p12 }
 0x726   : > { %p3423_p9 = pneg %p3422_p4 }
 0x728   : > { %p3430_p2 = pnand %p3429_p0, %p3423_p9 }
 0x72a   : > { %3433 = shalt.err (!%p3430_p2)
}
 0x72b   : > { %s5155_s22 = sld [smem:[#allocation31_spill]] }
 0x731   : > { %s3434_s24 = scalar_lea.hbm %s5155_s22, 2048 }
 0x732   : > { %p3435_p6 = scmp.ne.s32.totalorder %s5155_s22, %s3434_s24  ;;  %p3440_p3 = scmp.lt.u32.totalorder %s3434_s24, %s5155_s22 }
 0x734   : > { %p3436_p10 = pnand %p3435_p6, %p4973_p5 }
 0x736   : > { %p3437_p1 = pneg %p3436_p10 }
 0x738   : > { %p3442_p8 = pnand %p3440_p3, %p3437_p1 }
 0x73a   : > { %3445 = shalt.err (!%p3442_p8)
}
 0x73b   : > { %s3530_s27 = smov 256   ;;  %s3531_s17 = smov 16  }
 0x73c   : > { %3024 = dma.vmem_to_hbm [thread:$0]  (%p4973_p5), %s2684_s21, 2048, %s5155_s22, [#allocation14], %s3530_s27, %s3530_s27, %s3531_s17  }
 0x73d   : > { %3483 = dma.done.wait (%p4973_p5), [#allocation6], 32  }
 0x73e   : > { %3485 = vsyncadd (%p4973_p5), [#allocation6], 4294967264 }
 0x73f   : > { %3487 = dma.done.wait (%p4973_p5), [#allocation14], 2080  }
 0x740   : > { %3489 = vsyncadd (%p4973_p5), [#allocation14], 4294965216 }
 0x741 PF: > { %s29_s20 = sadd.s32 1, %s3512_s20   ;;  %s5156_s17 = smov %s3496_s7 }
 0x742   : > { %p26_p11 = scmp.ge.s32.totalorder %s29_s20, 4   ;;  %s5157_s7 = smov %s3500_s8 }
 0x743   : > { %s5158_s8 = smov %s3747_s12  ;;  %s5159_s18 = smov %s3508_s19 }
 0x744   : > { %s5160_s19 = smov %s5162_s10  ;;  %28 = sbr.rel (!%p26_p11) target bundleno = 12 (0xc), region = 134 }
 0x74b   :  { %2707 = vsyncpa [#allocation5], 1 }
 0x74c   :  { %2709 = vsyncpa [#allocation5 + $0x1], 1 }
 0x74d   :  { %2710 = vsyncpa [#allocation8], 1 }
 0x74e   :  { %2711 = vsyncpa [#allocation11], 1 }
 0x74f   :  { %2712 = vsyncpa [#allocation6], 1 }
 0x750   :  { %2714 = vsyncpa [#allocation6 + $0x1], 1 }
 0x751   :  { %2715 = vsyncpa [#allocation14], 1 }
 0x752   :  { %2716 = vsyncmov [#allocation3] }
 0x755   :  { %s2717_s16 = vpop.sfrf %2716 }
 0x756   :  { %p2861_p5 = scmp.ne.s32.totalorder %s2717_s16, 0 }
 0x758   :  { %2721 = shalt.err (%p2861_p5)  }

</bundles_post_ra>
